<compile_context>
chip_gen: v7x
topology: tpu7x:2x2x1
jax: 0.10.0
libtpu: 0.0.40
codegen_flags: <defaults>
</compile_context>

<pallas_src>
import jax
import jax.numpy as jnp
from jax import lax
from jax.experimental import pallas as pl
from jax.experimental.pallas import tpu as pltpu

# ---------------- small synthetic hyper-parameters ----------------
IMG = 16          # image spatial size
PATCH = 8         # patch size
IN_CH = 3         # input channels
EMBED = 32        # feature_dim (ViT embed dim)
DEPTH = 2         # number of transformer blocks
HEADS = 4
HEAD_DIM = EMBED // HEADS
MLP_HIDDEN = 4 * EMBED
N_PATCH = (IMG // PATCH) ** 2
N_TOK = N_PATCH + 1
PROJ_DIM = 192    # BinaryMLP project_dim
BIN_HID = 192     # BinaryMLP hidden_dim
LN_EPS = 1e-6
BN_EPS = 1e-5
OUT_LANES = 128   # lane-dense packed output width

_SQRT2_INV = 0.7071067811865476
# Explicit VMEM budget; all operands together are < 1 MiB, so 16 MiB is safe on
# v5e/v6e (128 MiB physical) and v7x (64 MiB physical / 32 MiB scoped default).
_VMEM_LIMIT = 16 * 1024 * 1024


# ---------------- in-kernel math helpers (pure jnp, traced inside the kernel) ----------------

def _erf(x):
    # Abramowitz & Stegun 7.1.26 polynomial, |err| < 1.5e-7: matches
    # torch.nn.GELU's exact erf to f32 round-off while only using ops with
    # guaranteed Mosaic lowerings (abs, exp, mul/add, where).
    a1, a2, a3, a4, a5 = 0.254829592, -0.284496736, 1.421413741, -1.453152027, 1.061405429
    p = 0.3275911
    ax = jnp.abs(x)
    t = 1.0 / (1.0 + p * ax)
    poly = ((((a5 * t + a4) * t + a3) * t + a2) * t + a1) * t
    y = 1.0 - poly * jnp.exp(-(ax * ax))
    return jnp.where(x < 0.0, -y, y)


def _gelu(x):
    return 0.5 * x * (1.0 + _erf(x * _SQRT2_INV))


def _layernorm(x, g, b, eps=LN_EPS):
    mu = jnp.mean(x, axis=-1, keepdims=True)
    var = jnp.mean((x - mu) ** 2, axis=-1, keepdims=True)
    return (x - mu) * lax.rsqrt(var + eps) * g + b


def _bn_gelu(x, g, b, eps=BN_EPS):
    # BatchNorm1d in training mode (module default): batch statistics, biased var.
    # NOTE: batch of 2 makes the statistics degenerate by construction; this
    # matches the stated PyTorch semantics.
    mu = jnp.mean(x, axis=0, keepdims=True)
    var = jnp.mean((x - mu) ** 2, axis=0, keepdims=True)
    return _gelu((x - mu) * lax.rsqrt(var + eps) * g + b)


# ============================ the single fused kernel ============================

def _fused_forward_kernel(
    patches_ref,                       # (2B*Np, C*P*P)
    patch_w_ref, patch_b_ref,          # (C*P*P, D), (1, D)
    cls_pos_ref,                       # (2B, D)  cls_token + pos[0]
    pos_patch_ref,                     # (2B*Np, D)  pos[1:] tiled per image
    ln1_g_ref, ln1_b_ref,              # (DEPTH, 1, D)
    wq_ref, wk_ref, wv_ref,            # (DEPTH*HEADS, D, HEAD_DIM)
    bq_ref, bk_ref, bv_ref,            # (DEPTH*HEADS, 1, HEAD_DIM)
    pw_ref,                            # (DEPTH*HEADS, HEAD_DIM, D)
    pb_ref,                            # (DEPTH, 1, D)
    ln2_g_ref, ln2_b_ref,              # (DEPTH, 1, D)
    fc1_w_ref, fc1_b_ref,              # (DEPTH, D, H), (DEPTH, 1, H)
    fc2_w_ref, fc2_b_ref,              # (DEPTH, H, D), (DEPTH, 1, D)
    norm_g_ref, norm_b_ref,            # (1, D)
    w1i_ref, w1e_ref,                  # (D, PROJ_DIM)
    b1_ref, g1_ref, bb1_ref,           # (1, PROJ_DIM)
    w2_ref,                            # (PROJ_DIM, BIN_HID)
    b2_ref, g2_ref, bb2_ref,           # (1, BIN_HID)
    w3_ref, b3_ref,                    # (BIN_HID, 2), (1, 2)
    agg_w_ref, agg_b_ref,              # (2, 1), (1, 1)
    out_ref):                          # (B, OUT_LANES) packed lane-dense output
    f32 = jnp.float32
    two_b = cls_pos_ref.shape[0]       # 2*batch  (images + explanations)
    b = two_b // 2
    nptot = patches_ref.shape[0]       # 2*batch * N_PATCH
    r = two_b + nptot                  # token-slab rows

    # ---- patch embedding + cls/pos: assemble the (R, D) token slab in VMEM ----
    tok_p = jnp.dot(patches_ref[...], patch_w_ref[...], preferred_element_type=f32)
    tok_p = tok_p + patch_b_ref[...] + pos_patch_ref[...]
    # slab layout: rows [0, 2B) = CLS tokens (one per image, images then
    # explanations), rows [2B, R) = patch tokens (N_PATCH consecutive per image)
    tok = jnp.concatenate([cls_pos_ref[...], tok_p], axis=0)          # (R, D)

    # ---- block-diagonal attention bias (same-image tokens only), built in-kernel ----
    row = lax.broadcasted_iota(jnp.int32, (r, r), 0)
    col = lax.broadcasted_iota(jnp.int32, (r, r), 1)

    def _owner(t):
        # image id of each slab row, without any vector integer division:
        # patch-row image id = number of patch-block starts <= t.
        pat = jnp.zeros_like(t)
        for i in range(1, two_b):
            pat = pat + (t >= two_b + i * N_PATCH).astype(jnp.int32)
        return jnp.where(t < two_b, t, pat)

    bias = jnp.where(_owner(row) == _owner(col), 0.0, -1e30).astype(f32)

    # ---- transformer blocks (depth and heads unrolled at trace time) ----
    scale = HEAD_DIM ** -0.5
    for d in range(DEPTH):
        # attention branch
        h = _layernorm(tok, ln1_g_ref[d], ln1_b_ref[d])
        attn = pb_ref[d]                               # (1, D), broadcasts over rows
        for hd in range(HEADS):
            idx = d * HEADS + hd
            q = jnp.dot(h, wq_ref[idx], preferred_element_type=f32) + bq_ref[idx]
            k = jnp.dot(h, wk_ref[idx], preferred_element_type=f32) + bk_ref[idx]
            v = jnp.dot(h, wv_ref[idx], preferred_element_type=f32) + bv_ref[idx]
            # contract on head_dim directly (no in-kernel k.T transpose)
            s = lax.dot_general(q, k, (((1,), (1,)), ((), ())),
                                preferred_element_type=f32) * scale + bias
            s = s - jnp.max(s, axis=-1, keepdims=True)
            p = jnp.exp(s)
            p = p / jnp.sum(p, axis=-1, keepdims=True)
            o = jnp.dot(p, v, preferred_element_type=f32)             # (R, HEAD_DIM)
            # fold the per-head output projection (avoids a lane concat)
            attn = attn + jnp.dot(o, pw_ref[idx], preferred_element_type=f32)
        tok = tok + attn

        # MLP branch
        h = _layernorm(tok, ln2_g_ref[d], ln2_b_ref[d])
        h = _gelu(jnp.dot(h, fc1_w_ref[d], preferred_element_type=f32) + fc1_b_ref[d])
        h = jnp.dot(h, fc2_w_ref[d], preferred_element_type=f32) + fc2_b_ref[d]
        tok = tok + h

    # ---- head: final ViT LayerNorm on the CLS rows (LN is per-row, so this is
    # exact), BinaryMLP, agg linear, F.normalize and cosine similarity ----
    inp = _layernorm(tok[0:b], norm_g_ref[...], norm_b_ref[...])      # (B, D) image CLS
    exf = _layernorm(tok[b:two_b], norm_g_ref[...], norm_b_ref[...])  # (B, D) explanation CLS

    # BinaryMLP on cat([sep=0, inp, sep=0, exf]); zero sep-token columns of the
    # first Linear contribute nothing, so the concat folds into two matmuls.
    h = (jnp.dot(inp, w1i_ref[...], preferred_element_type=f32)
         + jnp.dot(exf, w1e_ref[...], preferred_element_type=f32) + b1_ref[...])
    h = _bn_gelu(h, g1_ref[...], bb1_ref[...])
    # Dropout(p=0.0) is a no-op
    h = jnp.dot(h, w2_ref[...], preferred_element_type=f32) + b2_ref[...]
    h = _bn_gelu(h, g2_ref[...], bb2_ref[...])
    logits = jnp.dot(h, w3_ref[...], preferred_element_type=f32) + b3_ref[...]
    agg = jnp.dot(logits, agg_w_ref[...], preferred_element_type=f32) + agg_b_ref[...]

    # torch.nn.functional.normalize(p=2, eps=1e-12) and cosine_similarity(eps=1e-8)
    a_nrm = jnp.sqrt(jnp.sum(inp * inp, axis=-1, keepdims=True))
    b_nrm = jnp.sqrt(jnp.sum(exf * exf, axis=-1, keepdims=True))
    inn = inp / jnp.maximum(a_nrm, 1e-12)
    exn = exf / jnp.maximum(b_nrm, 1e-12)
    sim = (jnp.sum(inp * exf, axis=-1, keepdims=True)
           / jnp.maximum(a_nrm * b_nrm, 1e-8))

    # single lane-dense output slab: [inn | exn | agg | sim | zero-pad] -> (B, 128)
    pad = jnp.zeros((b, OUT_LANES - 2 * EMBED - 2), dtype=f32)
    out_ref[...] = jnp.concatenate([inn, exn, agg, sim, pad], axis=-1).astype(out_ref.dtype)


# ============================ wrapper (param reshapes + one pallas_call) ============================

def extract_patches(x):
    """NCHW -> (B, num_patches, C*P*P) matching Conv2d(weight.reshape(D, C*P*P))."""
    b, c, h, w = x.shape
    p = PATCH
    x = x.reshape(b, c, h // p, p, w // p, p)
    x = x.transpose(0, 2, 4, 1, 3, 5)  # B, H/p, W/p, C, p, p
    return x.reshape(b, (h // p) * (w // p), c * p * p)


def transformer_finernetwork_forward(params, images, explanations):
    b = images.shape[0]
    vit_p = params["vit"]
    bp = params["binary"]

    # Both ViT streams are one slab (images first, then explanations).
    # TODO(synk): on v7x the two streams could be split over the 2 TensorCores
    # (core_map / parallel grid axis); the single fused launch is favored here
    # because the whole forward is launch/DMA-overhead bound at this size.
    x_all = jnp.concatenate([images, explanations], axis=0)             # (2b, C, H, W)
    patches = extract_patches(x_all).reshape(2 * b * N_PATCH, IN_CH * PATCH * PATCH)

    # ---- parameter prep: pure weight reshapes/slices (no activations involved) ----
    pos = vit_p["pos_embed"][0]                                         # (N_TOK, D)
    cls_pos = jnp.broadcast_to(vit_p["cls_token"][0, 0] + pos[0], (2 * b, EMBED))
    pos_patch = jnp.tile(pos[1:], (2 * b, 1))                           # (2b*Np, D)

    def stack(name):
        return jnp.stack([blk[name] for blk in vit_p["blocks"]], axis=0)

    ln1_g = stack("ln1_g")[:, None, :]
    ln1_b = stack("ln1_b")[:, None, :]
    ln2_g = stack("ln2_g")[:, None, :]
    ln2_b = stack("ln2_b")[:, None, :]
    pb = stack("proj_b")[:, None, :]
    fc1_w = stack("fc1_w")
    fc1_b = stack("fc1_b")[:, None, :]
    fc2_w = stack("fc2_w")
    fc2_b = stack("fc2_b")[:, None, :]

    qkv_w = stack("qkv_w")                                              # (DEPTH, D, 3D)
    qkv_b = stack("qkv_b")                                              # (DEPTH, 3D)

    def per_head_w(w):   # (DEPTH, D, D) -> (DEPTH*HEADS, D, HEAD_DIM)
        return (w.reshape(DEPTH, EMBED, HEADS, HEAD_DIM)
                 .transpose(0, 2, 1, 3)
                 .reshape(DEPTH * HEADS, EMBED, HEAD_DIM))

    def per_head_b(v):   # (DEPTH, D) -> (DEPTH*HEADS, 1, HEAD_DIM)
        return v.reshape(DEPTH * HEADS, 1, HEAD_DIM)

    wq = per_head_w(qkv_w[:, :, :EMBED])
    wk = per_head_w(qkv_w[:, :, EMBED:2 * EMBED])
    wv = per_head_w(qkv_w[:, :, 2 * EMBED:])
    bq = per_head_b(qkv_b[:, :EMBED])
    bk = per_head_b(qkv_b[:, EMBED:2 * EMBED])
    bv = per_head_b(qkv_b[:, 2 * EMBED:])
    pw = stack("proj_w").reshape(DEPTH * HEADS, HEAD_DIM, EMBED)

    w1 = bp["w1"]                                   # (2*EMBED + 2, PROJ_DIM)
    w1_in = w1[1:1 + EMBED, :]                      # rows multiplying input_feat
    w1_ex = w1[2 + EMBED:2 + 2 * EMBED, :]          # rows multiplying exp_feat

    packed = pl.pallas_call(
        _fused_forward_kernel,
        out_shape=jax.ShapeDtypeStruct((b, OUT_LANES), jnp.float32),
        compiler_params=pltpu.CompilerParams(vmem_limit_bytes=_VMEM_LIMIT),
    )(patches, vit_p["patch_w"], vit_p["patch_b"].reshape(1, EMBED),
      cls_pos, pos_patch,
      ln1_g, ln1_b, wq, wk, wv, bq, bk, bv, pw, pb, ln2_g, ln2_b,
      fc1_w, fc1_b, fc2_w, fc2_b,
      vit_p["norm_g"].reshape(1, EMBED), vit_p["norm_b"].reshape(1, EMBED),
      w1_in, w1_ex, bp["b1"].reshape(1, PROJ_DIM),
      bp["bn1_g"].reshape(1, PROJ_DIM), bp["bn1_b"].reshape(1, PROJ_DIM),
      bp["w2"], bp["b2"].reshape(1, BIN_HID),
      bp["bn2_g"].reshape(1, BIN_HID), bp["bn2_b"].reshape(1, BIN_HID),
      bp["w3"], bp["b3"].reshape(1, 2),
      params["agg_w"], params["agg_b"].reshape(1, 1))

    inn = packed[:, :EMBED]
    exn = packed[:, EMBED:2 * EMBED]
    output = packed[:, 2 * EMBED:2 * EMBED + 1]
    sim = packed[:, 2 * EMBED + 1]
    return output, inn, exn, sim


# ============================ deterministic params ============================

def init_params(seed=0):
    key = jax.random.PRNGKey(seed)

    def nxt():
        nonlocal key
        key, sub = jax.random.split(key)
        return sub

    def w(shape, scale=0.02):
        return scale * jax.random.normal(nxt(), shape, jnp.float32)

    def zeros(shape):
        return jnp.zeros(shape, jnp.float32)

    def ones(shape):
        return jnp.ones(shape, jnp.float32)

    blocks = []
    for _ in range(DEPTH):
        blocks.append(dict(
            ln1_g=ones((EMBED,)), ln1_b=zeros((EMBED,)),
            qkv_w=w((EMBED, 3 * EMBED)), qkv_b=zeros((3 * EMBED,)),
            proj_w=w((EMBED, EMBED)), proj_b=zeros((EMBED,)),
            ln2_g=ones((EMBED,)), ln2_b=zeros((EMBED,)),
            fc1_w=w((EMBED, MLP_HIDDEN)), fc1_b=zeros((MLP_HIDDEN,)),
            fc2_w=w((MLP_HIDDEN, EMBED)), fc2_b=zeros((EMBED,)),
        ))

    vit = dict(
        patch_w=w((IN_CH * PATCH * PATCH, EMBED)),
        patch_b=zeros((EMBED,)),
        cls_token=w((1, 1, EMBED)),
        pos_embed=w((1, N_TOK, EMBED)),
        blocks=blocks,
        norm_g=ones((EMBED,)), norm_b=zeros((EMBED,)),
    )

    bin_in = 2 * EMBED + 2
    binary = dict(
        w1=w((bin_in, PROJ_DIM)), b1=zeros((PROJ_DIM,)),
        bn1_g=ones((PROJ_DIM,)), bn1_b=zeros((PROJ_DIM,)),
        w2=w((PROJ_DIM, BIN_HID)), b2=zeros((BIN_HID,)),
        bn2_g=ones((BIN_HID,)), bn2_b=zeros((BIN_HID,)),
        w3=w((BIN_HID, 2)), b3=zeros((2,)),
    )

    return dict(
        vit=vit,
        binary=binary,
        agg_w=w((2, 1), scale=0.5),
        agg_b=zeros((1,)),
    )


# ============================ main ============================

if __name__ == "__main__":
    params = init_params(seed=0)

    key = jax.random.PRNGKey(0)
    k_img, k_exp = jax.random.split(key)
    images = jax.random.normal(k_img, (2, IN_CH, IMG, IMG), jnp.float32)
    explanations = jax.random.normal(k_exp, (2, IN_CH, IMG, IMG), jnp.float32)

    fwd = jax.jit(transformer_finernetwork_forward)
    output, input_feat, exp_feat, sim = fwd(params, images, explanations)
    jax.block_until_ready((output, input_feat, exp_feat, sim))

    assert output.shape == (2, 1)
    assert input_feat.shape == (2, EMBED)
    assert exp_feat.shape == (2, EMBED)
    assert sim.shape == (2,)
    print("KERNEL_OK")
</pallas_src>

<mosaic_0001>
module attributes {stable_mosaic.version = 11 : i64} {
  func.func @_fused_forward_kernel(%arg0: memref<16x192xf32, #tpu.memory_space<vmem>>, %arg1: memref<192x32xf32, #tpu.memory_space<vmem>>, %arg2: memref<1x32xf32, #tpu.memory_space<vmem>>, %arg3: memref<4x32xf32, #tpu.memory_space<vmem>>, %arg4: memref<16x32xf32, #tpu.memory_space<vmem>>, %arg5: memref<2x1x32xf32, #tpu.memory_space<vmem>>, %arg6: memref<2x1x32xf32, #tpu.memory_space<vmem>>, %arg7: memref<8x32x8xf32, #tpu.memory_space<vmem>>, %arg8: memref<8x32x8xf32, #tpu.memory_space<vmem>>, %arg9: memref<8x32x8xf32, #tpu.memory_space<vmem>>, %arg10: memref<8x1x8xf32, #tpu.memory_space<vmem>>, %arg11: memref<8x1x8xf32, #tpu.memory_space<vmem>>, %arg12: memref<8x1x8xf32, #tpu.memory_space<vmem>>, %arg13: memref<8x8x32xf32, #tpu.memory_space<vmem>>, %arg14: memref<2x1x32xf32, #tpu.memory_space<vmem>>, %arg15: memref<2x1x32xf32, #tpu.memory_space<vmem>>, %arg16: memref<2x1x32xf32, #tpu.memory_space<vmem>>, %arg17: memref<2x32x128xf32, #tpu.memory_space<vmem>>, %arg18: memref<2x1x128xf32, #tpu.memory_space<vmem>>, %arg19: memref<2x128x32xf32, #tpu.memory_space<vmem>>, %arg20: memref<2x1x32xf32, #tpu.memory_space<vmem>>, %arg21: memref<1x32xf32, #tpu.memory_space<vmem>>, %arg22: memref<1x32xf32, #tpu.memory_space<vmem>>, %arg23: memref<32x192xf32, #tpu.memory_space<vmem>>, %arg24: memref<32x192xf32, #tpu.memory_space<vmem>>, %arg25: memref<1x192xf32, #tpu.memory_space<vmem>>, %arg26: memref<1x192xf32, #tpu.memory_space<vmem>>, %arg27: memref<1x192xf32, #tpu.memory_space<vmem>>, %arg28: memref<192x192xf32, #tpu.memory_space<vmem>>, %arg29: memref<1x192xf32, #tpu.memory_space<vmem>>, %arg30: memref<1x192xf32, #tpu.memory_space<vmem>>, %arg31: memref<1x192xf32, #tpu.memory_space<vmem>>, %arg32: memref<192x2xf32, #tpu.memory_space<vmem>>, %arg33: memref<1x2xf32, #tpu.memory_space<vmem>>, %arg34: memref<2x1xf32, #tpu.memory_space<vmem>>, %arg35: memref<1x1xf32, #tpu.memory_space<vmem>>, %arg36: memref<2x128xf32, #tpu.memory_space<vmem>>) attributes {dimension_semantics = [], scalar_prefetch = 0 : i64, scratch_operands = 0 : i64, tpu.core_type = #tpu.core_type<tc>} {
    %c0 = arith.constant 0 : index
    %c0_0 = arith.constant 0 : index
    %0 = vector.load %arg0[%c0, %c0_0] : memref<16x192xf32, #tpu.memory_space<vmem>>, vector<16x192xf32>
    %c0_1 = arith.constant 0 : index
    %c0_2 = arith.constant 0 : index
    %1 = vector.load %arg1[%c0_1, %c0_2] : memref<192x32xf32, #tpu.memory_space<vmem>>, vector<192x32xf32>
    %cst = arith.constant dense<0.000000e+00> : vector<16x32xf32>
    %2 = tpu.matmul %0, %1, %cst {dimension_numbers = #tpu.dot_dimension_numbers<[1], [0], [0], [1], [0, 0, 1, 1], [], []>} : vector<16x192xf32>, vector<192x32xf32>, vector<16x32xf32> -> vector<16x32xf32>
    %c0_3 = arith.constant 0 : index
    %c0_4 = arith.constant 0 : index
    %3 = vector.load %arg2[%c0_3, %c0_4] : memref<1x32xf32, #tpu.memory_space<vmem>>, vector<1x32xf32>
    %4 = vector.broadcast %3 : vector<1x32xf32> to vector<16x32xf32>
    %5 = arith.addf %2, %4 : vector<16x32xf32>
    %c0_5 = arith.constant 0 : index
    %c0_6 = arith.constant 0 : index
    %6 = vector.load %arg4[%c0_5, %c0_6] : memref<16x32xf32, #tpu.memory_space<vmem>>, vector<16x32xf32>
    %7 = arith.addf %5, %6 : vector<16x32xf32>
    %c0_7 = arith.constant 0 : index
    %c0_8 = arith.constant 0 : index
    %8 = vector.load %arg3[%c0_7, %c0_8] : memref<4x32xf32, #tpu.memory_space<vmem>>, vector<4x32xf32>
    %9 = tpu.concatenate %8, %7 in 0 : vector<4x32xf32>, vector<16x32xf32> -> vector<20x32xf32>
    %10 = tpu.iota {dimensions = array<i32: 0>} : vector<20x20xi32>
    %11 = tpu.iota {dimensions = array<i32: 1>} : vector<20x20xi32>
    %c0_i32 = arith.constant 0 : i32
    %12 = vector.broadcast %c0_i32 : i32 to vector<20x20xi32>
    %c8_i32 = arith.constant 8 : i32
    %13 = vector.broadcast %c8_i32 : i32 to vector<20x20xi32>
    %14 = arith.cmpi sge, %10, %13 : vector<20x20xi32>
    %15 = arith.extui %14 : vector<20x20xi1> to vector<20x20xi32>
    %16 = arith.addi %12, %15 : vector<20x20xi32>
    %c12_i32 = arith.constant 12 : i32
    %17 = vector.broadcast %c12_i32 : i32 to vector<20x20xi32>
    %18 = arith.cmpi sge, %10, %17 : vector<20x20xi32>
    %19 = arith.extui %18 : vector<20x20xi1> to vector<20x20xi32>
    %20 = arith.addi %16, %19 : vector<20x20xi32>
    %c16_i32 = arith.constant 16 : i32
    %21 = vector.broadcast %c16_i32 : i32 to vector<20x20xi32>
    %22 = arith.cmpi sge, %10, %21 : vector<20x20xi32>
    %23 = arith.extui %22 : vector<20x20xi1> to vector<20x20xi32>
    %24 = arith.addi %20, %23 : vector<20x20xi32>
    %c4_i32 = arith.constant 4 : i32
    %25 = vector.broadcast %c4_i32 : i32 to vector<20x20xi32>
    %26 = arith.cmpi slt, %10, %25 : vector<20x20xi32>
    %27 = arith.select %26, %10, %24 : vector<20x20xi1>, vector<20x20xi32>
    %c0_i32_9 = arith.constant 0 : i32
    %28 = vector.broadcast %c0_i32_9 : i32 to vector<20x20xi32>
    %c8_i32_10 = arith.constant 8 : i32
    %29 = vector.broadcast %c8_i32_10 : i32 to vector<20x20xi32>
    %30 = arith.cmpi sge, %11, %29 : vector<20x20xi32>
    %31 = arith.extui %30 : vector<20x20xi1> to vector<20x20xi32>
    %32 = arith.addi %28, %31 : vector<20x20xi32>
    %c12_i32_11 = arith.constant 12 : i32
    %33 = vector.broadcast %c12_i32_11 : i32 to vector<20x20xi32>
    %34 = arith.cmpi sge, %11, %33 : vector<20x20xi32>
    %35 = arith.extui %34 : vector<20x20xi1> to vector<20x20xi32>
    %36 = arith.addi %32, %35 : vector<20x20xi32>
    %c16_i32_12 = arith.constant 16 : i32
    %37 = vector.broadcast %c16_i32_12 : i32 to vector<20x20xi32>
    %38 = arith.cmpi sge, %11, %37 : vector<20x20xi32>
    %39 = arith.extui %38 : vector<20x20xi1> to vector<20x20xi32>
    %40 = arith.addi %36, %39 : vector<20x20xi32>
    %c4_i32_13 = arith.constant 4 : i32
    %41 = vector.broadcast %c4_i32_13 : i32 to vector<20x20xi32>
    %42 = arith.cmpi slt, %11, %41 : vector<20x20xi32>
    %43 = arith.select %42, %11, %40 : vector<20x20xi1>, vector<20x20xi32>
    %44 = arith.cmpi eq, %27, %43 : vector<20x20xi32>
    %cst_14 = arith.constant 0.000000e+00 : f32
    %cst_15 = arith.constant -1.000000e+30 : f32
    %45 = vector.broadcast %cst_14 : f32 to vector<20x20xf32>
    %46 = vector.broadcast %cst_15 : f32 to vector<20x20xf32>
    %47 = arith.select %44, %45, %46 : vector<20x20xi1>, vector<20x20xf32>
    %c0_16 = arith.constant 0 : index
    %c0_17 = arith.constant 0 : index
    %c0_18 = arith.constant 0 : index
    %48 = vector.load %arg5[%c0_16, %c0_17, %c0_18] : memref<2x1x32xf32, #tpu.memory_space<vmem>>, vector<1x1x32xf32>
    %49 = vector.shape_cast %48 : vector<1x1x32xf32> to vector<1x32xf32>
    %c0_19 = arith.constant 0 : index
    %c0_20 = arith.constant 0 : index
    %c0_21 = arith.constant 0 : index
    %50 = vector.load %arg6[%c0_19, %c0_20, %c0_21] : memref<2x1x32xf32, #tpu.memory_space<vmem>>, vector<1x1x32xf32>
    %51 = vector.shape_cast %50 : vector<1x1x32xf32> to vector<1x32xf32>
    %cst_22 = arith.constant dense<0.000000e+00> : vector<20xf32>
    %52 = vector.multi_reduction <add>, %9, %cst_22 [1] : vector<20x32xf32> to vector<20xf32>
    %53 = vector.shape_cast %52 : vector<20xf32> to vector<20x1xf32>
    %cst_23 = arith.constant 3.200000e+01 : f32
    %54 = vector.broadcast %cst_23 : f32 to vector<20x1xf32>
    %55 = arith.divf %53, %54 : vector<20x1xf32>
    %56 = vector.broadcast %55 : vector<20x1xf32> to vector<20x32xf32>
    %57 = arith.subf %9, %56 : vector<20x32xf32>
    %58 = arith.mulf %57, %57 : vector<20x32xf32>
    %cst_24 = arith.constant dense<0.000000e+00> : vector<20xf32>
    %59 = vector.multi_reduction <add>, %58, %cst_24 [1] : vector<20x32xf32> to vector<20xf32>
    %60 = vector.shape_cast %59 : vector<20xf32> to vector<20x1xf32>
    %cst_25 = arith.constant 3.200000e+01 : f32
    %61 = vector.broadcast %cst_25 : f32 to vector<20x1xf32>
    %62 = arith.divf %60, %61 : vector<20x1xf32>
    %63 = vector.broadcast %55 : vector<20x1xf32> to vector<20x32xf32>
    %64 = arith.subf %9, %63 : vector<20x32xf32>
    %cst_26 = arith.constant 9.99999997E-7 : f32
    %65 = vector.broadcast %cst_26 : f32 to vector<20x1xf32>
    %66 = arith.addf %62, %65 : vector<20x1xf32>
    %67 = math.rsqrt %66 : vector<20x1xf32>
    %68 = vector.broadcast %67 : vector<20x1xf32> to vector<20x32xf32>
    %69 = arith.mulf %64, %68 : vector<20x32xf32>
    %70 = vector.broadcast %49 : vector<1x32xf32> to vector<20x32xf32>
    %71 = arith.mulf %69, %70 : vector<20x32xf32>
    %72 = vector.broadcast %51 : vector<1x32xf32> to vector<20x32xf32>
    %73 = arith.addf %71, %72 : vector<20x32xf32>
    %c0_27 = arith.constant 0 : index
    %c0_28 = arith.constant 0 : index
    %c0_29 = arith.constant 0 : index
    %74 = vector.load %arg14[%c0_27, %c0_28, %c0_29] : memref<2x1x32xf32, #tpu.memory_space<vmem>>, vector<1x1x32xf32>
    %75 = vector.shape_cast %74 : vector<1x1x32xf32> to vector<1x32xf32>
    %c0_30 = arith.constant 0 : index
    %c0_31 = arith.constant 0 : index
    %c0_32 = arith.constant 0 : index
    %76 = vector.load %arg7[%c0_30, %c0_31, %c0_32] : memref<8x32x8xf32, #tpu.memory_space<vmem>>, vector<1x32x8xf32>
    %77 = vector.shape_cast %76 : vector<1x32x8xf32> to vector<32x8xf32>
    %cst_33 = arith.constant dense<0.000000e+00> : vector<20x8xf32>
    %78 = tpu.matmul %73, %77, %cst_33 {dimension_numbers = #tpu.dot_dimension_numbers<[1], [0], [0], [1], [0, 0, 1, 1], [], []>} : vector<20x32xf32>, vector<32x8xf32>, vector<20x8xf32> -> vector<20x8xf32>
    %c0_34 = arith.constant 0 : index
    %c0_35 = arith.constant 0 : index
    %c0_36 = arith.constant 0 : index
    %79 = vector.load %arg10[%c0_34, %c0_35, %c0_36] : memref<8x1x8xf32, #tpu.memory_space<vmem>>, vector<1x1x8xf32>
    %80 = vector.shape_cast %79 : vector<1x1x8xf32> to vector<1x8xf32>
    %81 = vector.broadcast %80 : vector<1x8xf32> to vector<20x8xf32>
    %82 = arith.addf %78, %81 : vector<20x8xf32>
    %c0_37 = arith.constant 0 : index
    %c0_38 = arith.constant 0 : index
    %c0_39 = arith.constant 0 : index
    %83 = vector.load %arg8[%c0_37, %c0_38, %c0_39] : memref<8x32x8xf32, #tpu.memory_space<vmem>>, vector<1x32x8xf32>
    %84 = vector.shape_cast %83 : vector<1x32x8xf32> to vector<32x8xf32>
    %cst_40 = arith.constant dense<0.000000e+00> : vector<20x8xf32>
    %85 = tpu.matmul %73, %84, %cst_40 {dimension_numbers = #tpu.dot_dimension_numbers<[1], [0], [0], [1], [0, 0, 1, 1], [], []>} : vector<20x32xf32>, vector<32x8xf32>, vector<20x8xf32> -> vector<20x8xf32>
    %c0_41 = arith.constant 0 : index
    %c0_42 = arith.constant 0 : index
    %c0_43 = arith.constant 0 : index
    %86 = vector.load %arg11[%c0_41, %c0_42, %c0_43] : memref<8x1x8xf32, #tpu.memory_space<vmem>>, vector<1x1x8xf32>
    %87 = vector.shape_cast %86 : vector<1x1x8xf32> to vector<1x8xf32>
    %88 = vector.broadcast %87 : vector<1x8xf32> to vector<20x8xf32>
    %89 = arith.addf %85, %88 : vector<20x8xf32>
    %c0_44 = arith.constant 0 : index
    %c0_45 = arith.constant 0 : index
    %c0_46 = arith.constant 0 : index
    %90 = vector.load %arg9[%c0_44, %c0_45, %c0_46] : memref<8x32x8xf32, #tpu.memory_space<vmem>>, vector<1x32x8xf32>
    %91 = vector.shape_cast %90 : vector<1x32x8xf32> to vector<32x8xf32>
    %cst_47 = arith.constant dense<0.000000e+00> : vector<20x8xf32>
    %92 = tpu.matmul %73, %91, %cst_47 {dimension_numbers = #tpu.dot_dimension_numbers<[1], [0], [0], [1], [0, 0, 1, 1], [], []>} : vector<20x32xf32>, vector<32x8xf32>, vector<20x8xf32> -> vector<20x8xf32>
    %c0_48 = arith.constant 0 : index
    %c0_49 = arith.constant 0 : index
    %c0_50 = arith.constant 0 : index
    %93 = vector.load %arg12[%c0_48, %c0_49, %c0_50] : memref<8x1x8xf32, #tpu.memory_space<vmem>>, vector<1x1x8xf32>
    %94 = vector.shape_cast %93 : vector<1x1x8xf32> to vector<1x8xf32>
    %95 = vector.broadcast %94 : vector<1x8xf32> to vector<20x8xf32>
    %96 = arith.addf %92, %95 : vector<20x8xf32>
    %cst_51 = arith.constant dense<0.000000e+00> : vector<20x20xf32>
    %97 = tpu.matmul %82, %89, %cst_51 {dimension_numbers = #tpu.dot_dimension_numbers<[1], [1], [0], [0], [0, 0, 1, 0], [], []>} : vector<20x8xf32>, vector<20x8xf32>, vector<20x20xf32> -> vector<20x20xf32>
    %cst_52 = arith.constant 0.353553385 : f32
    %98 = vector.broadcast %cst_52 : f32 to vector<20x20xf32>
    %99 = arith.mulf %97, %98 : vector<20x20xf32>
    %100 = arith.addf %99, %47 : vector<20x20xf32>
    %cst_53 = arith.constant dense<0xFF800000> : vector<20xf32>
    %101 = vector.multi_reduction <maximumf>, %100, %cst_53 [1] : vector<20x20xf32> to vector<20xf32>
    %102 = vector.shape_cast %101 : vector<20xf32> to vector<20x1xf32>
    %103 = vector.broadcast %102 : vector<20x1xf32> to vector<20x20xf32>
    %104 = arith.subf %100, %103 : vector<20x20xf32>
    %105 = math.exp %104 : vector<20x20xf32>
    %cst_54 = arith.constant dense<0.000000e+00> : vector<20xf32>
    %106 = vector.multi_reduction <add>, %105, %cst_54 [1] : vector<20x20xf32> to vector<20xf32>
    %107 = vector.shape_cast %106 : vector<20xf32> to vector<20x1xf32>
    %108 = vector.broadcast %107 : vector<20x1xf32> to vector<20x20xf32>
    %109 = arith.divf %105, %108 : vector<20x20xf32>
    %cst_55 = arith.constant dense<0.000000e+00> : vector<20x8xf32>
    %110 = tpu.matmul %109, %96, %cst_55 {dimension_numbers = #tpu.dot_dimension_numbers<[1], [0], [0], [1], [0, 0, 1, 1], [], []>} : vector<20x20xf32>, vector<20x8xf32>, vector<20x8xf32> -> vector<20x8xf32>
    %c0_56 = arith.constant 0 : index
    %c0_57 = arith.constant 0 : index
    %c0_58 = arith.constant 0 : index
    %111 = vector.load %arg13[%c0_56, %c0_57, %c0_58] : memref<8x8x32xf32, #tpu.memory_space<vmem>>, vector<1x8x32xf32>
    %112 = vector.shape_cast %111 : vector<1x8x32xf32> to vector<8x32xf32>
    %cst_59 = arith.constant dense<0.000000e+00> : vector<20x32xf32>
    %113 = tpu.matmul %110, %112, %cst_59 {dimension_numbers = #tpu.dot_dimension_numbers<[1], [0], [0], [1], [0, 0, 1, 1], [], []>} : vector<20x8xf32>, vector<8x32xf32>, vector<20x32xf32> -> vector<20x32xf32>
    %114 = vector.broadcast %75 : vector<1x32xf32> to vector<20x32xf32>
    %115 = arith.addf %114, %113 : vector<20x32xf32>
    %c1 = arith.constant 1 : index
    %c0_60 = arith.constant 0 : index
    %c0_61 = arith.constant 0 : index
    %116 = vector.load %arg7[%c1, %c0_60, %c0_61] : memref<8x32x8xf32, #tpu.memory_space<vmem>>, vector<1x32x8xf32>
    %117 = vector.shape_cast %116 : vector<1x32x8xf32> to vector<32x8xf32>
    %cst_62 = arith.constant dense<0.000000e+00> : vector<20x8xf32>
    %118 = tpu.matmul %73, %117, %cst_62 {dimension_numbers = #tpu.dot_dimension_numbers<[1], [0], [0], [1], [0, 0, 1, 1], [], []>} : vector<20x32xf32>, vector<32x8xf32>, vector<20x8xf32> -> vector<20x8xf32>
    %c1_63 = arith.constant 1 : index
    %c0_64 = arith.constant 0 : index
    %c0_65 = arith.constant 0 : index
    %119 = vector.load %arg10[%c1_63, %c0_64, %c0_65] : memref<8x1x8xf32, #tpu.memory_space<vmem>>, vector<1x1x8xf32>
    %120 = vector.shape_cast %119 : vector<1x1x8xf32> to vector<1x8xf32>
    %121 = vector.broadcast %120 : vector<1x8xf32> to vector<20x8xf32>
    %122 = arith.addf %118, %121 : vector<20x8xf32>
    %c1_66 = arith.constant 1 : index
    %c0_67 = arith.constant 0 : index
    %c0_68 = arith.constant 0 : index
    %123 = vector.load %arg8[%c1_66, %c0_67, %c0_68] : memref<8x32x8xf32, #tpu.memory_space<vmem>>, vector<1x32x8xf32>
    %124 = vector.shape_cast %123 : vector<1x32x8xf32> to vector<32x8xf32>
    %cst_69 = arith.constant dense<0.000000e+00> : vector<20x8xf32>
    %125 = tpu.matmul %73, %124, %cst_69 {dimension_numbers = #tpu.dot_dimension_numbers<[1], [0], [0], [1], [0, 0, 1, 1], [], []>} : vector<20x32xf32>, vector<32x8xf32>, vector<20x8xf32> -> vector<20x8xf32>
    %c1_70 = arith.constant 1 : index
    %c0_71 = arith.constant 0 : index
    %c0_72 = arith.constant 0 : index
    %126 = vector.load %arg11[%c1_70, %c0_71, %c0_72] : memref<8x1x8xf32, #tpu.memory_space<vmem>>, vector<1x1x8xf32>
    %127 = vector.shape_cast %126 : vector<1x1x8xf32> to vector<1x8xf32>
    %128 = vector.broadcast %127 : vector<1x8xf32> to vector<20x8xf32>
    %129 = arith.addf %125, %128 : vector<20x8xf32>
    %c1_73 = arith.constant 1 : index
    %c0_74 = arith.constant 0 : index
    %c0_75 = arith.constant 0 : index
    %130 = vector.load %arg9[%c1_73, %c0_74, %c0_75] : memref<8x32x8xf32, #tpu.memory_space<vmem>>, vector<1x32x8xf32>
    %131 = vector.shape_cast %130 : vector<1x32x8xf32> to vector<32x8xf32>
    %cst_76 = arith.constant dense<0.000000e+00> : vector<20x8xf32>
    %132 = tpu.matmul %73, %131, %cst_76 {dimension_numbers = #tpu.dot_dimension_numbers<[1], [0], [0], [1], [0, 0, 1, 1], [], []>} : vector<20x32xf32>, vector<32x8xf32>, vector<20x8xf32> -> vector<20x8xf32>
    %c1_77 = arith.constant 1 : index
    %c0_78 = arith.constant 0 : index
    %c0_79 = arith.constant 0 : index
    %133 = vector.load %arg12[%c1_77, %c0_78, %c0_79] : memref<8x1x8xf32, #tpu.memory_space<vmem>>, vector<1x1x8xf32>
    %134 = vector.shape_cast %133 : vector<1x1x8xf32> to vector<1x8xf32>
    %135 = vector.broadcast %134 : vector<1x8xf32> to vector<20x8xf32>
    %136 = arith.addf %132, %135 : vector<20x8xf32>
    %cst_80 = arith.constant dense<0.000000e+00> : vector<20x20xf32>
    %137 = tpu.matmul %122, %129, %cst_80 {dimension_numbers = #tpu.dot_dimension_numbers<[1], [1], [0], [0], [0, 0, 1, 0], [], []>} : vector<20x8xf32>, vector<20x8xf32>, vector<20x20xf32> -> vector<20x20xf32>
    %cst_81 = arith.constant 0.353553385 : f32
    %138 = vector.broadcast %cst_81 : f32 to vector<20x20xf32>
    %139 = arith.mulf %137, %138 : vector<20x20xf32>
    %140 = arith.addf %139, %47 : vector<20x20xf32>
    %cst_82 = arith.constant dense<0xFF800000> : vector<20xf32>
    %141 = vector.multi_reduction <maximumf>, %140, %cst_82 [1] : vector<20x20xf32> to vector<20xf32>
    %142 = vector.shape_cast %141 : vector<20xf32> to vector<20x1xf32>
    %143 = vector.broadcast %142 : vector<20x1xf32> to vector<20x20xf32>
    %144 = arith.subf %140, %143 : vector<20x20xf32>
    %145 = math.exp %144 : vector<20x20xf32>
    %cst_83 = arith.constant dense<0.000000e+00> : vector<20xf32>
    %146 = vector.multi_reduction <add>, %145, %cst_83 [1] : vector<20x20xf32> to vector<20xf32>
    %147 = vector.shape_cast %146 : vector<20xf32> to vector<20x1xf32>
    %148 = vector.broadcast %147 : vector<20x1xf32> to vector<20x20xf32>
    %149 = arith.divf %145, %148 : vector<20x20xf32>
    %cst_84 = arith.constant dense<0.000000e+00> : vector<20x8xf32>
    %150 = tpu.matmul %149, %136, %cst_84 {dimension_numbers = #tpu.dot_dimension_numbers<[1], [0], [0], [1], [0, 0, 1, 1], [], []>} : vector<20x20xf32>, vector<20x8xf32>, vector<20x8xf32> -> vector<20x8xf32>
    %c1_85 = arith.constant 1 : index
    %c0_86 = arith.constant 0 : index
    %c0_87 = arith.constant 0 : index
    %151 = vector.load %arg13[%c1_85, %c0_86, %c0_87] : memref<8x8x32xf32, #tpu.memory_space<vmem>>, vector<1x8x32xf32>
    %152 = vector.shape_cast %151 : vector<1x8x32xf32> to vector<8x32xf32>
    %cst_88 = arith.constant dense<0.000000e+00> : vector<20x32xf32>
    %153 = tpu.matmul %150, %152, %cst_88 {dimension_numbers = #tpu.dot_dimension_numbers<[1], [0], [0], [1], [0, 0, 1, 1], [], []>} : vector<20x8xf32>, vector<8x32xf32>, vector<20x32xf32> -> vector<20x32xf32>
    %154 = arith.addf %115, %153 : vector<20x32xf32>
    %c2 = arith.constant 2 : index
    %c0_89 = arith.constant 0 : index
    %c0_90 = arith.constant 0 : index
    %155 = vector.load %arg7[%c2, %c0_89, %c0_90] : memref<8x32x8xf32, #tpu.memory_space<vmem>>, vector<1x32x8xf32>
    %156 = vector.shape_cast %155 : vector<1x32x8xf32> to vector<32x8xf32>
    %cst_91 = arith.constant dense<0.000000e+00> : vector<20x8xf32>
    %157 = tpu.matmul %73, %156, %cst_91 {dimension_numbers = #tpu.dot_dimension_numbers<[1], [0], [0], [1], [0, 0, 1, 1], [], []>} : vector<20x32xf32>, vector<32x8xf32>, vector<20x8xf32> -> vector<20x8xf32>
    %c2_92 = arith.constant 2 : index
    %c0_93 = arith.constant 0 : index
    %c0_94 = arith.constant 0 : index
    %158 = vector.load %arg10[%c2_92, %c0_93, %c0_94] : memref<8x1x8xf32, #tpu.memory_space<vmem>>, vector<1x1x8xf32>
    %159 = vector.shape_cast %158 : vector<1x1x8xf32> to vector<1x8xf32>
    %160 = vector.broadcast %159 : vector<1x8xf32> to vector<20x8xf32>
    %161 = arith.addf %157, %160 : vector<20x8xf32>
    %c2_95 = arith.constant 2 : index
    %c0_96 = arith.constant 0 : index
    %c0_97 = arith.constant 0 : index
    %162 = vector.load %arg8[%c2_95, %c0_96, %c0_97] : memref<8x32x8xf32, #tpu.memory_space<vmem>>, vector<1x32x8xf32>
    %163 = vector.shape_cast %162 : vector<1x32x8xf32> to vector<32x8xf32>
    %cst_98 = arith.constant dense<0.000000e+00> : vector<20x8xf32>
    %164 = tpu.matmul %73, %163, %cst_98 {dimension_numbers = #tpu.dot_dimension_numbers<[1], [0], [0], [1], [0, 0, 1, 1], [], []>} : vector<20x32xf32>, vector<32x8xf32>, vector<20x8xf32> -> vector<20x8xf32>
    %c2_99 = arith.constant 2 : index
    %c0_100 = arith.constant 0 : index
    %c0_101 = arith.constant 0 : index
    %165 = vector.load %arg11[%c2_99, %c0_100, %c0_101] : memref<8x1x8xf32, #tpu.memory_space<vmem>>, vector<1x1x8xf32>
    %166 = vector.shape_cast %165 : vector<1x1x8xf32> to vector<1x8xf32>
    %167 = vector.broadcast %166 : vector<1x8xf32> to vector<20x8xf32>
    %168 = arith.addf %164, %167 : vector<20x8xf32>
    %c2_102 = arith.constant 2 : index
    %c0_103 = arith.constant 0 : index
    %c0_104 = arith.constant 0 : index
    %169 = vector.load %arg9[%c2_102, %c0_103, %c0_104] : memref<8x32x8xf32, #tpu.memory_space<vmem>>, vector<1x32x8xf32>
    %170 = vector.shape_cast %169 : vector<1x32x8xf32> to vector<32x8xf32>
    %cst_105 = arith.constant dense<0.000000e+00> : vector<20x8xf32>
    %171 = tpu.matmul %73, %170, %cst_105 {dimension_numbers = #tpu.dot_dimension_numbers<[1], [0], [0], [1], [0, 0, 1, 1], [], []>} : vector<20x32xf32>, vector<32x8xf32>, vector<20x8xf32> -> vector<20x8xf32>
    %c2_106 = arith.constant 2 : index
    %c0_107 = arith.constant 0 : index
    %c0_108 = arith.constant 0 : index
    %172 = vector.load %arg12[%c2_106, %c0_107, %c0_108] : memref<8x1x8xf32, #tpu.memory_space<vmem>>, vector<1x1x8xf32>
    %173 = vector.shape_cast %172 : vector<1x1x8xf32> to vector<1x8xf32>
    %174 = vector.broadcast %173 : vector<1x8xf32> to vector<20x8xf32>
    %175 = arith.addf %171, %174 : vector<20x8xf32>
    %cst_109 = arith.constant dense<0.000000e+00> : vector<20x20xf32>
    %176 = tpu.matmul %161, %168, %cst_109 {dimension_numbers = #tpu.dot_dimension_numbers<[1], [1], [0], [0], [0, 0, 1, 0], [], []>} : vector<20x8xf32>, vector<20x8xf32>, vector<20x20xf32> -> vector<20x20xf32>
    %cst_110 = arith.constant 0.353553385 : f32
    %177 = vector.broadcast %cst_110 : f32 to vector<20x20xf32>
    %178 = arith.mulf %176, %177 : vector<20x20xf32>
    %179 = arith.addf %178, %47 : vector<20x20xf32>
    %cst_111 = arith.constant dense<0xFF800000> : vector<20xf32>
    %180 = vector.multi_reduction <maximumf>, %179, %cst_111 [1] : vector<20x20xf32> to vector<20xf32>
    %181 = vector.shape_cast %180 : vector<20xf32> to vector<20x1xf32>
    %182 = vector.broadcast %181 : vector<20x1xf32> to vector<20x20xf32>
    %183 = arith.subf %179, %182 : vector<20x20xf32>
    %184 = math.exp %183 : vector<20x20xf32>
    %cst_112 = arith.constant dense<0.000000e+00> : vector<20xf32>
    %185 = vector.multi_reduction <add>, %184, %cst_112 [1] : vector<20x20xf32> to vector<20xf32>
    %186 = vector.shape_cast %185 : vector<20xf32> to vector<20x1xf32>
    %187 = vector.broadcast %186 : vector<20x1xf32> to vector<20x20xf32>
    %188 = arith.divf %184, %187 : vector<20x20xf32>
    %cst_113 = arith.constant dense<0.000000e+00> : vector<20x8xf32>
    %189 = tpu.matmul %188, %175, %cst_113 {dimension_numbers = #tpu.dot_dimension_numbers<[1], [0], [0], [1], [0, 0, 1, 1], [], []>} : vector<20x20xf32>, vector<20x8xf32>, vector<20x8xf32> -> vector<20x8xf32>
    %c2_114 = arith.constant 2 : index
    %c0_115 = arith.constant 0 : index
    %c0_116 = arith.constant 0 : index
    %190 = vector.load %arg13[%c2_114, %c0_115, %c0_116] : memref<8x8x32xf32, #tpu.memory_space<vmem>>, vector<1x8x32xf32>
    %191 = vector.shape_cast %190 : vector<1x8x32xf32> to vector<8x32xf32>
    %cst_117 = arith.constant dense<0.000000e+00> : vector<20x32xf32>
    %192 = tpu.matmul %189, %191, %cst_117 {dimension_numbers = #tpu.dot_dimension_numbers<[1], [0], [0], [1], [0, 0, 1, 1], [], []>} : vector<20x8xf32>, vector<8x32xf32>, vector<20x32xf32> -> vector<20x32xf32>
    %193 = arith.addf %154, %192 : vector<20x32xf32>
    %c3 = arith.constant 3 : index
    %c0_118 = arith.constant 0 : index
    %c0_119 = arith.constant 0 : index
    %194 = vector.load %arg7[%c3, %c0_118, %c0_119] : memref<8x32x8xf32, #tpu.memory_space<vmem>>, vector<1x32x8xf32>
    %195 = vector.shape_cast %194 : vector<1x32x8xf32> to vector<32x8xf32>
    %cst_120 = arith.constant dense<0.000000e+00> : vector<20x8xf32>
    %196 = tpu.matmul %73, %195, %cst_120 {dimension_numbers = #tpu.dot_dimension_numbers<[1], [0], [0], [1], [0, 0, 1, 1], [], []>} : vector<20x32xf32>, vector<32x8xf32>, vector<20x8xf32> -> vector<20x8xf32>
    %c3_121 = arith.constant 3 : index
    %c0_122 = arith.constant 0 : index
    %c0_123 = arith.constant 0 : index
    %197 = vector.load %arg10[%c3_121, %c0_122, %c0_123] : memref<8x1x8xf32, #tpu.memory_space<vmem>>, vector<1x1x8xf32>
    %198 = vector.shape_cast %197 : vector<1x1x8xf32> to vector<1x8xf32>
    %199 = vector.broadcast %198 : vector<1x8xf32> to vector<20x8xf32>
    %200 = arith.addf %196, %199 : vector<20x8xf32>
    %c3_124 = arith.constant 3 : index
    %c0_125 = arith.constant 0 : index
    %c0_126 = arith.constant 0 : index
    %201 = vector.load %arg8[%c3_124, %c0_125, %c0_126] : memref<8x32x8xf32, #tpu.memory_space<vmem>>, vector<1x32x8xf32>
    %202 = vector.shape_cast %201 : vector<1x32x8xf32> to vector<32x8xf32>
    %cst_127 = arith.constant dense<0.000000e+00> : vector<20x8xf32>
    %203 = tpu.matmul %73, %202, %cst_127 {dimension_numbers = #tpu.dot_dimension_numbers<[1], [0], [0], [1], [0, 0, 1, 1], [], []>} : vector<20x32xf32>, vector<32x8xf32>, vector<20x8xf32> -> vector<20x8xf32>
    %c3_128 = arith.constant 3 : index
    %c0_129 = arith.constant 0 : index
    %c0_130 = arith.constant 0 : index
    %204 = vector.load %arg11[%c3_128, %c0_129, %c0_130] : memref<8x1x8xf32, #tpu.memory_space<vmem>>, vector<1x1x8xf32>
    %205 = vector.shape_cast %204 : vector<1x1x8xf32> to vector<1x8xf32>
    %206 = vector.broadcast %205 : vector<1x8xf32> to vector<20x8xf32>
    %207 = arith.addf %203, %206 : vector<20x8xf32>
    %c3_131 = arith.constant 3 : index
    %c0_132 = arith.constant 0 : index
    %c0_133 = arith.constant 0 : index
    %208 = vector.load %arg9[%c3_131, %c0_132, %c0_133] : memref<8x32x8xf32, #tpu.memory_space<vmem>>, vector<1x32x8xf32>
    %209 = vector.shape_cast %208 : vector<1x32x8xf32> to vector<32x8xf32>
    %cst_134 = arith.constant dense<0.000000e+00> : vector<20x8xf32>
    %210 = tpu.matmul %73, %209, %cst_134 {dimension_numbers = #tpu.dot_dimension_numbers<[1], [0], [0], [1], [0, 0, 1, 1], [], []>} : vector<20x32xf32>, vector<32x8xf32>, vector<20x8xf32> -> vector<20x8xf32>
    %c3_135 = arith.constant 3 : index
    %c0_136 = arith.constant 0 : index
    %c0_137 = arith.constant 0 : index
    %211 = vector.load %arg12[%c3_135, %c0_136, %c0_137] : memref<8x1x8xf32, #tpu.memory_space<vmem>>, vector<1x1x8xf32>
    %212 = vector.shape_cast %211 : vector<1x1x8xf32> to vector<1x8xf32>
    %213 = vector.broadcast %212 : vector<1x8xf32> to vector<20x8xf32>
    %214 = arith.addf %210, %213 : vector<20x8xf32>
    %cst_138 = arith.constant dense<0.000000e+00> : vector<20x20xf32>
    %215 = tpu.matmul %200, %207, %cst_138 {dimension_numbers = #tpu.dot_dimension_numbers<[1], [1], [0], [0], [0, 0, 1, 0], [], []>} : vector<20x8xf32>, vector<20x8xf32>, vector<20x20xf32> -> vector<20x20xf32>
    %cst_139 = arith.constant 0.353553385 : f32
    %216 = vector.broadcast %cst_139 : f32 to vector<20x20xf32>
    %217 = arith.mulf %215, %216 : vector<20x20xf32>
    %218 = arith.addf %217, %47 : vector<20x20xf32>
    %cst_140 = arith.constant dense<0xFF800000> : vector<20xf32>
    %219 = vector.multi_reduction <maximumf>, %218, %cst_140 [1] : vector<20x20xf32> to vector<20xf32>
    %220 = vector.shape_cast %219 : vector<20xf32> to vector<20x1xf32>
    %221 = vector.broadcast %220 : vector<20x1xf32> to vector<20x20xf32>
    %222 = arith.subf %218, %221 : vector<20x20xf32>
    %223 = math.exp %222 : vector<20x20xf32>
    %cst_141 = arith.constant dense<0.000000e+00> : vector<20xf32>
    %224 = vector.multi_reduction <add>, %223, %cst_141 [1] : vector<20x20xf32> to vector<20xf32>
    %225 = vector.shape_cast %224 : vector<20xf32> to vector<20x1xf32>
    %226 = vector.broadcast %225 : vector<20x1xf32> to vector<20x20xf32>
    %227 = arith.divf %223, %226 : vector<20x20xf32>
    %cst_142 = arith.constant dense<0.000000e+00> : vector<20x8xf32>
    %228 = tpu.matmul %227, %214, %cst_142 {dimension_numbers = #tpu.dot_dimension_numbers<[1], [0], [0], [1], [0, 0, 1, 1], [], []>} : vector<20x20xf32>, vector<20x8xf32>, vector<20x8xf32> -> vector<20x8xf32>
    %c3_143 = arith.constant 3 : index
    %c0_144 = arith.constant 0 : index
    %c0_145 = arith.constant 0 : index
    %229 = vector.load %arg13[%c3_143, %c0_144, %c0_145] : memref<8x8x32xf32, #tpu.memory_space<vmem>>, vector<1x8x32xf32>
    %230 = vector.shape_cast %229 : vector<1x8x32xf32> to vector<8x32xf32>
    %cst_146 = arith.constant dense<0.000000e+00> : vector<20x32xf32>
    %231 = tpu.matmul %228, %230, %cst_146 {dimension_numbers = #tpu.dot_dimension_numbers<[1], [0], [0], [1], [0, 0, 1, 1], [], []>} : vector<20x8xf32>, vector<8x32xf32>, vector<20x32xf32> -> vector<20x32xf32>
    %232 = arith.addf %193, %231 : vector<20x32xf32>
    %233 = arith.addf %9, %232 : vector<20x32xf32>
    %c0_147 = arith.constant 0 : index
    %c0_148 = arith.constant 0 : index
    %c0_149 = arith.constant 0 : index
    %234 = vector.load %arg15[%c0_147, %c0_148, %c0_149] : memref<2x1x32xf32, #tpu.memory_space<vmem>>, vector<1x1x32xf32>
    %235 = vector.shape_cast %234 : vector<1x1x32xf32> to vector<1x32xf32>
    %c0_150 = arith.constant 0 : index
    %c0_151 = arith.constant 0 : index
    %c0_152 = arith.constant 0 : index
    %236 = vector.load %arg16[%c0_150, %c0_151, %c0_152] : memref<2x1x32xf32, #tpu.memory_space<vmem>>, vector<1x1x32xf32>
    %237 = vector.shape_cast %236 : vector<1x1x32xf32> to vector<1x32xf32>
    %cst_153 = arith.constant dense<0.000000e+00> : vector<20xf32>
    %238 = vector.multi_reduction <add>, %233, %cst_153 [1] : vector<20x32xf32> to vector<20xf32>
    %239 = vector.shape_cast %238 : vector<20xf32> to vector<20x1xf32>
    %cst_154 = arith.constant 3.200000e+01 : f32
    %240 = vector.broadcast %cst_154 : f32 to vector<20x1xf32>
    %241 = arith.divf %239, %240 : vector<20x1xf32>
    %242 = vector.broadcast %241 : vector<20x1xf32> to vector<20x32xf32>
    %243 = arith.subf %233, %242 : vector<20x32xf32>
    %244 = arith.mulf %243, %243 : vector<20x32xf32>
    %cst_155 = arith.constant dense<0.000000e+00> : vector<20xf32>
    %245 = vector.multi_reduction <add>, %244, %cst_155 [1] : vector<20x32xf32> to vector<20xf32>
    %246 = vector.shape_cast %245 : vector<20xf32> to vector<20x1xf32>
    %cst_156 = arith.constant 3.200000e+01 : f32
    %247 = vector.broadcast %cst_156 : f32 to vector<20x1xf32>
    %248 = arith.divf %246, %247 : vector<20x1xf32>
    %249 = vector.broadcast %241 : vector<20x1xf32> to vector<20x32xf32>
    %250 = arith.subf %233, %249 : vector<20x32xf32>
    %cst_157 = arith.constant 9.99999997E-7 : f32
    %251 = vector.broadcast %cst_157 : f32 to vector<20x1xf32>
    %252 = arith.addf %248, %251 : vector<20x1xf32>
    %253 = math.rsqrt %252 : vector<20x1xf32>
    %254 = vector.broadcast %253 : vector<20x1xf32> to vector<20x32xf32>
    %255 = arith.mulf %250, %254 : vector<20x32xf32>
    %256 = vector.broadcast %235 : vector<1x32xf32> to vector<20x32xf32>
    %257 = arith.mulf %255, %256 : vector<20x32xf32>
    %258 = vector.broadcast %237 : vector<1x32xf32> to vector<20x32xf32>
    %259 = arith.addf %257, %258 : vector<20x32xf32>
    %c0_158 = arith.constant 0 : index
    %c0_159 = arith.constant 0 : index
    %c0_160 = arith.constant 0 : index
    %260 = vector.load %arg17[%c0_158, %c0_159, %c0_160] : memref<2x32x128xf32, #tpu.memory_space<vmem>>, vector<1x32x128xf32>
    %261 = vector.shape_cast %260 : vector<1x32x128xf32> to vector<32x128xf32>
    %cst_161 = arith.constant dense<0.000000e+00> : vector<20x128xf32>
    %262 = tpu.matmul %259, %261, %cst_161 {dimension_numbers = #tpu.dot_dimension_numbers<[1], [0], [0], [1], [0, 0, 1, 1], [], []>} : vector<20x32xf32>, vector<32x128xf32>, vector<20x128xf32> -> vector<20x128xf32>
    %c0_162 = arith.constant 0 : index
    %c0_163 = arith.constant 0 : index
    %c0_164 = arith.constant 0 : index
    %263 = vector.load %arg18[%c0_162, %c0_163, %c0_164] : memref<2x1x128xf32, #tpu.memory_space<vmem>>, vector<1x1x128xf32>
    %264 = vector.shape_cast %263 : vector<1x1x128xf32> to vector<1x128xf32>
    %265 = vector.broadcast %264 : vector<1x128xf32> to vector<20x128xf32>
    %266 = arith.addf %262, %265 : vector<20x128xf32>
    %cst_165 = arith.constant 5.000000e-01 : f32
    %267 = vector.broadcast %cst_165 : f32 to vector<20x128xf32>
    %268 = arith.mulf %267, %266 : vector<20x128xf32>
    %cst_166 = arith.constant 0.707106769 : f32
    %269 = vector.broadcast %cst_166 : f32 to vector<20x128xf32>
    %270 = arith.mulf %266, %269 : vector<20x128xf32>
    %271 = math.absf %270 : vector<20x128xf32>
    %cst_167 = arith.constant 0.327591091 : f32
    %272 = vector.broadcast %cst_167 : f32 to vector<20x128xf32>
    %273 = arith.mulf %272, %271 : vector<20x128xf32>
    %cst_168 = arith.constant 1.000000e+00 : f32
    %274 = vector.broadcast %cst_168 : f32 to vector<20x128xf32>
    %275 = arith.addf %274, %273 : vector<20x128xf32>
    %cst_169 = arith.constant 1.000000e+00 : f32
    %276 = vector.broadcast %cst_169 : f32 to vector<20x128xf32>
    %277 = arith.divf %276, %275 : vector<20x128xf32>
    %cst_170 = arith.constant 1.06140542 : f32
    %278 = vector.broadcast %cst_170 : f32 to vector<20x128xf32>
    %279 = arith.mulf %278, %277 : vector<20x128xf32>
    %cst_171 = arith.constant -1.45315206 : f32
    %280 = vector.broadcast %cst_171 : f32 to vector<20x128xf32>
    %281 = arith.addf %279, %280 : vector<20x128xf32>
    %282 = arith.mulf %281, %277 : vector<20x128xf32>
    %cst_172 = arith.constant 1.42141378 : f32
    %283 = vector.broadcast %cst_172 : f32 to vector<20x128xf32>
    %284 = arith.addf %282, %283 : vector<20x128xf32>
    %285 = arith.mulf %284, %277 : vector<20x128xf32>
    %cst_173 = arith.constant -0.284496725 : f32
    %286 = vector.broadcast %cst_173 : f32 to vector<20x128xf32>
    %287 = arith.addf %285, %286 : vector<20x128xf32>
    %288 = arith.mulf %287, %277 : vector<20x128xf32>
    %cst_174 = arith.constant 0.254829586 : f32
    %289 = vector.broadcast %cst_174 : f32 to vector<20x128xf32>
    %290 = arith.addf %288, %289 : vector<20x128xf32>
    %291 = arith.mulf %290, %277 : vector<20x128xf32>
    %292 = arith.mulf %271, %271 : vector<20x128xf32>
    %cst_175 = arith.constant 0.000000e+00 : f32
    %293 = vector.broadcast %cst_175 : f32 to vector<20x128xf32>
    %294 = arith.subf %293, %292 : vector<20x128xf32>
    %295 = math.exp %294 : vector<20x128xf32>
    %296 = arith.mulf %291, %295 : vector<20x128xf32>
    %cst_176 = arith.constant 1.000000e+00 : f32
    %297 = vector.broadcast %cst_176 : f32 to vector<20x128xf32>
    %298 = arith.subf %297, %296 : vector<20x128xf32>
    %cst_177 = arith.constant 0.000000e+00 : f32
    %299 = vector.broadcast %cst_177 : f32 to vector<20x128xf32>
    %300 = arith.cmpf olt, %270, %299 : vector<20x128xf32>
    %cst_178 = arith.constant 0.000000e+00 : f32
    %301 = vector.broadcast %cst_178 : f32 to vector<20x128xf32>
    %302 = arith.subf %301, %298 : vector<20x128xf32>
    %303 = arith.select %300, %302, %298 : vector<20x128xi1>, vector<20x128xf32>
    %cst_179 = arith.constant 1.000000e+00 : f32
    %304 = vector.broadcast %cst_179 : f32 to vector<20x128xf32>
    %305 = arith.addf %304, %303 : vector<20x128xf32>
    %306 = arith.mulf %268, %305 : vector<20x128xf32>
    %c0_180 = arith.constant 0 : index
    %c0_181 = arith.constant 0 : index
    %c0_182 = arith.constant 0 : index
    %307 = vector.load %arg19[%c0_180, %c0_181, %c0_182] : memref<2x128x32xf32, #tpu.memory_space<vmem>>, vector<1x128x32xf32>
    %308 = vector.shape_cast %307 : vector<1x128x32xf32> to vector<128x32xf32>
    %cst_183 = arith.constant dense<0.000000e+00> : vector<20x32xf32>
    %309 = tpu.matmul %306, %308, %cst_183 {dimension_numbers = #tpu.dot_dimension_numbers<[1], [0], [0], [1], [0, 0, 1, 1], [], []>} : vector<20x128xf32>, vector<128x32xf32>, vector<20x32xf32> -> vector<20x32xf32>
    %c0_184 = arith.constant 0 : index
    %c0_185 = arith.constant 0 : index
    %c0_186 = arith.constant 0 : index
    %310 = vector.load %arg20[%c0_184, %c0_185, %c0_186] : memref<2x1x32xf32, #tpu.memory_space<vmem>>, vector<1x1x32xf32>
    %311 = vector.shape_cast %310 : vector<1x1x32xf32> to vector<1x32xf32>
    %312 = vector.broadcast %311 : vector<1x32xf32> to vector<20x32xf32>
    %313 = arith.addf %309, %312 : vector<20x32xf32>
    %314 = arith.addf %233, %313 : vector<20x32xf32>
    %c1_187 = arith.constant 1 : index
    %c0_188 = arith.constant 0 : index
    %c0_189 = arith.constant 0 : index
    %315 = vector.load %arg5[%c1_187, %c0_188, %c0_189] : memref<2x1x32xf32, #tpu.memory_space<vmem>>, vector<1x1x32xf32>
    %316 = vector.shape_cast %315 : vector<1x1x32xf32> to vector<1x32xf32>
    %c1_190 = arith.constant 1 : index
    %c0_191 = arith.constant 0 : index
    %c0_192 = arith.constant 0 : index
    %317 = vector.load %arg6[%c1_190, %c0_191, %c0_192] : memref<2x1x32xf32, #tpu.memory_space<vmem>>, vector<1x1x32xf32>
    %318 = vector.shape_cast %317 : vector<1x1x32xf32> to vector<1x32xf32>
    %cst_193 = arith.constant dense<0.000000e+00> : vector<20xf32>
    %319 = vector.multi_reduction <add>, %314, %cst_193 [1] : vector<20x32xf32> to vector<20xf32>
    %320 = vector.shape_cast %319 : vector<20xf32> to vector<20x1xf32>
    %cst_194 = arith.constant 3.200000e+01 : f32
    %321 = vector.broadcast %cst_194 : f32 to vector<20x1xf32>
    %322 = arith.divf %320, %321 : vector<20x1xf32>
    %323 = vector.broadcast %322 : vector<20x1xf32> to vector<20x32xf32>
    %324 = arith.subf %314, %323 : vector<20x32xf32>
    %325 = arith.mulf %324, %324 : vector<20x32xf32>
    %cst_195 = arith.constant dense<0.000000e+00> : vector<20xf32>
    %326 = vector.multi_reduction <add>, %325, %cst_195 [1] : vector<20x32xf32> to vector<20xf32>
    %327 = vector.shape_cast %326 : vector<20xf32> to vector<20x1xf32>
    %cst_196 = arith.constant 3.200000e+01 : f32
    %328 = vector.broadcast %cst_196 : f32 to vector<20x1xf32>
    %329 = arith.divf %327, %328 : vector<20x1xf32>
    %330 = vector.broadcast %322 : vector<20x1xf32> to vector<20x32xf32>
    %331 = arith.subf %314, %330 : vector<20x32xf32>
    %cst_197 = arith.constant 9.99999997E-7 : f32
    %332 = vector.broadcast %cst_197 : f32 to vector<20x1xf32>
    %333 = arith.addf %329, %332 : vector<20x1xf32>
    %334 = math.rsqrt %333 : vector<20x1xf32>
    %335 = vector.broadcast %334 : vector<20x1xf32> to vector<20x32xf32>
    %336 = arith.mulf %331, %335 : vector<20x32xf32>
    %337 = vector.broadcast %316 : vector<1x32xf32> to vector<20x32xf32>
    %338 = arith.mulf %336, %337 : vector<20x32xf32>
    %339 = vector.broadcast %318 : vector<1x32xf32> to vector<20x32xf32>
    %340 = arith.addf %338, %339 : vector<20x32xf32>
    %c1_198 = arith.constant 1 : index
    %c0_199 = arith.constant 0 : index
    %c0_200 = arith.constant 0 : index
    %341 = vector.load %arg14[%c1_198, %c0_199, %c0_200] : memref<2x1x32xf32, #tpu.memory_space<vmem>>, vector<1x1x32xf32>
    %342 = vector.shape_cast %341 : vector<1x1x32xf32> to vector<1x32xf32>
    %c4 = arith.constant 4 : index
    %c0_201 = arith.constant 0 : index
    %c0_202 = arith.constant 0 : index
    %343 = vector.load %arg7[%c4, %c0_201, %c0_202] : memref<8x32x8xf32, #tpu.memory_space<vmem>>, vector<1x32x8xf32>
    %344 = vector.shape_cast %343 : vector<1x32x8xf32> to vector<32x8xf32>
    %cst_203 = arith.constant dense<0.000000e+00> : vector<20x8xf32>
    %345 = tpu.matmul %340, %344, %cst_203 {dimension_numbers = #tpu.dot_dimension_numbers<[1], [0], [0], [1], [0, 0, 1, 1], [], []>} : vector<20x32xf32>, vector<32x8xf32>, vector<20x8xf32> -> vector<20x8xf32>
    %c4_204 = arith.constant 4 : index
    %c0_205 = arith.constant 0 : index
    %c0_206 = arith.constant 0 : index
    %346 = vector.load %arg10[%c4_204, %c0_205, %c0_206] : memref<8x1x8xf32, #tpu.memory_space<vmem>>, vector<1x1x8xf32>
    %347 = vector.shape_cast %346 : vector<1x1x8xf32> to vector<1x8xf32>
    %348 = vector.broadcast %347 : vector<1x8xf32> to vector<20x8xf32>
    %349 = arith.addf %345, %348 : vector<20x8xf32>
    %c4_207 = arith.constant 4 : index
    %c0_208 = arith.constant 0 : index
    %c0_209 = arith.constant 0 : index
    %350 = vector.load %arg8[%c4_207, %c0_208, %c0_209] : memref<8x32x8xf32, #tpu.memory_space<vmem>>, vector<1x32x8xf32>
    %351 = vector.shape_cast %350 : vector<1x32x8xf32> to vector<32x8xf32>
    %cst_210 = arith.constant dense<0.000000e+00> : vector<20x8xf32>
    %352 = tpu.matmul %340, %351, %cst_210 {dimension_numbers = #tpu.dot_dimension_numbers<[1], [0], [0], [1], [0, 0, 1, 1], [], []>} : vector<20x32xf32>, vector<32x8xf32>, vector<20x8xf32> -> vector<20x8xf32>
    %c4_211 = arith.constant 4 : index
    %c0_212 = arith.constant 0 : index
    %c0_213 = arith.constant 0 : index
    %353 = vector.load %arg11[%c4_211, %c0_212, %c0_213] : memref<8x1x8xf32, #tpu.memory_space<vmem>>, vector<1x1x8xf32>
    %354 = vector.shape_cast %353 : vector<1x1x8xf32> to vector<1x8xf32>
    %355 = vector.broadcast %354 : vector<1x8xf32> to vector<20x8xf32>
    %356 = arith.addf %352, %355 : vector<20x8xf32>
    %c4_214 = arith.constant 4 : index
    %c0_215 = arith.constant 0 : index
    %c0_216 = arith.constant 0 : index
    %357 = vector.load %arg9[%c4_214, %c0_215, %c0_216] : memref<8x32x8xf32, #tpu.memory_space<vmem>>, vector<1x32x8xf32>
    %358 = vector.shape_cast %357 : vector<1x32x8xf32> to vector<32x8xf32>
    %cst_217 = arith.constant dense<0.000000e+00> : vector<20x8xf32>
    %359 = tpu.matmul %340, %358, %cst_217 {dimension_numbers = #tpu.dot_dimension_numbers<[1], [0], [0], [1], [0, 0, 1, 1], [], []>} : vector<20x32xf32>, vector<32x8xf32>, vector<20x8xf32> -> vector<20x8xf32>
    %c4_218 = arith.constant 4 : index
    %c0_219 = arith.constant 0 : index
    %c0_220 = arith.constant 0 : index
    %360 = vector.load %arg12[%c4_218, %c0_219, %c0_220] : memref<8x1x8xf32, #tpu.memory_space<vmem>>, vector<1x1x8xf32>
    %361 = vector.shape_cast %360 : vector<1x1x8xf32> to vector<1x8xf32>
    %362 = vector.broadcast %361 : vector<1x8xf32> to vector<20x8xf32>
    %363 = arith.addf %359, %362 : vector<20x8xf32>
    %cst_221 = arith.constant dense<0.000000e+00> : vector<20x20xf32>
    %364 = tpu.matmul %349, %356, %cst_221 {dimension_numbers = #tpu.dot_dimension_numbers<[1], [1], [0], [0], [0, 0, 1, 0], [], []>} : vector<20x8xf32>, vector<20x8xf32>, vector<20x20xf32> -> vector<20x20xf32>
    %cst_222 = arith.constant 0.353553385 : f32
    %365 = vector.broadcast %cst_222 : f32 to vector<20x20xf32>
    %366 = arith.mulf %364, %365 : vector<20x20xf32>
    %367 = arith.addf %366, %47 : vector<20x20xf32>
    %cst_223 = arith.constant dense<0xFF800000> : vector<20xf32>
    %368 = vector.multi_reduction <maximumf>, %367, %cst_223 [1] : vector<20x20xf32> to vector<20xf32>
    %369 = vector.shape_cast %368 : vector<20xf32> to vector<20x1xf32>
    %370 = vector.broadcast %369 : vector<20x1xf32> to vector<20x20xf32>
    %371 = arith.subf %367, %370 : vector<20x20xf32>
    %372 = math.exp %371 : vector<20x20xf32>
    %cst_224 = arith.constant dense<0.000000e+00> : vector<20xf32>
    %373 = vector.multi_reduction <add>, %372, %cst_224 [1] : vector<20x20xf32> to vector<20xf32>
    %374 = vector.shape_cast %373 : vector<20xf32> to vector<20x1xf32>
    %375 = vector.broadcast %374 : vector<20x1xf32> to vector<20x20xf32>
    %376 = arith.divf %372, %375 : vector<20x20xf32>
    %cst_225 = arith.constant dense<0.000000e+00> : vector<20x8xf32>
    %377 = tpu.matmul %376, %363, %cst_225 {dimension_numbers = #tpu.dot_dimension_numbers<[1], [0], [0], [1], [0, 0, 1, 1], [], []>} : vector<20x20xf32>, vector<20x8xf32>, vector<20x8xf32> -> vector<20x8xf32>
    %c4_226 = arith.constant 4 : index
    %c0_227 = arith.constant 0 : index
    %c0_228 = arith.constant 0 : index
    %378 = vector.load %arg13[%c4_226, %c0_227, %c0_228] : memref<8x8x32xf32, #tpu.memory_space<vmem>>, vector<1x8x32xf32>
    %379 = vector.shape_cast %378 : vector<1x8x32xf32> to vector<8x32xf32>
    %cst_229 = arith.constant dense<0.000000e+00> : vector<20x32xf32>
    %380 = tpu.matmul %377, %379, %cst_229 {dimension_numbers = #tpu.dot_dimension_numbers<[1], [0], [0], [1], [0, 0, 1, 1], [], []>} : vector<20x8xf32>, vector<8x32xf32>, vector<20x32xf32> -> vector<20x32xf32>
    %381 = vector.broadcast %342 : vector<1x32xf32> to vector<20x32xf32>
    %382 = arith.addf %381, %380 : vector<20x32xf32>
    %c5 = arith.constant 5 : index
    %c0_230 = arith.constant 0 : index
    %c0_231 = arith.constant 0 : index
    %383 = vector.load %arg7[%c5, %c0_230, %c0_231] : memref<8x32x8xf32, #tpu.memory_space<vmem>>, vector<1x32x8xf32>
    %384 = vector.shape_cast %383 : vector<1x32x8xf32> to vector<32x8xf32>
    %cst_232 = arith.constant dense<0.000000e+00> : vector<20x8xf32>
    %385 = tpu.matmul %340, %384, %cst_232 {dimension_numbers = #tpu.dot_dimension_numbers<[1], [0], [0], [1], [0, 0, 1, 1], [], []>} : vector<20x32xf32>, vector<32x8xf32>, vector<20x8xf32> -> vector<20x8xf32>
    %c5_233 = arith.constant 5 : index
    %c0_234 = arith.constant 0 : index
    %c0_235 = arith.constant 0 : index
    %386 = vector.load %arg10[%c5_233, %c0_234, %c0_235] : memref<8x1x8xf32, #tpu.memory_space<vmem>>, vector<1x1x8xf32>
    %387 = vector.shape_cast %386 : vector<1x1x8xf32> to vector<1x8xf32>
    %388 = vector.broadcast %387 : vector<1x8xf32> to vector<20x8xf32>
    %389 = arith.addf %385, %388 : vector<20x8xf32>
    %c5_236 = arith.constant 5 : index
    %c0_237 = arith.constant 0 : index
    %c0_238 = arith.constant 0 : index
    %390 = vector.load %arg8[%c5_236, %c0_237, %c0_238] : memref<8x32x8xf32, #tpu.memory_space<vmem>>, vector<1x32x8xf32>
    %391 = vector.shape_cast %390 : vector<1x32x8xf32> to vector<32x8xf32>
    %cst_239 = arith.constant dense<0.000000e+00> : vector<20x8xf32>
    %392 = tpu.matmul %340, %391, %cst_239 {dimension_numbers = #tpu.dot_dimension_numbers<[1], [0], [0], [1], [0, 0, 1, 1], [], []>} : vector<20x32xf32>, vector<32x8xf32>, vector<20x8xf32> -> vector<20x8xf32>
    %c5_240 = arith.constant 5 : index
    %c0_241 = arith.constant 0 : index
    %c0_242 = arith.constant 0 : index
    %393 = vector.load %arg11[%c5_240, %c0_241, %c0_242] : memref<8x1x8xf32, #tpu.memory_space<vmem>>, vector<1x1x8xf32>
    %394 = vector.shape_cast %393 : vector<1x1x8xf32> to vector<1x8xf32>
    %395 = vector.broadcast %394 : vector<1x8xf32> to vector<20x8xf32>
    %396 = arith.addf %392, %395 : vector<20x8xf32>
    %c5_243 = arith.constant 5 : index
    %c0_244 = arith.constant 0 : index
    %c0_245 = arith.constant 0 : index
    %397 = vector.load %arg9[%c5_243, %c0_244, %c0_245] : memref<8x32x8xf32, #tpu.memory_space<vmem>>, vector<1x32x8xf32>
    %398 = vector.shape_cast %397 : vector<1x32x8xf32> to vector<32x8xf32>
    %cst_246 = arith.constant dense<0.000000e+00> : vector<20x8xf32>
    %399 = tpu.matmul %340, %398, %cst_246 {dimension_numbers = #tpu.dot_dimension_numbers<[1], [0], [0], [1], [0, 0, 1, 1], [], []>} : vector<20x32xf32>, vector<32x8xf32>, vector<20x8xf32> -> vector<20x8xf32>
    %c5_247 = arith.constant 5 : index
    %c0_248 = arith.constant 0 : index
    %c0_249 = arith.constant 0 : index
    %400 = vector.load %arg12[%c5_247, %c0_248, %c0_249] : memref<8x1x8xf32, #tpu.memory_space<vmem>>, vector<1x1x8xf32>
    %401 = vector.shape_cast %400 : vector<1x1x8xf32> to vector<1x8xf32>
    %402 = vector.broadcast %401 : vector<1x8xf32> to vector<20x8xf32>
    %403 = arith.addf %399, %402 : vector<20x8xf32>
    %cst_250 = arith.constant dense<0.000000e+00> : vector<20x20xf32>
    %404 = tpu.matmul %389, %396, %cst_250 {dimension_numbers = #tpu.dot_dimension_numbers<[1], [1], [0], [0], [0, 0, 1, 0], [], []>} : vector<20x8xf32>, vector<20x8xf32>, vector<20x20xf32> -> vector<20x20xf32>
    %cst_251 = arith.constant 0.353553385 : f32
    %405 = vector.broadcast %cst_251 : f32 to vector<20x20xf32>
    %406 = arith.mulf %404, %405 : vector<20x20xf32>
    %407 = arith.addf %406, %47 : vector<20x20xf32>
    %cst_252 = arith.constant dense<0xFF800000> : vector<20xf32>
    %408 = vector.multi_reduction <maximumf>, %407, %cst_252 [1] : vector<20x20xf32> to vector<20xf32>
    %409 = vector.shape_cast %408 : vector<20xf32> to vector<20x1xf32>
    %410 = vector.broadcast %409 : vector<20x1xf32> to vector<20x20xf32>
    %411 = arith.subf %407, %410 : vector<20x20xf32>
    %412 = math.exp %411 : vector<20x20xf32>
    %cst_253 = arith.constant dense<0.000000e+00> : vector<20xf32>
    %413 = vector.multi_reduction <add>, %412, %cst_253 [1] : vector<20x20xf32> to vector<20xf32>
    %414 = vector.shape_cast %413 : vector<20xf32> to vector<20x1xf32>
    %415 = vector.broadcast %414 : vector<20x1xf32> to vector<20x20xf32>
    %416 = arith.divf %412, %415 : vector<20x20xf32>
    %cst_254 = arith.constant dense<0.000000e+00> : vector<20x8xf32>
    %417 = tpu.matmul %416, %403, %cst_254 {dimension_numbers = #tpu.dot_dimension_numbers<[1], [0], [0], [1], [0, 0, 1, 1], [], []>} : vector<20x20xf32>, vector<20x8xf32>, vector<20x8xf32> -> vector<20x8xf32>
    %c5_255 = arith.constant 5 : index
    %c0_256 = arith.constant 0 : index
    %c0_257 = arith.constant 0 : index
    %418 = vector.load %arg13[%c5_255, %c0_256, %c0_257] : memref<8x8x32xf32, #tpu.memory_space<vmem>>, vector<1x8x32xf32>
    %419 = vector.shape_cast %418 : vector<1x8x32xf32> to vector<8x32xf32>
    %cst_258 = arith.constant dense<0.000000e+00> : vector<20x32xf32>
    %420 = tpu.matmul %417, %419, %cst_258 {dimension_numbers = #tpu.dot_dimension_numbers<[1], [0], [0], [1], [0, 0, 1, 1], [], []>} : vector<20x8xf32>, vector<8x32xf32>, vector<20x32xf32> -> vector<20x32xf32>
    %421 = arith.addf %382, %420 : vector<20x32xf32>
    %c6 = arith.constant 6 : index
    %c0_259 = arith.constant 0 : index
    %c0_260 = arith.constant 0 : index
    %422 = vector.load %arg7[%c6, %c0_259, %c0_260] : memref<8x32x8xf32, #tpu.memory_space<vmem>>, vector<1x32x8xf32>
    %423 = vector.shape_cast %422 : vector<1x32x8xf32> to vector<32x8xf32>
    %cst_261 = arith.constant dense<0.000000e+00> : vector<20x8xf32>
    %424 = tpu.matmul %340, %423, %cst_261 {dimension_numbers = #tpu.dot_dimension_numbers<[1], [0], [0], [1], [0, 0, 1, 1], [], []>} : vector<20x32xf32>, vector<32x8xf32>, vector<20x8xf32> -> vector<20x8xf32>
    %c6_262 = arith.constant 6 : index
    %c0_263 = arith.constant 0 : index
    %c0_264 = arith.constant 0 : index
    %425 = vector.load %arg10[%c6_262, %c0_263, %c0_264] : memref<8x1x8xf32, #tpu.memory_space<vmem>>, vector<1x1x8xf32>
    %426 = vector.shape_cast %425 : vector<1x1x8xf32> to vector<1x8xf32>
    %427 = vector.broadcast %426 : vector<1x8xf32> to vector<20x8xf32>
    %428 = arith.addf %424, %427 : vector<20x8xf32>
    %c6_265 = arith.constant 6 : index
    %c0_266 = arith.constant 0 : index
    %c0_267 = arith.constant 0 : index
    %429 = vector.load %arg8[%c6_265, %c0_266, %c0_267] : memref<8x32x8xf32, #tpu.memory_space<vmem>>, vector<1x32x8xf32>
    %430 = vector.shape_cast %429 : vector<1x32x8xf32> to vector<32x8xf32>
    %cst_268 = arith.constant dense<0.000000e+00> : vector<20x8xf32>
    %431 = tpu.matmul %340, %430, %cst_268 {dimension_numbers = #tpu.dot_dimension_numbers<[1], [0], [0], [1], [0, 0, 1, 1], [], []>} : vector<20x32xf32>, vector<32x8xf32>, vector<20x8xf32> -> vector<20x8xf32>
    %c6_269 = arith.constant 6 : index
    %c0_270 = arith.constant 0 : index
    %c0_271 = arith.constant 0 : index
    %432 = vector.load %arg11[%c6_269, %c0_270, %c0_271] : memref<8x1x8xf32, #tpu.memory_space<vmem>>, vector<1x1x8xf32>
    %433 = vector.shape_cast %432 : vector<1x1x8xf32> to vector<1x8xf32>
    %434 = vector.broadcast %433 : vector<1x8xf32> to vector<20x8xf32>
    %435 = arith.addf %431, %434 : vector<20x8xf32>
    %c6_272 = arith.constant 6 : index
    %c0_273 = arith.constant 0 : index
    %c0_274 = arith.constant 0 : index
    %436 = vector.load %arg9[%c6_272, %c0_273, %c0_274] : memref<8x32x8xf32, #tpu.memory_space<vmem>>, vector<1x32x8xf32>
    %437 = vector.shape_cast %436 : vector<1x32x8xf32> to vector<32x8xf32>
    %cst_275 = arith.constant dense<0.000000e+00> : vector<20x8xf32>
    %438 = tpu.matmul %340, %437, %cst_275 {dimension_numbers = #tpu.dot_dimension_numbers<[1], [0], [0], [1], [0, 0, 1, 1], [], []>} : vector<20x32xf32>, vector<32x8xf32>, vector<20x8xf32> -> vector<20x8xf32>
    %c6_276 = arith.constant 6 : index
    %c0_277 = arith.constant 0 : index
    %c0_278 = arith.constant 0 : index
    %439 = vector.load %arg12[%c6_276, %c0_277, %c0_278] : memref<8x1x8xf32, #tpu.memory_space<vmem>>, vector<1x1x8xf32>
    %440 = vector.shape_cast %439 : vector<1x1x8xf32> to vector<1x8xf32>
    %441 = vector.broadcast %440 : vector<1x8xf32> to vector<20x8xf32>
    %442 = arith.addf %438, %441 : vector<20x8xf32>
    %cst_279 = arith.constant dense<0.000000e+00> : vector<20x20xf32>
    %443 = tpu.matmul %428, %435, %cst_279 {dimension_numbers = #tpu.dot_dimension_numbers<[1], [1], [0], [0], [0, 0, 1, 0], [], []>} : vector<20x8xf32>, vector<20x8xf32>, vector<20x20xf32> -> vector<20x20xf32>
    %cst_280 = arith.constant 0.353553385 : f32
    %444 = vector.broadcast %cst_280 : f32 to vector<20x20xf32>
    %445 = arith.mulf %443, %444 : vector<20x20xf32>
    %446 = arith.addf %445, %47 : vector<20x20xf32>
    %cst_281 = arith.constant dense<0xFF800000> : vector<20xf32>
    %447 = vector.multi_reduction <maximumf>, %446, %cst_281 [1] : vector<20x20xf32> to vector<20xf32>
    %448 = vector.shape_cast %447 : vector<20xf32> to vector<20x1xf32>
    %449 = vector.broadcast %448 : vector<20x1xf32> to vector<20x20xf32>
    %450 = arith.subf %446, %449 : vector<20x20xf32>
    %451 = math.exp %450 : vector<20x20xf32>
    %cst_282 = arith.constant dense<0.000000e+00> : vector<20xf32>
    %452 = vector.multi_reduction <add>, %451, %cst_282 [1] : vector<20x20xf32> to vector<20xf32>
    %453 = vector.shape_cast %452 : vector<20xf32> to vector<20x1xf32>
    %454 = vector.broadcast %453 : vector<20x1xf32> to vector<20x20xf32>
    %455 = arith.divf %451, %454 : vector<20x20xf32>
    %cst_283 = arith.constant dense<0.000000e+00> : vector<20x8xf32>
    %456 = tpu.matmul %455, %442, %cst_283 {dimension_numbers = #tpu.dot_dimension_numbers<[1], [0], [0], [1], [0, 0, 1, 1], [], []>} : vector<20x20xf32>, vector<20x8xf32>, vector<20x8xf32> -> vector<20x8xf32>
    %c6_284 = arith.constant 6 : index
    %c0_285 = arith.constant 0 : index
    %c0_286 = arith.constant 0 : index
    %457 = vector.load %arg13[%c6_284, %c0_285, %c0_286] : memref<8x8x32xf32, #tpu.memory_space<vmem>>, vector<1x8x32xf32>
    %458 = vector.shape_cast %457 : vector<1x8x32xf32> to vector<8x32xf32>
    %cst_287 = arith.constant dense<0.000000e+00> : vector<20x32xf32>
    %459 = tpu.matmul %456, %458, %cst_287 {dimension_numbers = #tpu.dot_dimension_numbers<[1], [0], [0], [1], [0, 0, 1, 1], [], []>} : vector<20x8xf32>, vector<8x32xf32>, vector<20x32xf32> -> vector<20x32xf32>
    %460 = arith.addf %421, %459 : vector<20x32xf32>
    %c7 = arith.constant 7 : index
    %c0_288 = arith.constant 0 : index
    %c0_289 = arith.constant 0 : index
    %461 = vector.load %arg7[%c7, %c0_288, %c0_289] : memref<8x32x8xf32, #tpu.memory_space<vmem>>, vector<1x32x8xf32>
    %462 = vector.shape_cast %461 : vector<1x32x8xf32> to vector<32x8xf32>
    %cst_290 = arith.constant dense<0.000000e+00> : vector<20x8xf32>
    %463 = tpu.matmul %340, %462, %cst_290 {dimension_numbers = #tpu.dot_dimension_numbers<[1], [0], [0], [1], [0, 0, 1, 1], [], []>} : vector<20x32xf32>, vector<32x8xf32>, vector<20x8xf32> -> vector<20x8xf32>
    %c7_291 = arith.constant 7 : index
    %c0_292 = arith.constant 0 : index
    %c0_293 = arith.constant 0 : index
    %464 = vector.load %arg10[%c7_291, %c0_292, %c0_293] : memref<8x1x8xf32, #tpu.memory_space<vmem>>, vector<1x1x8xf32>
    %465 = vector.shape_cast %464 : vector<1x1x8xf32> to vector<1x8xf32>
    %466 = vector.broadcast %465 : vector<1x8xf32> to vector<20x8xf32>
    %467 = arith.addf %463, %466 : vector<20x8xf32>
    %c7_294 = arith.constant 7 : index
    %c0_295 = arith.constant 0 : index
    %c0_296 = arith.constant 0 : index
    %468 = vector.load %arg8[%c7_294, %c0_295, %c0_296] : memref<8x32x8xf32, #tpu.memory_space<vmem>>, vector<1x32x8xf32>
    %469 = vector.shape_cast %468 : vector<1x32x8xf32> to vector<32x8xf32>
    %cst_297 = arith.constant dense<0.000000e+00> : vector<20x8xf32>
    %470 = tpu.matmul %340, %469, %cst_297 {dimension_numbers = #tpu.dot_dimension_numbers<[1], [0], [0], [1], [0, 0, 1, 1], [], []>} : vector<20x32xf32>, vector<32x8xf32>, vector<20x8xf32> -> vector<20x8xf32>
    %c7_298 = arith.constant 7 : index
    %c0_299 = arith.constant 0 : index
    %c0_300 = arith.constant 0 : index
    %471 = vector.load %arg11[%c7_298, %c0_299, %c0_300] : memref<8x1x8xf32, #tpu.memory_space<vmem>>, vector<1x1x8xf32>
    %472 = vector.shape_cast %471 : vector<1x1x8xf32> to vector<1x8xf32>
    %473 = vector.broadcast %472 : vector<1x8xf32> to vector<20x8xf32>
    %474 = arith.addf %470, %473 : vector<20x8xf32>
    %c7_301 = arith.constant 7 : index
    %c0_302 = arith.constant 0 : index
    %c0_303 = arith.constant 0 : index
    %475 = vector.load %arg9[%c7_301, %c0_302, %c0_303] : memref<8x32x8xf32, #tpu.memory_space<vmem>>, vector<1x32x8xf32>
    %476 = vector.shape_cast %475 : vector<1x32x8xf32> to vector<32x8xf32>
    %cst_304 = arith.constant dense<0.000000e+00> : vector<20x8xf32>
    %477 = tpu.matmul %340, %476, %cst_304 {dimension_numbers = #tpu.dot_dimension_numbers<[1], [0], [0], [1], [0, 0, 1, 1], [], []>} : vector<20x32xf32>, vector<32x8xf32>, vector<20x8xf32> -> vector<20x8xf32>
    %c7_305 = arith.constant 7 : index
    %c0_306 = arith.constant 0 : index
    %c0_307 = arith.constant 0 : index
    %478 = vector.load %arg12[%c7_305, %c0_306, %c0_307] : memref<8x1x8xf32, #tpu.memory_space<vmem>>, vector<1x1x8xf32>
    %479 = vector.shape_cast %478 : vector<1x1x8xf32> to vector<1x8xf32>
    %480 = vector.broadcast %479 : vector<1x8xf32> to vector<20x8xf32>
    %481 = arith.addf %477, %480 : vector<20x8xf32>
    %cst_308 = arith.constant dense<0.000000e+00> : vector<20x20xf32>
    %482 = tpu.matmul %467, %474, %cst_308 {dimension_numbers = #tpu.dot_dimension_numbers<[1], [1], [0], [0], [0, 0, 1, 0], [], []>} : vector<20x8xf32>, vector<20x8xf32>, vector<20x20xf32> -> vector<20x20xf32>
    %cst_309 = arith.constant 0.353553385 : f32
    %483 = vector.broadcast %cst_309 : f32 to vector<20x20xf32>
    %484 = arith.mulf %482, %483 : vector<20x20xf32>
    %485 = arith.addf %484, %47 : vector<20x20xf32>
    %cst_310 = arith.constant dense<0xFF800000> : vector<20xf32>
    %486 = vector.multi_reduction <maximumf>, %485, %cst_310 [1] : vector<20x20xf32> to vector<20xf32>
    %487 = vector.shape_cast %486 : vector<20xf32> to vector<20x1xf32>
    %488 = vector.broadcast %487 : vector<20x1xf32> to vector<20x20xf32>
    %489 = arith.subf %485, %488 : vector<20x20xf32>
    %490 = math.exp %489 : vector<20x20xf32>
    %cst_311 = arith.constant dense<0.000000e+00> : vector<20xf32>
    %491 = vector.multi_reduction <add>, %490, %cst_311 [1] : vector<20x20xf32> to vector<20xf32>
    %492 = vector.shape_cast %491 : vector<20xf32> to vector<20x1xf32>
    %493 = vector.broadcast %492 : vector<20x1xf32> to vector<20x20xf32>
    %494 = arith.divf %490, %493 : vector<20x20xf32>
    %cst_312 = arith.constant dense<0.000000e+00> : vector<20x8xf32>
    %495 = tpu.matmul %494, %481, %cst_312 {dimension_numbers = #tpu.dot_dimension_numbers<[1], [0], [0], [1], [0, 0, 1, 1], [], []>} : vector<20x20xf32>, vector<20x8xf32>, vector<20x8xf32> -> vector<20x8xf32>
    %c7_313 = arith.constant 7 : index
    %c0_314 = arith.constant 0 : index
    %c0_315 = arith.constant 0 : index
    %496 = vector.load %arg13[%c7_313, %c0_314, %c0_315] : memref<8x8x32xf32, #tpu.memory_space<vmem>>, vector<1x8x32xf32>
    %497 = vector.shape_cast %496 : vector<1x8x32xf32> to vector<8x32xf32>
    %cst_316 = arith.constant dense<0.000000e+00> : vector<20x32xf32>
    %498 = tpu.matmul %495, %497, %cst_316 {dimension_numbers = #tpu.dot_dimension_numbers<[1], [0], [0], [1], [0, 0, 1, 1], [], []>} : vector<20x8xf32>, vector<8x32xf32>, vector<20x32xf32> -> vector<20x32xf32>
    %499 = arith.addf %460, %498 : vector<20x32xf32>
    %500 = arith.addf %314, %499 : vector<20x32xf32>
    %c1_317 = arith.constant 1 : index
    %c0_318 = arith.constant 0 : index
    %c0_319 = arith.constant 0 : index
    %501 = vector.load %arg15[%c1_317, %c0_318, %c0_319] : memref<2x1x32xf32, #tpu.memory_space<vmem>>, vector<1x1x32xf32>
    %502 = vector.shape_cast %501 : vector<1x1x32xf32> to vector<1x32xf32>
    %c1_320 = arith.constant 1 : index
    %c0_321 = arith.constant 0 : index
    %c0_322 = arith.constant 0 : index
    %503 = vector.load %arg16[%c1_320, %c0_321, %c0_322] : memref<2x1x32xf32, #tpu.memory_space<vmem>>, vector<1x1x32xf32>
    %504 = vector.shape_cast %503 : vector<1x1x32xf32> to vector<1x32xf32>
    %cst_323 = arith.constant dense<0.000000e+00> : vector<20xf32>
    %505 = vector.multi_reduction <add>, %500, %cst_323 [1] : vector<20x32xf32> to vector<20xf32>
    %506 = vector.shape_cast %505 : vector<20xf32> to vector<20x1xf32>
    %cst_324 = arith.constant 3.200000e+01 : f32
    %507 = vector.broadcast %cst_324 : f32 to vector<20x1xf32>
    %508 = arith.divf %506, %507 : vector<20x1xf32>
    %509 = vector.broadcast %508 : vector<20x1xf32> to vector<20x32xf32>
    %510 = arith.subf %500, %509 : vector<20x32xf32>
    %511 = arith.mulf %510, %510 : vector<20x32xf32>
    %cst_325 = arith.constant dense<0.000000e+00> : vector<20xf32>
    %512 = vector.multi_reduction <add>, %511, %cst_325 [1] : vector<20x32xf32> to vector<20xf32>
    %513 = vector.shape_cast %512 : vector<20xf32> to vector<20x1xf32>
    %cst_326 = arith.constant 3.200000e+01 : f32
    %514 = vector.broadcast %cst_326 : f32 to vector<20x1xf32>
    %515 = arith.divf %513, %514 : vector<20x1xf32>
    %516 = vector.broadcast %508 : vector<20x1xf32> to vector<20x32xf32>
    %517 = arith.subf %500, %516 : vector<20x32xf32>
    %cst_327 = arith.constant 9.99999997E-7 : f32
    %518 = vector.broadcast %cst_327 : f32 to vector<20x1xf32>
    %519 = arith.addf %515, %518 : vector<20x1xf32>
    %520 = math.rsqrt %519 : vector<20x1xf32>
    %521 = vector.broadcast %520 : vector<20x1xf32> to vector<20x32xf32>
    %522 = arith.mulf %517, %521 : vector<20x32xf32>
    %523 = vector.broadcast %502 : vector<1x32xf32> to vector<20x32xf32>
    %524 = arith.mulf %522, %523 : vector<20x32xf32>
    %525 = vector.broadcast %504 : vector<1x32xf32> to vector<20x32xf32>
    %526 = arith.addf %524, %525 : vector<20x32xf32>
    %c1_328 = arith.constant 1 : index
    %c0_329 = arith.constant 0 : index
    %c0_330 = arith.constant 0 : index
    %527 = vector.load %arg17[%c1_328, %c0_329, %c0_330] : memref<2x32x128xf32, #tpu.memory_space<vmem>>, vector<1x32x128xf32>
    %528 = vector.shape_cast %527 : vector<1x32x128xf32> to vector<32x128xf32>
    %cst_331 = arith.constant dense<0.000000e+00> : vector<20x128xf32>
    %529 = tpu.matmul %526, %528, %cst_331 {dimension_numbers = #tpu.dot_dimension_numbers<[1], [0], [0], [1], [0, 0, 1, 1], [], []>} : vector<20x32xf32>, vector<32x128xf32>, vector<20x128xf32> -> vector<20x128xf32>
    %c1_332 = arith.constant 1 : index
    %c0_333 = arith.constant 0 : index
    %c0_334 = arith.constant 0 : index
    %530 = vector.load %arg18[%c1_332, %c0_333, %c0_334] : memref<2x1x128xf32, #tpu.memory_space<vmem>>, vector<1x1x128xf32>
    %531 = vector.shape_cast %530 : vector<1x1x128xf32> to vector<1x128xf32>
    %532 = vector.broadcast %531 : vector<1x128xf32> to vector<20x128xf32>
    %533 = arith.addf %529, %532 : vector<20x128xf32>
    %cst_335 = arith.constant 5.000000e-01 : f32
    %534 = vector.broadcast %cst_335 : f32 to vector<20x128xf32>
    %535 = arith.mulf %534, %533 : vector<20x128xf32>
    %cst_336 = arith.constant 0.707106769 : f32
    %536 = vector.broadcast %cst_336 : f32 to vector<20x128xf32>
    %537 = arith.mulf %533, %536 : vector<20x128xf32>
    %538 = math.absf %537 : vector<20x128xf32>
    %cst_337 = arith.constant 0.327591091 : f32
    %539 = vector.broadcast %cst_337 : f32 to vector<20x128xf32>
    %540 = arith.mulf %539, %538 : vector<20x128xf32>
    %cst_338 = arith.constant 1.000000e+00 : f32
    %541 = vector.broadcast %cst_338 : f32 to vector<20x128xf32>
    %542 = arith.addf %541, %540 : vector<20x128xf32>
    %cst_339 = arith.constant 1.000000e+00 : f32
    %543 = vector.broadcast %cst_339 : f32 to vector<20x128xf32>
    %544 = arith.divf %543, %542 : vector<20x128xf32>
    %cst_340 = arith.constant 1.06140542 : f32
    %545 = vector.broadcast %cst_340 : f32 to vector<20x128xf32>
    %546 = arith.mulf %545, %544 : vector<20x128xf32>
    %cst_341 = arith.constant -1.45315206 : f32
    %547 = vector.broadcast %cst_341 : f32 to vector<20x128xf32>
    %548 = arith.addf %546, %547 : vector<20x128xf32>
    %549 = arith.mulf %548, %544 : vector<20x128xf32>
    %cst_342 = arith.constant 1.42141378 : f32
    %550 = vector.broadcast %cst_342 : f32 to vector<20x128xf32>
    %551 = arith.addf %549, %550 : vector<20x128xf32>
    %552 = arith.mulf %551, %544 : vector<20x128xf32>
    %cst_343 = arith.constant -0.284496725 : f32
    %553 = vector.broadcast %cst_343 : f32 to vector<20x128xf32>
    %554 = arith.addf %552, %553 : vector<20x128xf32>
    %555 = arith.mulf %554, %544 : vector<20x128xf32>
    %cst_344 = arith.constant 0.254829586 : f32
    %556 = vector.broadcast %cst_344 : f32 to vector<20x128xf32>
    %557 = arith.addf %555, %556 : vector<20x128xf32>
    %558 = arith.mulf %557, %544 : vector<20x128xf32>
    %559 = arith.mulf %538, %538 : vector<20x128xf32>
    %cst_345 = arith.constant 0.000000e+00 : f32
    %560 = vector.broadcast %cst_345 : f32 to vector<20x128xf32>
    %561 = arith.subf %560, %559 : vector<20x128xf32>
    %562 = math.exp %561 : vector<20x128xf32>
    %563 = arith.mulf %558, %562 : vector<20x128xf32>
    %cst_346 = arith.constant 1.000000e+00 : f32
    %564 = vector.broadcast %cst_346 : f32 to vector<20x128xf32>
    %565 = arith.subf %564, %563 : vector<20x128xf32>
    %cst_347 = arith.constant 0.000000e+00 : f32
    %566 = vector.broadcast %cst_347 : f32 to vector<20x128xf32>
    %567 = arith.cmpf olt, %537, %566 : vector<20x128xf32>
    %cst_348 = arith.constant 0.000000e+00 : f32
    %568 = vector.broadcast %cst_348 : f32 to vector<20x128xf32>
    %569 = arith.subf %568, %565 : vector<20x128xf32>
    %570 = arith.select %567, %569, %565 : vector<20x128xi1>, vector<20x128xf32>
    %cst_349 = arith.constant 1.000000e+00 : f32
    %571 = vector.broadcast %cst_349 : f32 to vector<20x128xf32>
    %572 = arith.addf %571, %570 : vector<20x128xf32>
    %573 = arith.mulf %535, %572 : vector<20x128xf32>
    %c1_350 = arith.constant 1 : index
    %c0_351 = arith.constant 0 : index
    %c0_352 = arith.constant 0 : index
    %574 = vector.load %arg19[%c1_350, %c0_351, %c0_352] : memref<2x128x32xf32, #tpu.memory_space<vmem>>, vector<1x128x32xf32>
    %575 = vector.shape_cast %574 : vector<1x128x32xf32> to vector<128x32xf32>
    %cst_353 = arith.constant dense<0.000000e+00> : vector<20x32xf32>
    %576 = tpu.matmul %573, %575, %cst_353 {dimension_numbers = #tpu.dot_dimension_numbers<[1], [0], [0], [1], [0, 0, 1, 1], [], []>} : vector<20x128xf32>, vector<128x32xf32>, vector<20x32xf32> -> vector<20x32xf32>
    %c1_354 = arith.constant 1 : index
    %c0_355 = arith.constant 0 : index
    %c0_356 = arith.constant 0 : index
    %577 = vector.load %arg20[%c1_354, %c0_355, %c0_356] : memref<2x1x32xf32, #tpu.memory_space<vmem>>, vector<1x1x32xf32>
    %578 = vector.shape_cast %577 : vector<1x1x32xf32> to vector<1x32xf32>
    %579 = vector.broadcast %578 : vector<1x32xf32> to vector<20x32xf32>
    %580 = arith.addf %576, %579 : vector<20x32xf32>
    %581 = arith.addf %500, %580 : vector<20x32xf32>
    %582 = vector.extract_strided_slice %581 {offsets = [0, 0], sizes = [2, 32], strides = [1, 1]} : vector<20x32xf32> to vector<2x32xf32>
    %c0_357 = arith.constant 0 : index
    %c0_358 = arith.constant 0 : index
    %583 = vector.load %arg21[%c0_357, %c0_358] : memref<1x32xf32, #tpu.memory_space<vmem>>, vector<1x32xf32>
    %c0_359 = arith.constant 0 : index
    %c0_360 = arith.constant 0 : index
    %584 = vector.load %arg22[%c0_359, %c0_360] : memref<1x32xf32, #tpu.memory_space<vmem>>, vector<1x32xf32>
    %cst_361 = arith.constant dense<0.000000e+00> : vector<2xf32>
    %585 = vector.multi_reduction <add>, %582, %cst_361 [1] : vector<2x32xf32> to vector<2xf32>
    %586 = vector.shape_cast %585 : vector<2xf32> to vector<2x1xf32>
    %cst_362 = arith.constant 3.200000e+01 : f32
    %587 = vector.broadcast %cst_362 : f32 to vector<2x1xf32>
    %588 = arith.divf %586, %587 : vector<2x1xf32>
    %589 = vector.broadcast %588 : vector<2x1xf32> to vector<2x32xf32>
    %590 = arith.subf %582, %589 : vector<2x32xf32>
    %591 = arith.mulf %590, %590 : vector<2x32xf32>
    %cst_363 = arith.constant dense<0.000000e+00> : vector<2xf32>
    %592 = vector.multi_reduction <add>, %591, %cst_363 [1] : vector<2x32xf32> to vector<2xf32>
    %593 = vector.shape_cast %592 : vector<2xf32> to vector<2x1xf32>
    %cst_364 = arith.constant 3.200000e+01 : f32
    %594 = vector.broadcast %cst_364 : f32 to vector<2x1xf32>
    %595 = arith.divf %593, %594 : vector<2x1xf32>
    %596 = vector.broadcast %588 : vector<2x1xf32> to vector<2x32xf32>
    %597 = arith.subf %582, %596 : vector<2x32xf32>
    %cst_365 = arith.constant 9.99999997E-7 : f32
    %598 = vector.broadcast %cst_365 : f32 to vector<2x1xf32>
    %599 = arith.addf %595, %598 : vector<2x1xf32>
    %600 = math.rsqrt %599 : vector<2x1xf32>
    %601 = vector.broadcast %600 : vector<2x1xf32> to vector<2x32xf32>
    %602 = arith.mulf %597, %601 : vector<2x32xf32>
    %603 = vector.broadcast %583 : vector<1x32xf32> to vector<2x32xf32>
    %604 = arith.mulf %602, %603 : vector<2x32xf32>
    %605 = vector.broadcast %584 : vector<1x32xf32> to vector<2x32xf32>
    %606 = arith.addf %604, %605 : vector<2x32xf32>
    %607 = vector.extract_strided_slice %581 {offsets = [2, 0], sizes = [2, 32], strides = [1, 1]} : vector<20x32xf32> to vector<2x32xf32>
    %c0_366 = arith.constant 0 : index
    %c0_367 = arith.constant 0 : index
    %608 = vector.load %arg21[%c0_366, %c0_367] : memref<1x32xf32, #tpu.memory_space<vmem>>, vector<1x32xf32>
    %c0_368 = arith.constant 0 : index
    %c0_369 = arith.constant 0 : index
    %609 = vector.load %arg22[%c0_368, %c0_369] : memref<1x32xf32, #tpu.memory_space<vmem>>, vector<1x32xf32>
    %cst_370 = arith.constant dense<0.000000e+00> : vector<2xf32>
    %610 = vector.multi_reduction <add>, %607, %cst_370 [1] : vector<2x32xf32> to vector<2xf32>
    %611 = vector.shape_cast %610 : vector<2xf32> to vector<2x1xf32>
    %cst_371 = arith.constant 3.200000e+01 : f32
    %612 = vector.broadcast %cst_371 : f32 to vector<2x1xf32>
    %613 = arith.divf %611, %612 : vector<2x1xf32>
    %614 = vector.broadcast %613 : vector<2x1xf32> to vector<2x32xf32>
    %615 = arith.subf %607, %614 : vector<2x32xf32>
    %616 = arith.mulf %615, %615 : vector<2x32xf32>
    %cst_372 = arith.constant dense<0.000000e+00> : vector<2xf32>
    %617 = vector.multi_reduction <add>, %616, %cst_372 [1] : vector<2x32xf32> to vector<2xf32>
    %618 = vector.shape_cast %617 : vector<2xf32> to vector<2x1xf32>
    %cst_373 = arith.constant 3.200000e+01 : f32
    %619 = vector.broadcast %cst_373 : f32 to vector<2x1xf32>
    %620 = arith.divf %618, %619 : vector<2x1xf32>
    %621 = vector.broadcast %613 : vector<2x1xf32> to vector<2x32xf32>
    %622 = arith.subf %607, %621 : vector<2x32xf32>
    %cst_374 = arith.constant 9.99999997E-7 : f32
    %623 = vector.broadcast %cst_374 : f32 to vector<2x1xf32>
    %624 = arith.addf %620, %623 : vector<2x1xf32>
    %625 = math.rsqrt %624 : vector<2x1xf32>
    %626 = vector.broadcast %625 : vector<2x1xf32> to vector<2x32xf32>
    %627 = arith.mulf %622, %626 : vector<2x32xf32>
    %628 = vector.broadcast %608 : vector<1x32xf32> to vector<2x32xf32>
    %629 = arith.mulf %627, %628 : vector<2x32xf32>
    %630 = vector.broadcast %609 : vector<1x32xf32> to vector<2x32xf32>
    %631 = arith.addf %629, %630 : vector<2x32xf32>
    %c0_375 = arith.constant 0 : index
    %c0_376 = arith.constant 0 : index
    %632 = vector.load %arg23[%c0_375, %c0_376] : memref<32x192xf32, #tpu.memory_space<vmem>>, vector<32x192xf32>
    %cst_377 = arith.constant dense<0.000000e+00> : vector<2x192xf32>
    %633 = tpu.matmul %606, %632, %cst_377 {dimension_numbers = #tpu.dot_dimension_numbers<[1], [0], [0], [1], [0, 0, 1, 1], [], []>} : vector<2x32xf32>, vector<32x192xf32>, vector<2x192xf32> -> vector<2x192xf32>
    %c0_378 = arith.constant 0 : index
    %c0_379 = arith.constant 0 : index
    %634 = vector.load %arg24[%c0_378, %c0_379] : memref<32x192xf32, #tpu.memory_space<vmem>>, vector<32x192xf32>
    %cst_380 = arith.constant dense<0.000000e+00> : vector<2x192xf32>
    %635 = tpu.matmul %631, %634, %cst_380 {dimension_numbers = #tpu.dot_dimension_numbers<[1], [0], [0], [1], [0, 0, 1, 1], [], []>} : vector<2x32xf32>, vector<32x192xf32>, vector<2x192xf32> -> vector<2x192xf32>
    %636 = arith.addf %633, %635 : vector<2x192xf32>
    %c0_381 = arith.constant 0 : index
    %c0_382 = arith.constant 0 : index
    %637 = vector.load %arg25[%c0_381, %c0_382] : memref<1x192xf32, #tpu.memory_space<vmem>>, vector<1x192xf32>
    %638 = vector.broadcast %637 : vector<1x192xf32> to vector<2x192xf32>
    %639 = arith.addf %636, %638 : vector<2x192xf32>
    %c0_383 = arith.constant 0 : index
    %c0_384 = arith.constant 0 : index
    %640 = vector.load %arg26[%c0_383, %c0_384] : memref<1x192xf32, #tpu.memory_space<vmem>>, vector<1x192xf32>
    %c0_385 = arith.constant 0 : index
    %c0_386 = arith.constant 0 : index
    %641 = vector.load %arg27[%c0_385, %c0_386] : memref<1x192xf32, #tpu.memory_space<vmem>>, vector<1x192xf32>
    %cst_387 = arith.constant dense<0.000000e+00> : vector<192xf32>
    %642 = vector.multi_reduction <add>, %639, %cst_387 [0] : vector<2x192xf32> to vector<192xf32>
    %643 = vector.shape_cast %642 : vector<192xf32> to vector<1x192xf32>
    %cst_388 = arith.constant 2.000000e+00 : f32
    %644 = vector.broadcast %cst_388 : f32 to vector<1x192xf32>
    %645 = arith.divf %643, %644 : vector<1x192xf32>
    %646 = vector.broadcast %645 : vector<1x192xf32> to vector<2x192xf32>
    %647 = arith.subf %639, %646 : vector<2x192xf32>
    %648 = arith.mulf %647, %647 : vector<2x192xf32>
    %cst_389 = arith.constant dense<0.000000e+00> : vector<192xf32>
    %649 = vector.multi_reduction <add>, %648, %cst_389 [0] : vector<2x192xf32> to vector<192xf32>
    %650 = vector.shape_cast %649 : vector<192xf32> to vector<1x192xf32>
    %cst_390 = arith.constant 2.000000e+00 : f32
    %651 = vector.broadcast %cst_390 : f32 to vector<1x192xf32>
    %652 = arith.divf %650, %651 : vector<1x192xf32>
    %653 = vector.broadcast %645 : vector<1x192xf32> to vector<2x192xf32>
    %654 = arith.subf %639, %653 : vector<2x192xf32>
    %cst_391 = arith.constant 9.99999974E-6 : f32
    %655 = vector.broadcast %cst_391 : f32 to vector<1x192xf32>
    %656 = arith.addf %652, %655 : vector<1x192xf32>
    %657 = math.rsqrt %656 : vector<1x192xf32>
    %658 = vector.broadcast %657 : vector<1x192xf32> to vector<2x192xf32>
    %659 = arith.mulf %654, %658 : vector<2x192xf32>
    %660 = vector.broadcast %640 : vector<1x192xf32> to vector<2x192xf32>
    %661 = arith.mulf %659, %660 : vector<2x192xf32>
    %662 = vector.broadcast %641 : vector<1x192xf32> to vector<2x192xf32>
    %663 = arith.addf %661, %662 : vector<2x192xf32>
    %cst_392 = arith.constant 5.000000e-01 : f32
    %664 = vector.broadcast %cst_392 : f32 to vector<2x192xf32>
    %665 = arith.mulf %664, %663 : vector<2x192xf32>
    %cst_393 = arith.constant 0.707106769 : f32
    %666 = vector.broadcast %cst_393 : f32 to vector<2x192xf32>
    %667 = arith.mulf %663, %666 : vector<2x192xf32>
    %668 = math.absf %667 : vector<2x192xf32>
    %cst_394 = arith.constant 0.327591091 : f32
    %669 = vector.broadcast %cst_394 : f32 to vector<2x192xf32>
    %670 = arith.mulf %669, %668 : vector<2x192xf32>
    %cst_395 = arith.constant 1.000000e+00 : f32
    %671 = vector.broadcast %cst_395 : f32 to vector<2x192xf32>
    %672 = arith.addf %671, %670 : vector<2x192xf32>
    %cst_396 = arith.constant 1.000000e+00 : f32
    %673 = vector.broadcast %cst_396 : f32 to vector<2x192xf32>
    %674 = arith.divf %673, %672 : vector<2x192xf32>
    %cst_397 = arith.constant 1.06140542 : f32
    %675 = vector.broadcast %cst_397 : f32 to vector<2x192xf32>
    %676 = arith.mulf %675, %674 : vector<2x192xf32>
    %cst_398 = arith.constant -1.45315206 : f32
    %677 = vector.broadcast %cst_398 : f32 to vector<2x192xf32>
    %678 = arith.addf %676, %677 : vector<2x192xf32>
    %679 = arith.mulf %678, %674 : vector<2x192xf32>
    %cst_399 = arith.constant 1.42141378 : f32
    %680 = vector.broadcast %cst_399 : f32 to vector<2x192xf32>
    %681 = arith.addf %679, %680 : vector<2x192xf32>
    %682 = arith.mulf %681, %674 : vector<2x192xf32>
    %cst_400 = arith.constant -0.284496725 : f32
    %683 = vector.broadcast %cst_400 : f32 to vector<2x192xf32>
    %684 = arith.addf %682, %683 : vector<2x192xf32>
    %685 = arith.mulf %684, %674 : vector<2x192xf32>
    %cst_401 = arith.constant 0.254829586 : f32
    %686 = vector.broadcast %cst_401 : f32 to vector<2x192xf32>
    %687 = arith.addf %685, %686 : vector<2x192xf32>
    %688 = arith.mulf %687, %674 : vector<2x192xf32>
    %689 = arith.mulf %668, %668 : vector<2x192xf32>
    %cst_402 = arith.constant 0.000000e+00 : f32
    %690 = vector.broadcast %cst_402 : f32 to vector<2x192xf32>
    %691 = arith.subf %690, %689 : vector<2x192xf32>
    %692 = math.exp %691 : vector<2x192xf32>
    %693 = arith.mulf %688, %692 : vector<2x192xf32>
    %cst_403 = arith.constant 1.000000e+00 : f32
    %694 = vector.broadcast %cst_403 : f32 to vector<2x192xf32>
    %695 = arith.subf %694, %693 : vector<2x192xf32>
    %cst_404 = arith.constant 0.000000e+00 : f32
    %696 = vector.broadcast %cst_404 : f32 to vector<2x192xf32>
    %697 = arith.cmpf olt, %667, %696 : vector<2x192xf32>
    %cst_405 = arith.constant 0.000000e+00 : f32
    %698 = vector.broadcast %cst_405 : f32 to vector<2x192xf32>
    %699 = arith.subf %698, %695 : vector<2x192xf32>
    %700 = arith.select %697, %699, %695 : vector<2x192xi1>, vector<2x192xf32>
    %cst_406 = arith.constant 1.000000e+00 : f32
    %701 = vector.broadcast %cst_406 : f32 to vector<2x192xf32>
    %702 = arith.addf %701, %700 : vector<2x192xf32>
    %703 = arith.mulf %665, %702 : vector<2x192xf32>
    %c0_407 = arith.constant 0 : index
    %c0_408 = arith.constant 0 : index
    %704 = vector.load %arg28[%c0_407, %c0_408] : memref<192x192xf32, #tpu.memory_space<vmem>>, vector<192x192xf32>
    %cst_409 = arith.constant dense<0.000000e+00> : vector<2x192xf32>
    %705 = tpu.matmul %703, %704, %cst_409 {dimension_numbers = #tpu.dot_dimension_numbers<[1], [0], [0], [1], [0, 0, 1, 1], [], []>} : vector<2x192xf32>, vector<192x192xf32>, vector<2x192xf32> -> vector<2x192xf32>
    %c0_410 = arith.constant 0 : index
    %c0_411 = arith.constant 0 : index
    %706 = vector.load %arg29[%c0_410, %c0_411] : memref<1x192xf32, #tpu.memory_space<vmem>>, vector<1x192xf32>
    %707 = vector.broadcast %706 : vector<1x192xf32> to vector<2x192xf32>
    %708 = arith.addf %705, %707 : vector<2x192xf32>
    %c0_412 = arith.constant 0 : index
    %c0_413 = arith.constant 0 : index
    %709 = vector.load %arg30[%c0_412, %c0_413] : memref<1x192xf32, #tpu.memory_space<vmem>>, vector<1x192xf32>
    %c0_414 = arith.constant 0 : index
    %c0_415 = arith.constant 0 : index
    %710 = vector.load %arg31[%c0_414, %c0_415] : memref<1x192xf32, #tpu.memory_space<vmem>>, vector<1x192xf32>
    %cst_416 = arith.constant dense<0.000000e+00> : vector<192xf32>
    %711 = vector.multi_reduction <add>, %708, %cst_416 [0] : vector<2x192xf32> to vector<192xf32>
    %712 = vector.shape_cast %711 : vector<192xf32> to vector<1x192xf32>
    %cst_417 = arith.constant 2.000000e+00 : f32
    %713 = vector.broadcast %cst_417 : f32 to vector<1x192xf32>
    %714 = arith.divf %712, %713 : vector<1x192xf32>
    %715 = vector.broadcast %714 : vector<1x192xf32> to vector<2x192xf32>
    %716 = arith.subf %708, %715 : vector<2x192xf32>
    %717 = arith.mulf %716, %716 : vector<2x192xf32>
    %cst_418 = arith.constant dense<0.000000e+00> : vector<192xf32>
    %718 = vector.multi_reduction <add>, %717, %cst_418 [0] : vector<2x192xf32> to vector<192xf32>
    %719 = vector.shape_cast %718 : vector<192xf32> to vector<1x192xf32>
    %cst_419 = arith.constant 2.000000e+00 : f32
    %720 = vector.broadcast %cst_419 : f32 to vector<1x192xf32>
    %721 = arith.divf %719, %720 : vector<1x192xf32>
    %722 = vector.broadcast %714 : vector<1x192xf32> to vector<2x192xf32>
    %723 = arith.subf %708, %722 : vector<2x192xf32>
    %cst_420 = arith.constant 9.99999974E-6 : f32
    %724 = vector.broadcast %cst_420 : f32 to vector<1x192xf32>
    %725 = arith.addf %721, %724 : vector<1x192xf32>
    %726 = math.rsqrt %725 : vector<1x192xf32>
    %727 = vector.broadcast %726 : vector<1x192xf32> to vector<2x192xf32>
    %728 = arith.mulf %723, %727 : vector<2x192xf32>
    %729 = vector.broadcast %709 : vector<1x192xf32> to vector<2x192xf32>
    %730 = arith.mulf %728, %729 : vector<2x192xf32>
    %731 = vector.broadcast %710 : vector<1x192xf32> to vector<2x192xf32>
    %732 = arith.addf %730, %731 : vector<2x192xf32>
    %cst_421 = arith.constant 5.000000e-01 : f32
    %733 = vector.broadcast %cst_421 : f32 to vector<2x192xf32>
    %734 = arith.mulf %733, %732 : vector<2x192xf32>
    %cst_422 = arith.constant 0.707106769 : f32
    %735 = vector.broadcast %cst_422 : f32 to vector<2x192xf32>
    %736 = arith.mulf %732, %735 : vector<2x192xf32>
    %737 = math.absf %736 : vector<2x192xf32>
    %cst_423 = arith.constant 0.327591091 : f32
    %738 = vector.broadcast %cst_423 : f32 to vector<2x192xf32>
    %739 = arith.mulf %738, %737 : vector<2x192xf32>
    %cst_424 = arith.constant 1.000000e+00 : f32
    %740 = vector.broadcast %cst_424 : f32 to vector<2x192xf32>
    %741 = arith.addf %740, %739 : vector<2x192xf32>
    %cst_425 = arith.constant 1.000000e+00 : f32
    %742 = vector.broadcast %cst_425 : f32 to vector<2x192xf32>
    %743 = arith.divf %742, %741 : vector<2x192xf32>
    %cst_426 = arith.constant 1.06140542 : f32
    %744 = vector.broadcast %cst_426 : f32 to vector<2x192xf32>
    %745 = arith.mulf %744, %743 : vector<2x192xf32>
    %cst_427 = arith.constant -1.45315206 : f32
    %746 = vector.broadcast %cst_427 : f32 to vector<2x192xf32>
    %747 = arith.addf %745, %746 : vector<2x192xf32>
    %748 = arith.mulf %747, %743 : vector<2x192xf32>
    %cst_428 = arith.constant 1.42141378 : f32
    %749 = vector.broadcast %cst_428 : f32 to vector<2x192xf32>
    %750 = arith.addf %748, %749 : vector<2x192xf32>
    %751 = arith.mulf %750, %743 : vector<2x192xf32>
    %cst_429 = arith.constant -0.284496725 : f32
    %752 = vector.broadcast %cst_429 : f32 to vector<2x192xf32>
    %753 = arith.addf %751, %752 : vector<2x192xf32>
    %754 = arith.mulf %753, %743 : vector<2x192xf32>
    %cst_430 = arith.constant 0.254829586 : f32
    %755 = vector.broadcast %cst_430 : f32 to vector<2x192xf32>
    %756 = arith.addf %754, %755 : vector<2x192xf32>
    %757 = arith.mulf %756, %743 : vector<2x192xf32>
    %758 = arith.mulf %737, %737 : vector<2x192xf32>
    %cst_431 = arith.constant 0.000000e+00 : f32
    %759 = vector.broadcast %cst_431 : f32 to vector<2x192xf32>
    %760 = arith.subf %759, %758 : vector<2x192xf32>
    %761 = math.exp %760 : vector<2x192xf32>
    %762 = arith.mulf %757, %761 : vector<2x192xf32>
    %cst_432 = arith.constant 1.000000e+00 : f32
    %763 = vector.broadcast %cst_432 : f32 to vector<2x192xf32>
    %764 = arith.subf %763, %762 : vector<2x192xf32>
    %cst_433 = arith.constant 0.000000e+00 : f32
    %765 = vector.broadcast %cst_433 : f32 to vector<2x192xf32>
    %766 = arith.cmpf olt, %736, %765 : vector<2x192xf32>
    %cst_434 = arith.constant 0.000000e+00 : f32
    %767 = vector.broadcast %cst_434 : f32 to vector<2x192xf32>
    %768 = arith.subf %767, %764 : vector<2x192xf32>
    %769 = arith.select %766, %768, %764 : vector<2x192xi1>, vector<2x192xf32>
    %cst_435 = arith.constant 1.000000e+00 : f32
    %770 = vector.broadcast %cst_435 : f32 to vector<2x192xf32>
    %771 = arith.addf %770, %769 : vector<2x192xf32>
    %772 = arith.mulf %734, %771 : vector<2x192xf32>
    %c0_436 = arith.constant 0 : index
    %c0_437 = arith.constant 0 : index
    %773 = vector.load %arg32[%c0_436, %c0_437] : memref<192x2xf32, #tpu.memory_space<vmem>>, vector<192x2xf32>
    %cst_438 = arith.constant dense<0.000000e+00> : vector<2x2xf32>
    %774 = tpu.matmul %772, %773, %cst_438 {dimension_numbers = #tpu.dot_dimension_numbers<[1], [0], [0], [1], [0, 0, 1, 1], [], []>} : vector<2x192xf32>, vector<192x2xf32>, vector<2x2xf32> -> vector<2x2xf32>
    %c0_439 = arith.constant 0 : index
    %c0_440 = arith.constant 0 : index
    %775 = vector.load %arg33[%c0_439, %c0_440] : memref<1x2xf32, #tpu.memory_space<vmem>>, vector<1x2xf32>
    %776 = vector.broadcast %775 : vector<1x2xf32> to vector<2x2xf32>
    %777 = arith.addf %774, %776 : vector<2x2xf32>
    %c0_441 = arith.constant 0 : index
    %c0_442 = arith.constant 0 : index
    %778 = vector.load %arg34[%c0_441, %c0_442] : memref<2x1xf32, #tpu.memory_space<vmem>>, vector<2x1xf32>
    %cst_443 = arith.constant dense<0.000000e+00> : vector<2x1xf32>
    %779 = tpu.matmul %777, %778, %cst_443 {dimension_numbers = #tpu.dot_dimension_numbers<[1], [0], [0], [1], [0, 0, 1, 1], [], []>} : vector<2x2xf32>, vector<2x1xf32>, vector<2x1xf32> -> vector<2x1xf32>
    %c0_444 = arith.constant 0 : index
    %c0_445 = arith.constant 0 : index
    %780 = vector.load %arg35[%c0_444, %c0_445] : memref<1x1xf32, #tpu.memory_space<vmem>>, vector<1x1xf32>
    %781 = vector.broadcast %780 : vector<1x1xf32> to vector<2x1xf32>
    %782 = arith.addf %779, %781 : vector<2x1xf32>
    %783 = arith.mulf %606, %606 : vector<2x32xf32>
    %cst_446 = arith.constant dense<0.000000e+00> : vector<2xf32>
    %784 = vector.multi_reduction <add>, %783, %cst_446 [1] : vector<2x32xf32> to vector<2xf32>
    %785 = vector.shape_cast %784 : vector<2xf32> to vector<2x1xf32>
    %786 = math.sqrt %785 : vector<2x1xf32>
    %787 = arith.mulf %631, %631 : vector<2x32xf32>
    %cst_447 = arith.constant dense<0.000000e+00> : vector<2xf32>
    %788 = vector.multi_reduction <add>, %787, %cst_447 [1] : vector<2x32xf32> to vector<2xf32>
    %789 = vector.shape_cast %788 : vector<2xf32> to vector<2x1xf32>
    %790 = math.sqrt %789 : vector<2x1xf32>
    %cst_448 = arith.constant 9.99999996E-13 : f32
    %791 = vector.broadcast %cst_448 : f32 to vector<2x1xf32>
    %792 = arith.maximumf %786, %791 : vector<2x1xf32>
    %793 = vector.broadcast %792 : vector<2x1xf32> to vector<2x32xf32>
    %794 = arith.divf %606, %793 : vector<2x32xf32>
    %cst_449 = arith.constant 9.99999996E-13 : f32
    %795 = vector.broadcast %cst_449 : f32 to vector<2x1xf32>
    %796 = arith.maximumf %790, %795 : vector<2x1xf32>
    %797 = vector.broadcast %796 : vector<2x1xf32> to vector<2x32xf32>
    %798 = arith.divf %631, %797 : vector<2x32xf32>
    %799 = arith.mulf %606, %631 : vector<2x32xf32>
    %cst_450 = arith.constant dense<0.000000e+00> : vector<2xf32>
    %800 = vector.multi_reduction <add>, %799, %cst_450 [1] : vector<2x32xf32> to vector<2xf32>
    %801 = vector.shape_cast %800 : vector<2xf32> to vector<2x1xf32>
    %802 = arith.mulf %786, %790 : vector<2x1xf32>
    %cst_451 = arith.constant 9.99999993E-9 : f32
    %803 = vector.broadcast %cst_451 : f32 to vector<2x1xf32>
    %804 = arith.maximumf %802, %803 : vector<2x1xf32>
    %805 = arith.divf %801, %804 : vector<2x1xf32>
    %cst_452 = arith.constant 0.000000e+00 : f32
    %806 = vector.broadcast %cst_452 : f32 to vector<2x62xf32>
    %807 = tpu.concatenate %794, %798, %782, %805, %806 in 1 : vector<2x32xf32>, vector<2x32xf32>, vector<2x1xf32>, vector<2x1xf32>, vector<2x62xf32> -> vector<2x128xf32>
    %c0_453 = arith.constant 0 : index
    %c0_454 = arith.constant 0 : index
    %808 = vector.load %arg36[%c0_453, %c0_454] : memref<2x128xf32, #tpu.memory_space<vmem>>, vector<2x128xf32>
    tpu.vector_store %arg36[%c0_453, %c0_454], %807 {strides = array<i32>} : memref<2x128xf32, #tpu.memory_space<vmem>>, vector<2x128xf32>,
    return
  }
}

</mosaic_0001>

<bundles_post_ra>
// kernel: transformer_finernetwork_forward.1
= control target key start
LH: loop header
LB: loop body
LE: loop exit
PB: predicated region body
PF: predicated region fallthrough
CT: control target
= control target key end

     0   :  { %v9106_v0 = vmov 0.0|0.0   ;;  %s9107_s3 = smov 1   ;;  %vm187_vm0 = vcmask 523264   ;;  %s9108_s10 = smov 2   ;;  %vm276_vm1 = vcmask 1043456   ;;  %vm338_vm2 = vcmask 261120   ;;  %s10655_s0 = inlined_call_operand.smem [shape: u32[37], index: -1, kind: input, shape index: {}] }
   0x1   :  { %8483 = vmatprep.subr.bf16.mxu0 %v9106_v0  ;;  %s9158_s6 = sld [smem:[%s10655_s0 + %s9107_s3]]   ;;  %8519 = vmatprep.subr.bf16.mxu1 %v9106_v0  ;;  %s9109_s14 = smov 4   ;;  %vm345_vm3 = vcmask 257024   ;;  %vm9112_vm4 = vmmov 0   ;;  %vm681_vm5 = vcmask 64512   ;;  %vm786_vm15 = vcmask 162816  }
   0x2   :  { %s9167_s9 = sld [smem:[%s10655_s0]]   ;;  %s9110_s18 = smov 3   ;;  %vm9337_vm6 = vmpackc.low %vm681_vm5, %vm681_vm5 }
   0x3   :  { %s6868_s13 = sld [smem:[%s10655_s0 + %s9108_s10]]   ;;  %s9111_s22 = smov 7  }
   0x4   :  { %s6870_s17 = sld [smem:[%s10655_s0 + %s9109_s14]]   ;;  %s9114_s26 = smov 5  }
   0x5   :  { %s6869_s21 = sld [smem:[%s10655_s0 + %s9110_s18]]   ;;  %s9115_s30 = smov 8  }
   0x6   :  { %s9241_s25 = sld [smem:[%s10655_s0 + %s9111_s22]]   ;;  %s9116_s4 = smov 6  }
   0x7   :  { %v156_v1 = vld [vmem:[%s9158_s6] sm:$0xff]  ;;  %v157_v2 = vld [vmem:[%s9158_s6 + $0x8] sm:$0xff]  ;;  %v158_v3 = vld [vmem:[%s9158_s6 + $0x10] sm:$0xff]  ;;  %s9256_s29 = sld [smem:[%s10655_s0 + %s9114_s26]]   ;;  %s9117_s8 = smov 9  }
   0x8   :  { %v8484_v4 = vpack.c.bf16 %v157_v2, %v156_v1  ;;  %v159_v5 = vld [vmem:[%s9158_s6 + $0x18] sm:$0xff]  ;;  %v160_v7 = vld [vmem:[%s9158_s6 + $0x20] sm:$0xff]  ;;  %v161_v8 = vld [vmem:[%s9158_s6 + $0x28] sm:$0xff]  ;;  %s9261_s3 = sld [smem:[%s10655_s0 + %s9115_s30]]   ;;  %s9118_s12 = smov 11  }
   0x9   :  { %v8487_v6 = vpack.c.bf16 %v159_v5, %v158_v3  ;;  %v8490_v9 = vpack.c.bf16 %v161_v8, %v160_v7  ;;  %v162_v10 = vld [vmem:[%s9158_s6 + $0x30] sm:$0xff]  ;;  %v163_v11 = vld [vmem:[%s9158_s6 + $0x38] sm:$0xff]  ;;  %v153_v12 = vld [vmem:[%s9167_s9 + $0x8] sm:$0xff]  ;;  %s9266_s7 = sld [smem:[%s10655_s0 + %s9116_s4]]   ;;  %s9119_s16 = smov 12  }
   0xa   :  { %8485 = vmatpush1.bf16.msra.mxu0 %v8484_v4  ;;  %6904 = vmatprep.mubr.msk.f32.mxu0 %vm187_vm0, %v153_v12  ;;  %v8493_v13 = vpack.c.bf16 %v163_v11, %v162_v10  ;;  %v164_v14 = vld [vmem:[%s9158_s6 + $0x40] sm:$0xff]  ;;  %v165_v15 = vld [vmem:[%s9158_s6 + $0x48] sm:$0xff]  ;;  %v166_v17 = vld [vmem:[%s9158_s6 + $0x50] sm:$0xff]  ;;  %s9279_s11 = sld [smem:[%s10655_s0 + %s9117_s8]]   ;;  %s9120_s20 = smov 10  }
   0xb   :  { %8486 = vmatprep.subr.bf16.mxu0 %v9106_v0  ;;  %v8496_v16 = vpack.c.bf16 %v165_v15, %v164_v14  ;;  %v167_v18 = vld [vmem:[%s9158_s6 + $0x58] sm:$0xff]  ;;  %v168_v20 = vld [vmem:[%s9158_s6 + $0x60] sm:$0xff]  ;;  %v169_v21 = vld [vmem:[%s9158_s6 + $0x68] sm:$0xff]  ;;  %s9332_s15 = sld [smem:[%s10655_s0 + %s9118_s12]]   ;;  %s9123_s24 = smov 13  }
   0xc   :  { %v8499_v19 = vpack.c.bf16 %v167_v18, %v166_v17  ;;  %v8502_v22 = vpack.c.bf16 %v169_v21, %v168_v20  ;;  %v170_v23 = vld [vmem:[%s9158_s6 + $0x70] sm:$0xff]  ;;  %v171_v24 = vld [vmem:[%s9158_s6 + $0x78] sm:$0xff]  ;;  %v172_v26 = vld [vmem:[%s9158_s6 + $0x80] sm:$0xff]  ;;  %v9113_v18 = vmov 0.0   ;;  %s9344_s19 = sld [smem:[%s10655_s0 + %s9119_s16]]   ;;  %s9124_s30 = smov 14  }
   0xd   :  { %v8505_v25 = vpack.c.bf16 %v171_v24, %v170_v23  ;;  %v173_v27 = vld [vmem:[%s9158_s6 + $0x88] sm:$0xff]  ;;  %v174_v29 = vld [vmem:[%s9158_s6 + $0x90] sm:$0xff]  ;;  %v175_v30 = vld [vmem:[%s9158_s6 + $0x98] sm:$0xff]  ;;  %7634 = vmatprep.mubr.msk.f32.mxu1 %vm9112_vm4, %v9113_v18  ;;  %s9349_s23 = sld [smem:[%s10655_s0 + %s9120_s20]]   ;;  %s9125_s5 = smov 17  }
   0xe   :  { %8488 = vmatpush1.bf16.msra.mxu0 %v8487_v6  ;;  %v8508_v28 = vpack.c.bf16 %v173_v27, %v172_v26  ;;  %v8511_v31 = vpack.c.bf16 %v175_v30, %v174_v29  ;;  %v176_v32 = vld [vmem:[%s9158_s6 + $0xa0] sm:$0xff]  ;;  %v177_v33 = vld [vmem:[%s9158_s6 + $0xa8] sm:$0xff]  ;;  %v178_v35 = vld [vmem:[%s9158_s6 + $0xb0] sm:$0xff]  ;;  %s9393_s28 = sld [smem:[%s10655_s0 + %s9123_s24]]   ;;  %s9126_s10 = smov 15  }
   0xf   :  { %8489 = vmatprep.subr.bf16.mxu0 %v9106_v0  ;;  %v8514_v34 = vpack.c.bf16 %v177_v33, %v176_v32  ;;  %v179_v36 = vld [vmem:[%s9158_s6 + $0xb8] sm:$0xff]  ;;  %v152_v38 = vld [vmem:[%s9167_s9] sm:$0xff]  ;;  %v154_v40 = vld [vmem:[%s9167_s9 + $0x10] sm:$0xff]  ;;  %s9585_s4 = sld [smem:[%s10655_s0 + %s9124_s30]]   ;;  %s9127_s16 = smov 16  }
  0x10   :  { %v8517_v37 = vpack.c.bf16 %v179_v36, %v178_v35  ;;  %v155_v39 = vld [vmem:[%s9167_s9 + $0x18] sm:$0xff]  ;;  %v6903_v41 = vld [vmem:[%s6868_s13] ss:$0 sm:$0xff]  ;;  %v270_v48 = vld [vmem:[%s6870_s17 + $0x8] sm:$0xff]  ;;  %s9781_s9 = sld [smem:[%s10655_s0 + %s9125_s5]]   ;;  %s9129_s27 = smov 18  }
  0x11   :  { %v269_v43 = vld [vmem:[%s6870_s17] sm:$0xff]  ;;  %v401_v15 = vld [vmem:[%s9241_s25 + $0x10] sm:$0xff]  ;;  %v500_v32 = vld [vmem:[%s9261_s3 + $0x8] sm:$0xff]  ;;  %s9792_s14 = sld [smem:[%s10655_s0 + %s9126_s10]]   ;;  %s9130_s5 = smov 20  }
  0x12   :  { %8491 = vmatpush1.bf16.msra.mxu0 %v8490_v9  ;;  %v273_v49 = vld [vmem:[%s6869_s21] sm:$0xf]  ;;  %s9797_s20 = sld [smem:[%s10655_s0 + %s9127_s16]]   ;;  %s9128_s21 = smov 19  }
  0x13   :  { %8492 = vmatprep.subr.bf16.mxu0 %v9106_v0  ;;  %v399_v12 = vld [vmem:[%s9241_s25] sm:$0xff]  ;;  %s9813_s26 = sld [smem:[%s10655_s0 + %s9128_s21]]   ;;  %s9134_s13 = smov 22  }
  0x14   :  { %v6907_v29 = vld [vmem:[%s9256_s29] ss:$0 sm:$0xff]  ;;  %s9842_s2 = sld [smem:[%s10655_s0 + %s9129_s27]]   ;;  %s9135_s18 = smov 28  }
  0x15   :  { %v6908_v33 = vld [vmem:[%s9266_s7] ss:$0 sm:$0xff]  ;;  %s9878_s10 = sld [smem:[%s10655_s0 + %s9130_s5]]   ;;  %s9136_s24 = smov 32  }
  0x16   :  { %8494 = vmatpush1.bf16.msra.mxu0 %v8493_v13  ;;  %v400_v13 = vld [vmem:[%s9241_s25 + $0x8] sm:$0xff]  ;;  %s6888_s17 = sld [smem:[%s10655_s0 + %s9134_s13]]   ;;  %s9138_s27 = smov 25  }
  0x17   :  { %8495 = vmatprep.subr.bf16.mxu0 %v9106_v0  ;;  %v8520_v14 = vpack.c.bf16 %v400_v13, %v399_v12  ;;  %v6917_v13 = vld [vmem:[%s9344_s19] ss:$0 sm:$0xff]  ;;  %s10493_s22 = sld [smem:[%s10655_s0 + %s9135_s18]]   ;;  %s9139_s5 = smov 26  }
  0x18   :  { %s9145_s30 = smov 35   ;;  %s9146_s6 = smov 33  }
  0x19   :  { %8521 = vmatpush3.bf16.msra.mxu1 %v8520_v14  ;;  %v6909_v14 = vld [vmem:[%s9349_s23] ss:$0 sm:$0xff] }
  0x1a   :  { %8497 = vmatpush1.bf16.msra.mxu0 %v8496_v16  ;;  %8522 = vmatprep.subr.bf16.mxu1 %v9106_v0  ;;  %v402_v16 = vld [vmem:[%s9241_s25 + $0x18] sm:$0xff] }
  0x1b   :  { %8498 = vmatprep.subr.bf16.mxu0 %v9106_v0  ;;  %v8523_v17 = vpack.c.bf16 %v402_v16, %v401_v15 }
  0x1d   :  { %8524 = vmatpush3.bf16.msra.mxu1 %v8523_v17 }
  0x1e   :  { %8500 = vmatpush1.bf16.msra.mxu0 %v8499_v19  ;;  %8525 = vmatprep.subr.bf16.mxu1 %v9106_v0 }
  0x1f   :  { %8501 = vmatprep.subr.bf16.mxu0 %v9106_v0 }
  0x22   :  { %8503 = vmatpush1.bf16.msra.mxu0 %v8502_v22 }
  0x23   :  { %8504 = vmatprep.subr.bf16.mxu0 %v9106_v0 }
  0x26   :  { %8506 = vmatpush1.bf16.msra.mxu0 %v8505_v25 }
  0x27   :  { %8507 = vmatprep.subr.bf16.mxu0 %v9106_v0 }
  0x2a   :  { %8509 = vmatpush1.bf16.msra.mxu0 %v8508_v28 }
  0x2b   :  { %8510 = vmatprep.subr.bf16.mxu0 %v9106_v0 }
  0x2e   :  { %8512 = vmatpush1.bf16.msra.mxu0 %v8511_v31  ;;  %v499_v31 = vld [vmem:[%s9261_s3] sm:$0xff] }
  0x2f   :  { %8513 = vmatprep.subr.bf16.mxu0 %v9106_v0  ;;  %v8526_v36 = vpack.c.bf16 %v500_v32, %v499_v31  ;;  %v9121_v31 = vmov 0  }
  0x32   :  { %8515 = vmatpush1.bf16.msra.mxu0 %v8514_v34 }
  0x33   :  { %8516 = vmatprep.subr.bf16.mxu0 %v9106_v0 }
  0x36   :  { %8518 = vmatpush1.bf16.msra.mxu0 %v8517_v37 }
  0x37   :  { %8541 = vmatprep.subr.bf16.mxu0 %v9106_v0 }
  0x39   :  { %259 = vmatmul.mubr.f32.vlgmr.msra.gmra.mrb[0].mxu0 %v152_v38 }
  0x3a   :  { %6905 = vmatprep.mubr.msk.f32.mxu0 %vm187_vm0, %v155_v39 }
  0x3d   :  { %264 = vmatmul.mubr.f32.gmra.mrb[2].mxu0 %v154_v40 }
  0x3e   :  { %7698 = vmatprep.mubr.msk.f32.mxu0 %vm9112_vm4, %v9113_v18 }
 0x10c   :  { %v260_v42 = vpop.f32.mrb[0].mxu0 }
 0x10d   :  { %v261_v44 = vadd.f32 %v6903_v41, %v260_v42  ;;  %v262_v45 = vpop.f32.mrb[1].mxu0  ;;  %v502_v42 = vld [vmem:[%s9261_s3 + $0x18] sm:$0xff] }
 0x10f   :  { %v271_v46 = vadd.f32 %v269_v43, %v261_v44 }
 0x110   :  { %v265_v47 = vpop.f32.mrb[2].mxu0 }
 0x111   :  { %v277_v50 = vrot.slane %v271_v46, 4  ;;  %v266_v51 = vadd.f32 %v6903_v41, %v265_v47  ;;  %v267_v52 = vpop.f32.mrb[3].mxu0  ;;  %v501_v41 = vld [vmem:[%s9261_s3 + $0x10] sm:$0xff] }
 0x112   :  { %v8529_v44 = vpack.c.bf16 %v502_v42, %v501_v41  ;;  %v593_v52 = vld [vmem:[%s9279_s11 + $0x18] sm:$0xff] }
 0x113   :  { %v272_v53 = vadd.f32 %v270_v48, %v266_v51  ;;  %v9218_v54 = vsel %vm276_vm1, %v273_v49, %v277_v50  ;;  %v590_v48 = vld [vmem:[%s9279_s11] sm:$0xff]  ;;  %v591_v49 = vld [vmem:[%s9279_s11 + $0x8] sm:$0xff]  ;;  %v592_v51 = vld [vmem:[%s9279_s11 + $0x10] sm:$0xff] }
 0x114   :  { %v339_v55 = vsel %vm338_vm2, %v9218_v54, 0.0 }
 0x115   :  { %v9222_v56 = vrot.slane %v272_v53, 4  ;;  %340 = vadd.xlane.f32.xlu0 %v339_v55  ;;  %v8535_v53 = vpack.c.bf16 %v593_v52, %v592_v51 }
 0x117   :  { %v346_v57 = vsel %vm345_vm3, %v9222_v56, 0.0  ;;  %v9228_v58 = vsel %vm276_vm1, %v277_v50, %v9222_v56  ;;  %v8532_v50 = vpack.c.bf16 %v591_v49, %v590_v48 }
 0x118   :  { %347 = vadd.xlane.f32.xlu1 %v346_v57  ;;  %v342_v59 = vsel %vm338_vm2, %v9228_v58, 0.0 }
 0x119   :  { %343 = vadd.xlane.f32.xlu0 %v342_v59 }
 0x1a2   :  { %v341_v60 = vpop.xlane.xlu0 %340 }
 0x1a3   :  { %v350_v61 = vmul.f32 0.03125, %v341_v60 }
 0x1a5   :  { %v353_v62 = vsub.f32 %v9218_v54, %v350_v61  ;;  %v348_v63 = vpop.xlane.xlu1 %347 }
 0x1a6   :  { %v352_v1 = vmul.f32 0.03125, %v348_v63  ;;  %v344_v2 = vpop.xlane.xlu0 %343 }
 0x1a7   :  { %v351_v3 = vmul.f32 0.03125, %v344_v2  ;;  %v356_v4 = vmul.f32 %v353_v62, %v353_v62  ;;  %v6913_v2 = vld [vmem:[%s9332_s15] ss:$0 sm:$0xff] }
 0x1a8   :  { %v355_v5 = vsub.f32 %v9222_v56, %v352_v1 }
 0x1a9   :  { %v354_v6 = vsub.f32 %v9228_v58, %v351_v3  ;;  %v359_v7 = vsel %vm338_vm2, %v356_v4, 0.0 }
 0x1aa   :  { %360 = vadd.xlane.f32.xlu1 %v359_v7  ;;  %v358_v8 = vmul.f32 %v355_v5, %v355_v5 }
 0x1ab   :  { %v357_v9 = vmul.f32 %v354_v6, %v354_v6 }
 0x1ac   :  { %v365_v10 = vsel %vm345_vm3, %v358_v8, 0.0 }
 0x1ad   :  { %v362_v11 = vsel %vm338_vm2, %v357_v9, 0.0 }
 0x1ae   :  { %366 = vadd.xlane.f32.xlu1 %v365_v10  ;;  %363 = vadd.xlane.f32.xlu0 %v362_v11 }
 0x237   :  { %v361_v19 = vpop.xlane.xlu1 %360 }
 0x238   :  { %v368_v20 = vmul.f32 0.03125, %v361_v19 }
 0x23a   :  { %v371_v21 = vadd.f32 1e-06, %v368_v20 }
 0x23b   :  { %v367_v22 = vpop.xlane.xlu1 %366  ;;  %v364_v23 = vpop.xlane.xlu0 %363 }
 0x23c   :  { %8924 = vrsqrt.f32 %v371_v21  ;;  %v370_v24 = vmul.f32 0.03125, %v367_v22  ;;  %v369_v25 = vmul.f32 0.03125, %v364_v23 }
 0x23e   :  { %v373_v26 = vadd.f32 1e-06, %v370_v24  ;;  %v372_v27 = vadd.f32 1e-06, %v369_v25 }
 0x240   :  { %8926 = vrsqrt.f32 %v373_v26 }
 0x241   :  { %8928 = vrsqrt.f32 %v372_v27 }
 0x246   :  { %v8925_v28 = vpop.eup %8924 }
 0x247   :  { %v377_v30 = vmul.f32 %v8925_v28, %v353_v62  ;;  %v284_v28 = vlaneseq }
 0x249   :  { %v386_v34 = vmul.f32 %v6907_v29, %v377_v30  ;;  %v9370_v30 = vshrl.u32 %v284_v28, 7 }
 0x24a   :  { %v8927_v35 = vpop.eup %8926 }
 0x24b   :  { %v8929_v37 = vpop.eup %8928  ;;  %v9272_v38 = vadd.f32 %v6908_v33, %v386_v34  ;;  %v379_v39 = vmul.f32 %v8927_v35, %v355_v5  ;;  %vm314_vm10 = vcmp.lt.s32.totalorder %v9370_v30, 4 }
 0x24c   :  { %v378_v40 = vmul.f32 %v8929_v37, %v354_v6 }
 0x24d   :  { %7635 = vmatmul.mubr.msk.f32.vlgmr.msra.gmra.mrb[0].mxu1 %vm338_vm2, %v9272_v38  ;;  %v388_v45 = vmul.f32 %v6907_v29, %v379_v39  ;;  %v317_v39 = vsel %vm314_vm10, %v9370_v30, 0 }
 0x24e   :  { %v387_v43 = vmul.f32 %v6907_v29, %v378_v40  ;;  %7637 = vmatprep.mubr.msk.f32.mxu1 %vm9112_vm4, %v9113_v18  ;;  %8527 = vmatpush3.bf16.msra.mxu1 %v8526_v36  ;;  %v289_v29 = vand.u32 127, %v284_v28  ;;  %v286_v36 = vadd.s32 8, %v9370_v30 }
 0x24f   :  { %8528 = vmatprep.subr.bf16.mxu1 %v9106_v0  ;;  %v9292_v47 = vadd.f32 %v6908_v33, %v388_v45 }
 0x250   :  { %v9286_v46 = vadd.f32 %v6908_v33, %v387_v43  ;;  %vm320_vm7 = vcmp.ge.s32.totalorder %v289_v29, 8  ;;  %vm322_vm8 = vcmp.ge.s32.totalorder %v289_v29, 12  ;;  %vm325_vm9 = vcmp.ge.s32.totalorder %v289_v29, 16 }
 0x251   :  { %v321_v32 = vsel %vm320_vm7, 1, %v9121_v31  ;;  %v323_v33 = vsel %vm322_vm8, 1, %v9121_v31  ;;  %v326_v35 = vsel %vm325_vm9, 1, %v9121_v31  ;;  %vm328_vm11 = vcmp.lt.s32.totalorder %v289_v29, 4 }
 0x252   :  { %7638 = vmatmul.mubr.msk.f32.gmra.mrb[2].mxu1 %vm338_vm2, %v9286_v46  ;;  %v324_v34 = vadd.s32 %v323_v33, %v321_v32  ;;  %vm297_vm12 = vcmp.ge.s32.totalorder %v286_v36, 12  ;;  %vm793_vm8 = vcmask 158720   ;;  %v6938_v32 = vld [vmem:[%s9241_s25 + $0x38] sm:$0xff] }
 0x253   :  { %7640 = vmatprep.mubr.msk.f32.mxu1 %vm9112_vm4, %v9113_v18  ;;  %8530 = vmatpush3.bf16.msra.mxu1 %v8529_v44  ;;  %v300_v41 = vsel %vm297_vm12, 1, %v9121_v31  ;;  %v9122_v44 = vmov -1e+30   ;;  %v6937_v31 = vld [vmem:[%s9241_s25 + $0x30] sm:$0xff] }
 0x254   :  { %8531 = vmatprep.subr.bf16.mxu1 %v9106_v0  ;;  %v327_v37 = vadd.s32 %v326_v35, %v324_v34  ;;  %v303_v42 = vadd.s32 1, %v300_v41  ;;  %v8548_v34 = vpack.c.bf16 %v6938_v32, %v6937_v31 }
 0x256   :  { %7641 = vmatmul.mubr.msk.f32.gmra.mrb[4].mxu1 %vm338_vm2, %v9292_v47  ;;  %v329_v40 = vsel %vm328_vm11, %v289_v29, %v327_v37 }
 0x257   :  { %7651 = vmatprep.mubr.msk.f32.mxu1 %vm9112_vm4, %v9113_v18  ;;  %vm330_vm13 = vcmp.eq.s32.totalorder %v317_v39, %v329_v40  ;;  %vm331_vm14 = vcmp.eq.s32.totalorder %v303_v42, %v329_v40  ;;  %vm6906_vm7 = vcmp.eq.s32.totalorder %v329_v40, 3  ;;  %v6953_v39 = vld [vmem:[%s9279_s11 + $0x20] sm:$0xff]  ;;  %v6954_v40 = vld [vmem:[%s9279_s11 + $0x28] sm:$0xff]  ;;  %v6955_v42 = vld [vmem:[%s9279_s11 + $0x30] sm:$0xff] }
 0x258   :  { %v9375_v45 = vsel %vm330_vm13, 0.0, %v9122_v44  ;;  %v9378_v52 = vsel %vm331_vm14, 0.0, %v9122_v44  ;;  %v8557_v41 = vpack.c.bf16 %v6954_v40, %v6953_v39  ;;  %v6940_v39 = vld [vmem:[%s9349_s23 + $0x1] ss:$0 sm:$0xff] }
 0x25a   :  { %7652 = vmatmul.mubr.msk.f32.vlgmr.msra.gmra.mrb[6].mxu1 %vm338_vm2, %v9272_v38 }
 0x25b   :  { %7654 = vmatprep.mubr.msk.f32.mxu1 %vm9112_vm4, %v9113_v18  ;;  %8533 = vmatpush3.bf16.msra.mxu1 %v8532_v50 }
 0x25c   :  { %8534 = vmatprep.subr.bf16.mxu1 %v9106_v0 }
 0x25e   :  { %7655 = vmatmul.mubr.msk.f32.gmra.mrb[8].mxu1 %vm338_vm2, %v9286_v46 }
 0x25f   :  { %7657 = vmatprep.mubr.msk.f32.mxu1 %vm9112_vm4, %v9113_v18  ;;  %8536 = vmatpush3.bf16.msra.mxu1 %v8535_v53 }
 0x260   :  { %8537 = vmatprep.subr.bf16.mxu1 %v9106_v0 }
 0x262   :  { %7658 = vmatmul.mubr.msk.f32.gmra.mrb[10].mxu1 %vm338_vm2, %v9292_v47 }
 0x263   :  { %7668 = vmatprep.mubr.msk.f32.mxu1 %vm9112_vm4, %v9113_v18 }
 0x266   :  { %7669 = vmatmul.mubr.msk.f32.vlgmr.msra.gmra.mrb[12].mxu1 %vm338_vm2, %v9272_v38 }
 0x267   :  { %7671 = vmatprep.mubr.msk.f32.mxu1 %vm9112_vm4, %v9113_v18 }
 0x26a   :  { %7672 = vmatmul.mubr.msk.f32.gmra.mrb[14].mxu1 %vm338_vm2, %v9286_v46 }
 0x26b   :  { %7674 = vmatprep.mubr.msk.f32.mxu1 %vm9112_vm4, %v9113_v18 }
 0x26e   :  { %7675 = vmatmul.mubr.msk.f32.gmra.mrb[16].mxu1 %vm338_vm2, %v9292_v47 }
 0x26f   :  { %7683 = vmatprep.mubr.msk.f32.mxu1 %vm9112_vm4, %v9113_v18 }
 0x320   :  { %v485_v55 = vpop.f32.mrb[0].mxu1 }
 0x321   :  { %v7636_v57 = vpop.f32.mrb[1].mxu1  ;;  %v486_v21 = vadd.f32 %v6909_v14, %v485_v55 }
 0x325   :  { %v490_v59 = vpop.f32.mrb[2].mxu1 }
 0x326   :  { %v7639_v60 = vpop.f32.mrb[3].mxu1  ;;  %v491_v25 = vadd.f32 %v6909_v14, %v490_v59 }
 0x329   :  { %v495_v61 = vpop.f32.mrb[4].mxu1 }
 0x32a   :  { %v7642_v62 = vpop.f32.mrb[5].mxu1  ;;  %v496_v27 = vadd.f32 %v6909_v14, %v495_v61  ;;  %v9382_v61 = vsel %vm6906_vm7, 0.0, %v9122_v44 }
 0x32d   :  { %v576_v63 = vpop.f32.mrb[6].mxu1 }
 0x32e   :  { %v7653_v1 = vpop.f32.mrb[7].mxu1  ;;  %v577_v4 = vadd.f32 %v6913_v2, %v576_v63 }
 0x331   :  { %v581_v3 = vpop.f32.mrb[8].mxu1 }
 0x332   :  { %v582_v5 = vadd.f32 %v6913_v2, %v581_v3  ;;  %v7656_v6 = vpop.f32.mrb[9].mxu1 }
 0x334   :  { %v8538_v8 = vpack.c.bf16 %v582_v5, %v577_v4 }
 0x335   :  { %v586_v9 = vpop.f32.mrb[10].mxu1 }
 0x336   :  { %v7659_v10 = vpop.f32.mrb[11].mxu1  ;;  %8540 = vmatpush3.bf16.xpose.msk.msra.mxu1 %vm9337_vm6, %v8538_v8  ;;  %v587_v15 = vadd.f32 %v6913_v2, %v586_v9 }
 0x337   :  { %7681 = vmatprep.subr.mxu1 %v9113_v18 }
 0x339   :  { %v667_v11 = vpop.f32.mrb[12].mxu1 }
 0x33a   :  { %v7670_v12 = vpop.f32.mrb[13].mxu1  ;;  %v668_v17 = vadd.f32 %v6917_v13, %v667_v11 }
 0x33d   :  { %v672_v16 = vpop.f32.mrb[14].mxu1 }
 0x33e   :  { %v673_v19 = vadd.f32 %v6917_v13, %v672_v16  ;;  %v7673_v20 = vpop.f32.mrb[15].mxu1  ;;  %7682 = vmatpush3.xpose.msk.msra.mxu1 %vm681_vm5, %v587_v15 }
 0x33f   :  { %7707 = vmatprep.subr.mxu1 %v9113_v18 }
 0x340   :  { %v8542_v22 = vpack.c.bf16 %v673_v19, %v668_v17 }
 0x341   :  { %v677_v23 = vpop.f32.mrb[16].mxu1  ;;  %7684 = vmatmul.mubr.msk.f32.vlgmr.msra.gmra.mrb[18].mxu1 %vm681_vm5, %v486_v21  ;;  %v913_v21 = vld [vmem:[%s9393_s28] sm:$0xff] }
 0x342   :  { %v7676_v24 = vpop.f32.mrb[17].mxu1  ;;  %8543 = vmatpush3.bf16.msra.mxu0 %v8542_v22  ;;  %7686 = vmatprep.mubr.msk.f32.mxu1 %vm9112_vm4, %v9113_v18  ;;  %v678_v26 = vadd.f32 %v6917_v13, %v677_v23 }
 0x343   :  { %7696 = vmatprep.subr.mxu0 %v9113_v18  ;;  %7708 = vmatpush3.msra.mxu1 %v913_v21 }
 0x344   :  { %8550 = vmatprep.subr.bf16.mxu1 %v9106_v0 }
 0x345   :  { %7687 = vmatmul.mubr.msk.f32.gmra.mrb[20].mxu1 %vm681_vm5, %v491_v25  ;;  %v6935_v25 = vld [vmem:[%s9241_s25 + $0x20] sm:$0xff] }
 0x346   :  { %7697 = vmatpush3.msk.msra.mxu0 %vm276_vm1, %v678_v26  ;;  %7689 = vmatprep.mubr.msk.f32.mxu1 %vm9112_vm4, %v9113_v18  ;;  %v6936_v26 = vld [vmem:[%s9241_s25 + $0x28] sm:$0xff] }
 0x347   :  { %8544 = vmatprep.subr.bf16.mxu0 %v9106_v0  ;;  %v8545_v28 = vpack.c.bf16 %v6936_v26, %v6935_v25 }
 0x349   :  { %7690 = vmatmul.mubr.msk.f32.gmra.mrb[22].mxu1 %vm681_vm5, %v496_v27 }
 0x34a   :  { %7709 = vmatprep.mubr.msk.f32.mxu1 %vm9112_vm4, %v9113_v18 }
 0x414   :  { %v766_v43 = vpop.f32.mrb[18].mxu1 }
 0x415   :  { %v780_v48 = vmul.f32 0.35355338, %v766_v43  ;;  %v7685_v49 = vpop.f32.mrb[19].mxu1  ;;  %v6956_v43 = vld [vmem:[%s9279_s11 + $0x38] sm:$0xff] }
 0x416   :  { %v8560_v44 = vpack.c.bf16 %v6956_v43, %v6955_v42  ;;  %v6945_v49 = vld [vmem:[%s9261_s3 + $0x28] sm:$0xff] }
 0x417   :  { %v783_v50 = vadd.f32 %v780_v48, %v9375_v45  ;;  %v6944_v48 = vld [vmem:[%s9261_s3 + $0x20] sm:$0xff] }
 0x418   :  { %v771_v51 = vpop.f32.mrb[20].mxu1 }
 0x419   :  { %v781_v53 = vmul.f32 0.35355338, %v771_v51  ;;  %v7688_v55 = vpop.f32.mrb[21].mxu1  ;;  %v787_v57 = vsel %vm786_vm15, %v783_v50, -inf  ;;  %v6946_v51 = vld [vmem:[%s9261_s3 + $0x30] sm:$0xff] }
 0x41a   :  { %788 = vmax.xlane.f32.xlu0 %v787_v57 }
 0x41b   :  { %v784_v59 = vadd.f32 %v781_v53, %v9378_v52  ;;  %v6947_v53 = vld [vmem:[%s9261_s3 + $0x38] sm:$0xff] }
 0x41c   :  { %v776_v60 = vpop.f32.mrb[22].mxu1 }
 0x41d   :  { %v782_v62 = vmul.f32 0.35355338, %v776_v60  ;;  %v7691_v63 = vpop.f32.mrb[23].mxu1  ;;  %v790_v1 = vsel %vm786_vm15, %v784_v59, -inf }
 0x41e   :  { %791 = vmax.xlane.f32.xlu1 %v790_v1 }
 0x41f   :  { %v785_v2 = vadd.f32 %v782_v62, %v9382_v61 }
 0x421   :  { %v794_v3 = vsel %vm793_vm8, %v785_v2, -inf }
 0x422   :  { %795 = vmax.xlane.f32.xlu0 %v794_v3 }
 0x4a7   :  { %v789_v4 = vpop.xlane.xlu0 %788 }
 0x4a8   :  { %v797_v5 = vsub.f32 %v783_v50, %v789_v4  ;;  %v8551_v50 = vpack.c.bf16 %v6945_v49, %v6944_v48 }
 0x4aa   :  { %v800_v6 = vmul.f32 1.442695, %v797_v5 }
 0x4ab   :  { %v792_v8 = vpop.xlane.xlu1 %791 }
 0x4ac   :  { %8930 = vpow2.f32 %v800_v6  ;;  %v798_v9 = vsub.f32 %v784_v59, %v792_v8  ;;  %v8554_v59 = vpack.c.bf16 %v6947_v53, %v6946_v51 }
 0x4ae   :  { %v802_v10 = vmul.f32 1.442695, %v798_v9 }
 0x4af   :  { %v796_v11 = vpop.xlane.xlu0 %795 }
 0x4b0   :  { %8932 = vpow2.f32 %v802_v10  ;;  %v799_v12 = vsub.f32 %v785_v2, %v796_v11  ;;  %v6958_v11 = vld [vmem:[%s9344_s19 + $0x1] ss:$0 sm:$0xff] }
 0x4b2   :  { %v804_v13 = vmul.f32 1.442695, %v799_v12 }
 0x4b4   :  { %8934 = vpow2.f32 %v804_v13 }
 0x4b6   :  { %v8931_v14 = vpop.eup %8930 }
 0x4b7   :  { %v806_v15 = vsel %vm786_vm15, %v8931_v14, 0.0 }
 0x4b8   :  { %807 = vadd.xlane.f32.xlu1 %v806_v15 }
 0x4ba   :  { %v8933_v16 = vpop.eup %8932 }
 0x4bb   :  { %v809_v17 = vsel %vm786_vm15, %v8933_v16, 0.0 }
 0x4bc   :  { %810 = vadd.xlane.f32.xlu0 %v809_v17 }
 0x4be   :  { %v8935_v19 = vpop.eup %8934 }
 0x4bf   :  { %v812_v20 = vsel %vm793_vm8, %v8935_v19, 0.0 }
 0x4c0   :  { %813 = vadd.xlane.f32.xlu1 %v812_v20 }
 0x545   :  { %v808_v22 = vpop.xlane.xlu1 %807 }
 0x546   :  { %8936 = vrcp.f32 %v808_v22 }
 0x549   :  { %v811_v23 = vpop.xlane.xlu0 %810 }
 0x54a   :  { %8938 = vrcp.f32 %v811_v23 }
 0x54d   :  { %v814_v24 = vpop.xlane.xlu1 %813 }
 0x54e   :  { %8940 = vrcp.f32 %v814_v24 }
 0x550   :  { %v8937_v27 = vpop.eup %8936 }
 0x551   :  { %v816_v29 = vmul.f32 %v8937_v27, %v8931_v14 }
 0x553   :  { %7699 = vmatmul.mubr.msk.f32.vlgmr.msra.gmra.mrb[4].mxu0 %vm786_vm15, %v816_v29  ;;  %v6949_v29 = vld [vmem:[%s9332_s15 + $0x1] ss:$0 sm:$0xff] }
 0x554   :  { %v8939_v33 = vpop.eup %8938  ;;  %7701 = vmatprep.mubr.msk.f32.mxu0 %vm9112_vm4, %v9113_v18  ;;  %8546 = vmatpush3.bf16.msra.mxu0 %v8545_v28 }
 0x555   :  { %v818_v35 = vmul.f32 %v8939_v33, %v8933_v16  ;;  %8547 = vmatprep.subr.bf16.mxu0 %v9106_v0 }
 0x557   :  { %7702 = vmatmul.mubr.msk.f32.gmra.mrb[6].mxu0 %vm786_vm15, %v818_v35 }
 0x558   :  { %v8941_v36 = vpop.eup %8940  ;;  %7704 = vmatprep.mubr.msk.f32.mxu0 %vm9112_vm4, %v9113_v18  ;;  %8549 = vmatpush3.bf16.msra.mxu0 %v8548_v34 }
 0x559   :  { %v820_v37 = vmul.f32 %v8941_v36, %v8935_v19  ;;  %8556 = vmatprep.subr.bf16.mxu0 %v9106_v0 }
 0x55b   :  { %7705 = vmatmul.mubr.msk.f32.gmra.mrb[8].mxu0 %vm786_vm15, %v820_v37 }
 0x55c   :  { %7726 = vmatprep.mubr.msk.f32.mxu0 %vm9112_vm4, %v9113_v18 }
 0x55f   :  { %7727 = vmatmul.mubr.msk.f32.vlgmr.msra.gmra.mrb[10].mxu0 %vm338_vm2, %v9272_v38 }
 0x560   :  { %7729 = vmatprep.mubr.msk.f32.mxu0 %vm9112_vm4, %v9113_v18  ;;  %8558 = vmatpush3.bf16.msra.mxu0 %v8557_v41 }
 0x561   :  { %8559 = vmatprep.subr.bf16.mxu0 %v9106_v0 }
 0x563   :  { %7730 = vmatmul.mubr.msk.f32.gmra.mrb[12].mxu0 %vm338_vm2, %v9286_v46 }
 0x564   :  { %7732 = vmatprep.mubr.msk.f32.mxu0 %vm9112_vm4, %v9113_v18  ;;  %8561 = vmatpush3.bf16.msra.mxu0 %v8560_v44 }
 0x565   :  { %8566 = vmatprep.subr.bf16.mxu0 %v9106_v0 }
 0x567   :  { %7733 = vmatmul.mubr.msk.f32.gmra.mrb[14].mxu0 %vm338_vm2, %v9292_v47 }
 0x568   :  { %7760 = vmatprep.mubr.msk.f32.mxu0 %vm9112_vm4, %v9113_v18 }
 0x56b   :  { %7761 = vmatmul.mubr.msk.f32.vlgmr.msra.gmra.mrb[16].mxu0 %vm338_vm2, %v9272_v38 }
 0x56c   :  { %7763 = vmatprep.mubr.msk.f32.mxu0 %vm9112_vm4, %v9113_v18 }
 0x56f   :  { %7764 = vmatmul.mubr.msk.f32.gmra.mrb[18].mxu0 %vm338_vm2, %v9286_v46 }
 0x570   :  { %7766 = vmatprep.mubr.msk.f32.mxu0 %vm9112_vm4, %v9113_v18 }
 0x573   :  { %7767 = vmatmul.mubr.msk.f32.gmra.mrb[20].mxu0 %vm338_vm2, %v9292_v47 }
 0x574   :  { %7790 = vmatprep.mubr.msk.f32.mxu0 %vm9112_vm4, %v9113_v18 }
 0x626   :  { %v899_v55 = vpop.f32.mrb[4].mxu0 }
 0x627   :  { %v7700_v57 = vpop.f32.mrb[5].mxu0  ;;  %7710 = vmatmul.mubr.msk.f32.vlgmr.msra.gmra.mrb[24].mxu1 %vm681_vm5, %v899_v55 }
 0x628   :  { %7712 = vmatprep.mubr.msk.f32.mxu1 %vm9112_vm4, %v9113_v18  ;;  %8552 = vmatpush3.bf16.msra.mxu1 %v8551_v50 }
 0x629   :  { %8553 = vmatprep.subr.bf16.mxu1 %v9106_v0 }
 0x62a   :  { %v904_v60 = vpop.f32.mrb[6].mxu0 }
 0x62b   :  { %v7703_v62 = vpop.f32.mrb[7].mxu0  ;;  %7713 = vmatmul.mubr.msk.f32.gmra.mrb[26].mxu1 %vm681_vm5, %v904_v60 }
 0x62c   :  { %7715 = vmatprep.mubr.msk.f32.mxu1 %vm9112_vm4, %v9113_v18  ;;  %8555 = vmatpush3.bf16.msra.mxu1 %v8554_v59 }
 0x62d   :  { %8562 = vmatprep.subr.bf16.mxu1 %v9106_v0 }
 0x62e   :  { %v909_v63 = vpop.f32.mrb[8].mxu0 }
 0x62f   :  { %v7706_v1 = vpop.f32.mrb[9].mxu0  ;;  %7716 = vmatmul.mubr.msk.f32.gmra.mrb[28].mxu1 %vm681_vm5, %v909_v63 }
 0x630   :  { %7743 = vmatprep.mubr.msk.f32.mxu1 %vm9112_vm4, %v9113_v18 }
 0x632   :  { %v1091_v2 = vpop.f32.mrb[10].mxu0 }
 0x633   :  { %v7728_v3 = vpop.f32.mrb[11].mxu0  ;;  %7744 = vmatmul.mubr.msk.f32.vlgmr.msra.gmra.mrb[30].mxu1 %vm338_vm2, %v9272_v38  ;;  %v1092_v41 = vadd.f32 %v6940_v39, %v1091_v2 }
 0x634   :  { %7746 = vmatprep.mubr.msk.f32.mxu1 %vm9112_vm4, %v9113_v18 }
 0x636   :  { %v1096_v4 = vpop.f32.mrb[12].mxu0 }
 0x637   :  { %v7731_v5 = vpop.f32.mrb[13].mxu0  ;;  %7747 = vmatmul.mubr.msk.f32.gmra.mrb[32].mxu1 %vm338_vm2, %v9286_v46  ;;  %v1097_v42 = vadd.f32 %v6940_v39, %v1096_v4 }
 0x638   :  { %7749 = vmatprep.mubr.msk.f32.mxu1 %vm9112_vm4, %v9113_v18 }
 0x63a   :  { %v1101_v6 = vpop.f32.mrb[14].mxu0 }
 0x63b   :  { %v7734_v8 = vpop.f32.mrb[15].mxu0  ;;  %7750 = vmatmul.mubr.msk.f32.gmra.mrb[34].mxu1 %vm338_vm2, %v9292_v47  ;;  %v1102_v43 = vadd.f32 %v6940_v39, %v1101_v6 }
 0x63c   :  { %7775 = vmatprep.mubr.msk.f32.mxu1 %vm9112_vm4, %v9113_v18 }
 0x63e   :  { %v1277_v9 = vpop.f32.mrb[16].mxu0 }
 0x63f   :  { %v7762_v10 = vpop.f32.mrb[17].mxu0  ;;  %v1278_v13 = vadd.f32 %v6958_v11, %v1277_v9 }
 0x642   :  { %v1282_v12 = vpop.f32.mrb[18].mxu0 }
 0x643   :  { %v1283_v14 = vadd.f32 %v6958_v11, %v1282_v12  ;;  %v7765_v15 = vpop.f32.mrb[19].mxu0 }
 0x645   :  { %v8567_v16 = vpack.c.bf16 %v1283_v14, %v1278_v13 }
 0x646   :  { %v1287_v17 = vpop.f32.mrb[20].mxu0 }
 0x647   :  { %v7768_v19 = vpop.f32.mrb[21].mxu0  ;;  %8568 = vmatpush3.bf16.msra.mxu0 %v8567_v16  ;;  %v1288_v20 = vadd.f32 %v6958_v11, %v1287_v17 }
 0x648   :  { %7788 = vmatprep.subr.mxu0 %v9113_v18 }
 0x64b   :  { %7789 = vmatpush3.msk.msra.mxu0 %vm276_vm1, %v1288_v20 }
 0x64c   :  { %8569 = vmatprep.subr.bf16.mxu0 %v9106_v0 }
 0x6fa   :  { %v9473_v21 = vpop.f32.mrb[24].mxu1 }
 0x6fb   :  { %v7711_v22 = vpop.f32.mrb[25].mxu1 }
 0x6fc   :  { %v6972_v22 = vld [vmem:[%s9393_s28 + $0x8] sm:$0xff] }
 0x6fe   :  { %v9475_v23 = vpop.f32.mrb[26].mxu1 }
 0x6ff   :  { %v7714_v24 = vpop.f32.mrb[27].mxu1 }
 0x702   :  { %v9477_v25 = vpop.f32.mrb[28].mxu1 }
 0x703   :  { %v7717_v26 = vpop.f32.mrb[29].mxu1 }
 0x706   :  { %v1184_v27 = vpop.f32.mrb[30].mxu1 }
 0x707   :  { %v7745_v28 = vpop.f32.mrb[31].mxu1  ;;  %v1185_v32 = vadd.f32 %v6949_v29, %v1184_v27 }
 0x708   :  { %v6976_v28 = vld [vmem:[%s9241_s25 + $0x40] sm:$0xff] }
 0x70a   :  { %v1189_v31 = vpop.f32.mrb[32].mxu1 }
 0x70b   :  { %v1190_v33 = vadd.f32 %v6949_v29, %v1189_v31  ;;  %v7748_v34 = vpop.f32.mrb[33].mxu1 }
 0x70c   :  { %v6978_v34 = vld [vmem:[%s9241_s25 + $0x50] sm:$0xff] }
 0x70d   :  { %v8563_v35 = vpack.c.bf16 %v1190_v33, %v1185_v32 }
 0x70e   :  { %v1194_v36 = vpop.f32.mrb[34].mxu1 }
 0x70f   :  { %v7751_v37 = vpop.f32.mrb[35].mxu1  ;;  %8565 = vmatpush3.bf16.xpose.msk.msra.mxu1 %vm9337_vm6, %v8563_v35  ;;  %v1195_v40 = vadd.f32 %v6949_v29, %v1194_v36  ;;  %v6977_v29 = vld [vmem:[%s9241_s25 + $0x48] sm:$0xff]  ;;  %v6979_v35 = vld [vmem:[%s9241_s25 + $0x58] sm:$0xff] }
 0x710   :  { %7773 = vmatprep.subr.mxu1 %v9113_v18  ;;  %v8570_v32 = vpack.c.bf16 %v6977_v29, %v6976_v28  ;;  %v8573_v37 = vpack.c.bf16 %v6979_v35, %v6978_v34 }
 0x717   :  { %7774 = vmatpush3.xpose.msk.msra.mxu1 %vm681_vm5, %v1195_v40 }
 0x718   :  { %7799 = vmatprep.subr.mxu1 %v9113_v18 }
 0x71a   :  { %7776 = vmatmul.mubr.msk.f32.vlgmr.msra.gmra.mrb[36].mxu1 %vm681_vm5, %v1092_v41 }
 0x71b   :  { %7778 = vmatprep.mubr.msk.f32.mxu1 %vm9112_vm4, %v9113_v18  ;;  %7800 = vmatpush3.msra.mxu1 %v6972_v22 }
 0x71c   :  { %8575 = vmatprep.subr.bf16.mxu1 %v9106_v0 }
 0x71e   :  { %7779 = vmatmul.mubr.msk.f32.gmra.mrb[38].mxu1 %vm681_vm5, %v1097_v42  ;;  %v6994_v42 = vld [vmem:[%s9279_s11 + $0x40] sm:$0xff] }
 0x71f   :  { %7781 = vmatprep.mubr.msk.f32.mxu1 %vm9112_vm4, %v9113_v18 }
 0x722   :  { %7782 = vmatmul.mubr.msk.f32.gmra.mrb[40].mxu1 %vm681_vm5, %v1102_v43  ;;  %v6995_v43 = vld [vmem:[%s9279_s11 + $0x48] sm:$0xff] }
 0x723   :  { %7801 = vmatprep.mubr.msk.f32.mxu1 %vm9112_vm4, %v9113_v18 }
 0x7ed   :  { %v1375_v44 = vpop.f32.mrb[36].mxu1 }
 0x7ee   :  { %v1389_v48 = vmul.f32 0.35355338, %v1375_v44  ;;  %v7777_v49 = vpop.f32.mrb[37].mxu1  ;;  %v8582_v44 = vpack.c.bf16 %v6995_v43, %v6994_v42 }
 0x7ef   :  { %v6997_v49 = vld [vmem:[%s9279_s11 + $0x58] sm:$0xff] }
 0x7f0   :  { %v1392_v50 = vadd.f32 %v1389_v48, %v9375_v45  ;;  %v6996_v48 = vld [vmem:[%s9279_s11 + $0x50] sm:$0xff] }
 0x7f1   :  { %v1380_v51 = vpop.f32.mrb[38].mxu1 }
 0x7f2   :  { %v1390_v53 = vmul.f32 0.35355338, %v1380_v51  ;;  %v7780_v55 = vpop.f32.mrb[39].mxu1  ;;  %v1395_v57 = vsel %vm786_vm15, %v1392_v50, -inf  ;;  %v6985_v51 = vld [vmem:[%s9261_s3 + $0x40] sm:$0xff] }
 0x7f3   :  { %1396 = vmax.xlane.f32.xlu0 %v1395_v57  ;;  %v6987_v57 = vld [vmem:[%s9261_s3 + $0x50] sm:$0xff] }
 0x7f4   :  { %v1393_v59 = vadd.f32 %v1390_v53, %v9378_v52  ;;  %v6986_v53 = vld [vmem:[%s9261_s3 + $0x48] sm:$0xff] }
 0x7f5   :  { %v1385_v60 = vpop.f32.mrb[40].mxu1  ;;  %v8576_v55 = vpack.c.bf16 %v6986_v53, %v6985_v51 }
 0x7f6   :  { %v1391_v62 = vmul.f32 0.35355338, %v1385_v60  ;;  %v7783_v63 = vpop.f32.mrb[41].mxu1  ;;  %v1398_v1 = vsel %vm786_vm15, %v1393_v59, -inf }
 0x7f7   :  { %1399 = vmax.xlane.f32.xlu1 %v1398_v1 }
 0x7f8   :  { %v1394_v2 = vadd.f32 %v1391_v62, %v9382_v61 }
 0x7fa   :  { %v1401_v3 = vsel %vm793_vm8, %v1394_v2, -inf }
 0x7fb   :  { %1402 = vmax.xlane.f32.xlu0 %v1401_v3 }
 0x880   :  { %v1397_v4 = vpop.xlane.xlu0 %1396 }
 0x881   :  { %v1404_v5 = vsub.f32 %v1392_v50, %v1397_v4  ;;  %v8585_v50 = vpack.c.bf16 %v6997_v49, %v6996_v48 }
 0x883   :  { %v1407_v6 = vmul.f32 1.442695, %v1404_v5 }
 0x884   :  { %v1400_v8 = vpop.xlane.xlu1 %1399 }
 0x885   :  { %8942 = vpow2.f32 %v1407_v6  ;;  %v1405_v9 = vsub.f32 %v1393_v59, %v1400_v8  ;;  %v6988_v59 = vld [vmem:[%s9261_s3 + $0x58] sm:$0xff] }
 0x886   :  { %v8579_v63 = vpack.c.bf16 %v6988_v59, %v6987_v57 }
 0x887   :  { %v1409_v10 = vmul.f32 1.442695, %v1405_v9 }
 0x888   :  { %v1403_v11 = vpop.xlane.xlu0 %1402 }
 0x889   :  { %8944 = vpow2.f32 %v1409_v10  ;;  %v1406_v12 = vsub.f32 %v1394_v2, %v1403_v11 }
 0x88b   :  { %v1411_v13 = vmul.f32 1.442695, %v1406_v12 }
 0x88d   :  { %8946 = vpow2.f32 %v1411_v13 }
 0x88f   :  { %v8943_v14 = vpop.eup %8942 }
 0x890   :  { %v1413_v15 = vsel %vm786_vm15, %v8943_v14, 0.0 }
 0x891   :  { %1414 = vadd.xlane.f32.xlu1 %v1413_v15 }
 0x893   :  { %v8945_v16 = vpop.eup %8944 }
 0x894   :  { %v1416_v17 = vsel %vm786_vm15, %v8945_v16, 0.0 }
 0x895   :  { %1417 = vadd.xlane.f32.xlu0 %v1416_v17 }
 0x897   :  { %v8947_v19 = vpop.eup %8946 }
 0x898   :  { %v1419_v20 = vsel %vm793_vm8, %v8947_v19, 0.0 }
 0x899   :  { %1420 = vadd.xlane.f32.xlu1 %v1419_v20 }
 0x91e   :  { %v1415_v24 = vpop.xlane.xlu1 %1414 }
 0x91f   :  { %8948 = vrcp.f32 %v1415_v24 }
 0x922   :  { %v1418_v26 = vpop.xlane.xlu0 %1417 }
 0x923   :  { %8950 = vrcp.f32 %v1418_v26 }
 0x926   :  { %v1421_v27 = vpop.xlane.xlu1 %1420 }
 0x927   :  { %8952 = vrcp.f32 %v1421_v27  ;;  %v6934_v27 = vld [vmem:[%s9585_s4] ss:$0 sm:$0xff] }
 0x928   :  { %v1009_v28 = vadd.f32 %v6934_v27, %v9473_v21  ;;  %v6990_v21 = vld [vmem:[%s9332_s15 + $0x2] ss:$0 sm:$0xff] }
 0x929   :  { %v8949_v31 = vpop.eup %8948 }
 0x92a   :  { %v1423_v33 = vmul.f32 %v8949_v31, %v8943_v14  ;;  %v6999_v14 = vld [vmem:[%s9344_s19 + $0x2] ss:$0 sm:$0xff] }
 0x92c   :  { %7791 = vmatmul.mubr.msk.f32.vlgmr.msra.gmra.mrb[22].mxu0 %vm786_vm15, %v1423_v33  ;;  %v1010_v33 = vadd.f32 %v6934_v27, %v9475_v23 }
 0x92d   :  { %v8951_v36 = vpop.eup %8950  ;;  %7793 = vmatprep.mubr.msk.f32.mxu0 %vm9112_vm4, %v9113_v18  ;;  %8571 = vmatpush3.bf16.msra.mxu0 %v8570_v32 }
 0x92e   :  { %v1425_v39 = vmul.f32 %v8951_v36, %v8945_v16  ;;  %8572 = vmatprep.subr.bf16.mxu0 %v9106_v0 }
 0x930   :  { %7794 = vmatmul.mubr.msk.f32.gmra.mrb[24].mxu0 %vm786_vm15, %v1425_v39 }
 0x931   :  { %v8953_v40 = vpop.eup %8952  ;;  %7796 = vmatprep.mubr.msk.f32.mxu0 %vm9112_vm4, %v9113_v18  ;;  %8574 = vmatpush3.bf16.msra.mxu0 %v8573_v37  ;;  %v1011_v37 = vadd.f32 %v6934_v27, %v9477_v25  ;;  %v6981_v25 = vld [vmem:[%s9349_s23 + $0x2] ss:$0 sm:$0xff] }
 0x932   :  { %v1427_v41 = vmul.f32 %v8953_v40, %v8947_v19  ;;  %8581 = vmatprep.subr.bf16.mxu0 %v9106_v0 }
 0x934   :  { %7797 = vmatmul.mubr.msk.f32.gmra.mrb[26].mxu0 %vm786_vm15, %v1427_v41 }
 0x935   :  { %7818 = vmatprep.mubr.msk.f32.mxu0 %vm9112_vm4, %v9113_v18 }
 0x938   :  { %7819 = vmatmul.mubr.msk.f32.vlgmr.msra.gmra.mrb[28].mxu0 %vm338_vm2, %v9272_v38 }
 0x939   :  { %7821 = vmatprep.mubr.msk.f32.mxu0 %vm9112_vm4, %v9113_v18  ;;  %8583 = vmatpush3.bf16.msra.mxu0 %v8582_v44 }
 0x93a   :  { %8584 = vmatprep.subr.bf16.mxu0 %v9106_v0 }
 0x93c   :  { %7822 = vmatmul.mubr.msk.f32.gmra.mrb[30].mxu0 %vm338_vm2, %v9286_v46 }
 0x93d   :  { %7824 = vmatprep.mubr.msk.f32.mxu0 %vm9112_vm4, %v9113_v18  ;;  %8586 = vmatpush3.bf16.msra.mxu0 %v8585_v50 }
 0x93e   :  { %8591 = vmatprep.subr.bf16.mxu0 %v9106_v0 }
 0x940   :  { %7825 = vmatmul.mubr.msk.f32.gmra.mrb[32].mxu0 %vm338_vm2, %v9292_v47 }
 0x941   :  { %7852 = vmatprep.mubr.msk.f32.mxu0 %vm9112_vm4, %v9113_v18 }
 0x944   :  { %7853 = vmatmul.mubr.msk.f32.vlgmr.msra.gmra.mrb[34].mxu0 %vm338_vm2, %v9272_v38 }
 0x945   :  { %7855 = vmatprep.mubr.msk.f32.mxu0 %vm9112_vm4, %v9113_v18 }
 0x948   :  { %7856 = vmatmul.mubr.msk.f32.gmra.mrb[36].mxu0 %vm338_vm2, %v9286_v46 }
 0x949   :  { %7858 = vmatprep.mubr.msk.f32.mxu0 %vm9112_vm4, %v9113_v18 }
 0x94c   :  { %7859 = vmatmul.mubr.msk.f32.gmra.mrb[38].mxu0 %vm338_vm2, %v9292_v47 }
 0x94d   :  { %7882 = vmatprep.mubr.msk.f32.mxu0 %vm9112_vm4, %v9113_v18 }
 0x9ff   :  { %v1506_v60 = vpop.f32.mrb[22].mxu0 }
 0xa00   :  { %v7792_v62 = vpop.f32.mrb[23].mxu0  ;;  %7802 = vmatmul.mubr.msk.f32.vlgmr.msra.gmra.mrb[42].mxu1 %vm681_vm5, %v1506_v60 }
 0xa01   :  { %7804 = vmatprep.mubr.msk.f32.mxu1 %vm9112_vm4, %v9113_v18  ;;  %8577 = vmatpush3.bf16.msra.mxu1 %v8576_v55 }
 0xa02   :  { %8578 = vmatprep.subr.bf16.mxu1 %v9106_v0 }
 0xa03   :  { %v1511_v1 = vpop.f32.mrb[24].mxu0 }
 0xa04   :  { %v7795_v2 = vpop.f32.mrb[25].mxu0  ;;  %7805 = vmatmul.mubr.msk.f32.gmra.mrb[44].mxu1 %vm681_vm5, %v1511_v1 }
 0xa05   :  { %7807 = vmatprep.mubr.msk.f32.mxu1 %vm9112_vm4, %v9113_v18  ;;  %8580 = vmatpush3.bf16.msra.mxu1 %v8579_v63 }
 0xa06   :  { %8587 = vmatprep.subr.bf16.mxu1 %v9106_v0 }
 0xa07   :  { %v1516_v3 = vpop.f32.mrb[26].mxu0 }
 0xa08   :  { %v7798_v4 = vpop.f32.mrb[27].mxu0  ;;  %7808 = vmatmul.mubr.msk.f32.gmra.mrb[46].mxu1 %vm681_vm5, %v1516_v3 }
 0xa09   :  { %7835 = vmatprep.mubr.msk.f32.mxu1 %vm9112_vm4, %v9113_v18 }
 0xa0b   :  { %v1693_v5 = vpop.f32.mrb[28].mxu0 }
 0xa0c   :  { %v7820_v6 = vpop.f32.mrb[29].mxu0  ;;  %7836 = vmatmul.mubr.msk.f32.vlgmr.msra.gmra.mrb[48].mxu1 %vm338_vm2, %v9272_v38  ;;  %v1694_v57 = vadd.f32 %v6981_v25, %v1693_v5 }
 0xa0d   :  { %7838 = vmatprep.mubr.msk.f32.mxu1 %vm9112_vm4, %v9113_v18 }
 0xa0f   :  { %v1698_v8 = vpop.f32.mrb[30].mxu0 }
 0xa10   :  { %v7823_v9 = vpop.f32.mrb[31].mxu0  ;;  %7839 = vmatmul.mubr.msk.f32.gmra.mrb[50].mxu1 %vm338_vm2, %v9286_v46  ;;  %v1699_v59 = vadd.f32 %v6981_v25, %v1698_v8 }
 0xa11   :  { %7841 = vmatprep.mubr.msk.f32.mxu1 %vm9112_vm4, %v9113_v18 }
 0xa13   :  { %v1703_v10 = vpop.f32.mrb[32].mxu0 }
 0xa14   :  { %v7826_v11 = vpop.f32.mrb[33].mxu0  ;;  %7842 = vmatmul.mubr.msk.f32.gmra.mrb[52].mxu1 %vm338_vm2, %v9292_v47  ;;  %v1704_v60 = vadd.f32 %v6981_v25, %v1703_v10 }
 0xa15   :  { %7867 = vmatprep.mubr.msk.f32.mxu1 %vm9112_vm4, %v9113_v18 }
 0xa17   :  { %v1879_v12 = vpop.f32.mrb[34].mxu0 }
 0xa18   :  { %v7854_v13 = vpop.f32.mrb[35].mxu0  ;;  %v1880_v16 = vadd.f32 %v6999_v14, %v1879_v12 }
 0xa1b   :  { %v1884_v15 = vpop.f32.mrb[36].mxu0 }
 0xa1c   :  { %v1885_v17 = vadd.f32 %v6999_v14, %v1884_v15  ;;  %v7857_v19 = vpop.f32.mrb[37].mxu0 }
 0xa1e   :  { %v8592_v20 = vpack.c.bf16 %v1885_v17, %v1880_v16 }
 0xa1f   :  { %v1889_v22 = vpop.f32.mrb[38].mxu0 }
 0xa20   :  { %v7860_v24 = vpop.f32.mrb[39].mxu0  ;;  %8593 = vmatpush3.bf16.msra.mxu0 %v8592_v20  ;;  %v1890_v26 = vadd.f32 %v6999_v14, %v1889_v22 }
 0xa21   :  { %7880 = vmatprep.subr.mxu0 %v9113_v18 }
 0xa24   :  { %7881 = vmatpush3.msk.msra.mxu0 %vm276_vm1, %v1890_v26 }
 0xa25   :  { %8594 = vmatprep.subr.bf16.mxu0 %v9106_v0 }
 0xad3   :  { %v1597_v29 = vpop.f32.mrb[42].mxu1 }
 0xad4   :  { %v9589_v31 = vadd.f32 %v1597_v29, %v1009_v28  ;;  %v7803_v32 = vpop.f32.mrb[43].mxu1 }
 0xad7   :  { %v1602_v34 = vpop.f32.mrb[44].mxu1 }
 0xad8   :  { %v9592_v35 = vadd.f32 %v1602_v34, %v1010_v33  ;;  %v7806_v36 = vpop.f32.mrb[45].mxu1 }
 0xadb   :  { %v1607_v39 = vpop.f32.mrb[46].mxu1 }
 0xadc   :  { %v9595_v40 = vadd.f32 %v1607_v39, %v1011_v37  ;;  %v7809_v41 = vpop.f32.mrb[47].mxu1  ;;  %v7013_v37 = vld [vmem:[%s9393_s28 + $0x10] sm:$0xff] }
 0xadf   :  { %v1786_v42 = vpop.f32.mrb[48].mxu1 }
 0xae0   :  { %v7837_v43 = vpop.f32.mrb[49].mxu1  ;;  %v1787_v48 = vadd.f32 %v6990_v21, %v1786_v42 }
 0xae1   :  { %v7017_v43 = vld [vmem:[%s9241_s25 + $0x60] sm:$0xff] }
 0xae3   :  { %v1791_v44 = vpop.f32.mrb[50].mxu1 }
 0xae4   :  { %v1792_v49 = vadd.f32 %v6990_v21, %v1791_v44  ;;  %v7840_v50 = vpop.f32.mrb[51].mxu1 }
 0xae5   :  { %v7019_v50 = vld [vmem:[%s9241_s25 + $0x70] sm:$0xff] }
 0xae6   :  { %v8588_v51 = vpack.c.bf16 %v1792_v49, %v1787_v48 }
 0xae7   :  { %v1796_v23 = vpop.f32.mrb[52].mxu1 }
 0xae8   :  { %v7843_v53 = vpop.f32.mrb[53].mxu1  ;;  %8590 = vmatpush3.bf16.xpose.msk.msra.mxu1 %vm9337_vm6, %v8588_v51  ;;  %v1797_v55 = vadd.f32 %v6990_v21, %v1796_v23  ;;  %v7018_v21 = vld [vmem:[%s9241_s25 + $0x68] sm:$0xff]  ;;  %v7020_v51 = vld [vmem:[%s9241_s25 + $0x78] sm:$0xff] }
 0xae9   :  { %7865 = vmatprep.subr.mxu1 %v9113_v18  ;;  %v8595_v48 = vpack.c.bf16 %v7018_v21, %v7017_v43  ;;  %v8598_v53 = vpack.c.bf16 %v7020_v51, %v7019_v50 }
 0xaf0   :  { %7866 = vmatpush3.xpose.msk.msra.mxu1 %vm681_vm5, %v1797_v55 }
 0xaf1   :  { %7891 = vmatprep.subr.mxu1 %v9113_v18 }
 0xaf3   :  { %7868 = vmatmul.mubr.msk.f32.vlgmr.msra.gmra.mrb[54].mxu1 %vm681_vm5, %v1694_v57 }
 0xaf4   :  { %7870 = vmatprep.mubr.msk.f32.mxu1 %vm9112_vm4, %v9113_v18  ;;  %7892 = vmatpush3.msra.mxu1 %v7013_v37 }
 0xaf5   :  { %8600 = vmatprep.subr.bf16.mxu1 %v9106_v0 }
 0xaf7   :  { %7871 = vmatmul.mubr.msk.f32.gmra.mrb[56].mxu1 %vm681_vm5, %v1699_v59  ;;  %v7035_v59 = vld [vmem:[%s9279_s11 + $0x60] sm:$0xff] }
 0xaf8   :  { %7873 = vmatprep.mubr.msk.f32.mxu1 %vm9112_vm4, %v9113_v18 }
 0xafb   :  { %7874 = vmatmul.mubr.msk.f32.gmra.mrb[58].mxu1 %vm681_vm5, %v1704_v60  ;;  %v7036_v60 = vld [vmem:[%s9279_s11 + $0x68] sm:$0xff] }
 0xafc   :  { %7893 = vmatprep.mubr.msk.f32.mxu1 %vm9112_vm4, %v9113_v18 }
 0xbc6   :  { %v1977_v62 = vpop.f32.mrb[54].mxu1 }
 0xbc7   :  { %v1991_v63 = vmul.f32 0.35355338, %v1977_v62  ;;  %v7869_v1 = vpop.f32.mrb[55].mxu1  ;;  %v8607_v62 = vpack.c.bf16 %v7036_v60, %v7035_v59 }
 0xbc8   :  { %v7038_v1 = vld [vmem:[%s9279_s11 + $0x78] sm:$0xff] }
 0xbc9   :  { %v1994_v2 = vadd.f32 %v1991_v63, %v9375_v45  ;;  %v7037_v63 = vld [vmem:[%s9279_s11 + $0x70] sm:$0xff] }
 0xbca   :  { %v1982_v3 = vpop.f32.mrb[56].mxu1 }
 0xbcb   :  { %v1992_v4 = vmul.f32 0.35355338, %v1982_v3  ;;  %v7872_v5 = vpop.f32.mrb[57].mxu1  ;;  %v1997_v6 = vsel %vm786_vm15, %v1994_v2, -inf  ;;  %v7026_v3 = vld [vmem:[%s9261_s3 + $0x60] sm:$0xff] }
 0xbcc   :  { %1998 = vmax.xlane.f32.xlu0 %v1997_v6  ;;  %v7028_v6 = vld [vmem:[%s9261_s3 + $0x70] sm:$0xff] }
 0xbcd   :  { %v1995_v8 = vadd.f32 %v1992_v4, %v9378_v52  ;;  %v7027_v4 = vld [vmem:[%s9261_s3 + $0x68] sm:$0xff] }
 0xbce   :  { %v1987_v9 = vpop.f32.mrb[58].mxu1  ;;  %v8601_v5 = vpack.c.bf16 %v7027_v4, %v7026_v3 }
 0xbcf   :  { %v1993_v10 = vmul.f32 0.35355338, %v1987_v9  ;;  %v7875_v11 = vpop.f32.mrb[59].mxu1  ;;  %v2000_v12 = vsel %vm786_vm15, %v1995_v8, -inf }
 0xbd0   :  { %2001 = vmax.xlane.f32.xlu1 %v2000_v12 }
 0xbd1   :  { %v1996_v13 = vadd.f32 %v1993_v10, %v9382_v61 }
 0xbd3   :  { %v2003_v14 = vsel %vm793_vm8, %v1996_v13, -inf }
 0xbd4   :  { %2004 = vmax.xlane.f32.xlu0 %v2003_v14 }
 0xc59   :  { %v1999_v15 = vpop.xlane.xlu0 %1998 }
 0xc5a   :  { %v2006_v16 = vsub.f32 %v1994_v2, %v1999_v15  ;;  %v8610_v2 = vpack.c.bf16 %v7038_v1, %v7037_v63 }
 0xc5c   :  { %v2009_v17 = vmul.f32 1.442695, %v2006_v16 }
 0xc5d   :  { %v2002_v19 = vpop.xlane.xlu1 %2001 }
 0xc5e   :  { %8954 = vpow2.f32 %v2009_v17  ;;  %v2007_v20 = vsub.f32 %v1995_v8, %v2002_v19  ;;  %v7029_v8 = vld [vmem:[%s9261_s3 + $0x78] sm:$0xff] }
 0xc5f   :  { %v8604_v11 = vpack.c.bf16 %v7029_v8, %v7028_v6 }
 0xc60   :  { %v2011_v22 = vmul.f32 1.442695, %v2007_v20 }
 0xc61   :  { %v2005_v24 = vpop.xlane.xlu0 %2004 }
 0xc62   :  { %8956 = vpow2.f32 %v2011_v22  ;;  %v2008_v26 = vsub.f32 %v1996_v13, %v2005_v24 }
 0xc64   :  { %v2013_v27 = vmul.f32 1.442695, %v2008_v26 }
 0xc66   :  { %8958 = vpow2.f32 %v2013_v27  ;;  %v7040_v27 = vld [vmem:[%s9344_s19 + $0x3] ss:$0 sm:$0xff] }
 0xc68   :  { %v8955_v28 = vpop.eup %8954 }
 0xc69   :  { %v2015_v29 = vsel %vm786_vm15, %v8955_v28, 0.0 }
 0xc6a   :  { %2016 = vadd.xlane.f32.xlu1 %v2015_v29 }
 0xc6c   :  { %v8957_v32 = vpop.eup %8956 }
 0xc6d   :  { %v2018_v33 = vsel %vm786_vm15, %v8957_v32, 0.0 }
 0xc6e   :  { %2019 = vadd.xlane.f32.xlu0 %v2018_v33 }
 0xc70   :  { %v8959_v34 = vpop.eup %8958 }
 0xc71   :  { %v2021_v36 = vsel %vm793_vm8, %v8959_v34, 0.0 }
 0xc72   :  { %2022 = vadd.xlane.f32.xlu1 %v2021_v36 }
 0xcf7   :  { %v2017_v39 = vpop.xlane.xlu1 %2016 }
 0xcf8   :  { %8960 = vrcp.f32 %v2017_v39 }
 0xcfb   :  { %v2020_v41 = vpop.xlane.xlu0 %2019 }
 0xcfc   :  { %8962 = vrcp.f32 %v2020_v41 }
 0xcff   :  { %v2023_v42 = vpop.xlane.xlu1 %2022 }
 0xd00   :  { %8964 = vrcp.f32 %v2023_v42 }
 0xd02   :  { %v8961_v44 = vpop.eup %8960 }
 0xd03   :  { %v2025_v49 = vmul.f32 %v8961_v44, %v8955_v28 }
 0xd05   :  { %7883 = vmatmul.mubr.msk.f32.vlgmr.msra.gmra.mrb[40].mxu0 %vm786_vm15, %v2025_v49 }
 0xd06   :  { %v8963_v23 = vpop.eup %8962  ;;  %7885 = vmatprep.mubr.msk.f32.mxu0 %vm9112_vm4, %v9113_v18  ;;  %8596 = vmatpush3.bf16.msra.mxu0 %v8595_v48 }
 0xd07   :  { %v2027_v25 = vmul.f32 %v8963_v23, %v8957_v32  ;;  %8597 = vmatprep.subr.bf16.mxu0 %v9106_v0  ;;  %v7031_v23 = vld [vmem:[%s9332_s15 + $0x3] ss:$0 sm:$0xff] }
 0xd09   :  { %7886 = vmatmul.mubr.msk.f32.gmra.mrb[42].mxu0 %vm786_vm15, %v2027_v25 }
 0xd0a   :  { %v8965_v55 = vpop.eup %8964  ;;  %7888 = vmatprep.mubr.msk.f32.mxu0 %vm9112_vm4, %v9113_v18  ;;  %8599 = vmatpush3.bf16.msra.mxu0 %v8598_v53 }
 0xd0b   :  { %v2029_v57 = vmul.f32 %v8965_v55, %v8959_v34  ;;  %8606 = vmatprep.subr.bf16.mxu0 %v9106_v0 }
 0xd0d   :  { %7889 = vmatmul.mubr.msk.f32.gmra.mrb[44].mxu0 %vm786_vm15, %v2029_v57 }
 0xd0e   :  { %7910 = vmatprep.mubr.msk.f32.mxu0 %vm9112_vm4, %v9113_v18 }
 0xd11   :  { %7911 = vmatmul.mubr.msk.f32.vlgmr.msra.gmra.mrb[46].mxu0 %vm338_vm2, %v9272_v38 }
 0xd12   :  { %7913 = vmatprep.mubr.msk.f32.mxu0 %vm9112_vm4, %v9113_v18  ;;  %8608 = vmatpush3.bf16.msra.mxu0 %v8607_v62 }
 0xd13   :  { %8609 = vmatprep.subr.bf16.mxu0 %v9106_v0 }
 0xd15   :  { %7914 = vmatmul.mubr.msk.f32.gmra.mrb[48].mxu0 %vm338_vm2, %v9286_v46 }
 0xd16   :  { %7916 = vmatprep.mubr.msk.f32.mxu0 %vm9112_vm4, %v9113_v18  ;;  %8611 = vmatpush3.bf16.msra.mxu0 %v8610_v2 }
 0xd17   :  { %8616 = vmatprep.subr.bf16.mxu0 %v9106_v0 }
 0xd19   :  { %7917 = vmatmul.mubr.msk.f32.gmra.mrb[50].mxu0 %vm338_vm2, %v9292_v47 }
 0xd1a   :  { %7944 = vmatprep.mubr.msk.f32.mxu0 %vm9112_vm4, %v9113_v18 }
 0xd1d   :  { %7945 = vmatmul.mubr.msk.f32.vlgmr.msra.gmra.mrb[52].mxu0 %vm338_vm2, %v9272_v38 }
 0xd1e   :  { %7947 = vmatprep.mubr.msk.f32.mxu0 %vm9112_vm4, %v9113_v18 }
 0xd21   :  { %7948 = vmatmul.mubr.msk.f32.gmra.mrb[54].mxu0 %vm338_vm2, %v9286_v46 }
 0xd22   :  { %7950 = vmatprep.mubr.msk.f32.mxu0 %vm9112_vm4, %v9113_v18 }
 0xd25   :  { %7951 = vmatmul.mubr.msk.f32.gmra.mrb[56].mxu0 %vm338_vm2, %v9292_v47 }
 0xd26   :  { %7974 = vmatprep.mubr.msk.f32.mxu0 %vm9112_vm4, %v9113_v18 }
 0xdd8   :  { %v2108_v9 = vpop.f32.mrb[40].mxu0 }
 0xdd9   :  { %v7884_v10 = vpop.f32.mrb[41].mxu0  ;;  %7894 = vmatmul.mubr.msk.f32.vlgmr.msra.gmra.mrb[60].mxu1 %vm681_vm5, %v2108_v9 }
 0xdda   :  { %7896 = vmatprep.mubr.msk.f32.mxu1 %vm9112_vm4, %v9113_v18  ;;  %8602 = vmatpush3.bf16.msra.mxu1 %v8601_v5 }
 0xddb   :  { %8603 = vmatprep.subr.bf16.mxu1 %v9106_v0 }
 0xddc   :  { %v2113_v12 = vpop.f32.mrb[42].mxu0 }
 0xddd   :  { %v7887_v13 = vpop.f32.mrb[43].mxu0  ;;  %7897 = vmatmul.mubr.msk.f32.gmra.mrb[62].mxu1 %vm681_vm5, %v2113_v12 }
 0xdde   :  { %7899 = vmatprep.mubr.msk.f32.mxu1 %vm9112_vm4, %v9113_v18  ;;  %8605 = vmatpush3.bf16.msra.mxu1 %v8604_v11 }
 0xddf   :  { %8612 = vmatprep.subr.bf16.mxu1 %v9106_v0 }
 0xde0   :  { %v2118_v14 = vpop.f32.mrb[44].mxu0 }
 0xde1   :  { %v7890_v15 = vpop.f32.mrb[45].mxu0  ;;  %7900 = vmatmul.mubr.msk.f32.gmra.mrb[64].mxu1 %vm681_vm5, %v2118_v14 }
 0xde2   :  { %7927 = vmatprep.mubr.msk.f32.mxu1 %vm9112_vm4, %v9113_v18 }
 0xde4   :  { %v2295_v16 = vpop.f32.mrb[46].mxu0 }
 0xde5   :  { %v7912_v17 = vpop.f32.mrb[47].mxu0  ;;  %7928 = vmatmul.mubr.msk.f32.vlgmr.msra.gmra.mrb[66].mxu1 %vm338_vm2, %v9272_v38 }
 0xde6   :  { %7930 = vmatprep.mubr.msk.f32.mxu1 %vm9112_vm4, %v9113_v18 }
 0xde8   :  { %v2300_v19 = vpop.f32.mrb[48].mxu0 }
 0xde9   :  { %v7915_v20 = vpop.f32.mrb[49].mxu0  ;;  %7931 = vmatmul.mubr.msk.f32.gmra.mrb[68].mxu1 %vm338_vm2, %v9286_v46 }
 0xdea   :  { %7933 = vmatprep.mubr.msk.f32.mxu1 %vm9112_vm4, %v9113_v18 }
 0xdec   :  { %v2305_v22 = vpop.f32.mrb[50].mxu0 }
 0xded   :  { %v7918_v24 = vpop.f32.mrb[51].mxu0  ;;  %7934 = vmatmul.mubr.msk.f32.gmra.mrb[70].mxu1 %vm338_vm2, %v9292_v47 }
 0xdee   :  { %7959 = vmatprep.mubr.msk.f32.mxu1 %vm9112_vm4, %v9113_v18 }
 0xdf0   :  { %v2481_v38 = vpop.f32.mrb[52].mxu0 }
 0xdf1   :  { %v7946_v26 = vpop.f32.mrb[53].mxu0  ;;  %v2482_v29 = vadd.f32 %v7040_v27, %v2481_v38 }
 0xdf4   :  { %v2486_v28 = vpop.f32.mrb[54].mxu0 }
 0xdf5   :  { %v2487_v32 = vadd.f32 %v7040_v27, %v2486_v28  ;;  %v7949_v33 = vpop.f32.mrb[55].mxu0 }
 0xdf7   :  { %v8617_v34 = vpack.c.bf16 %v2487_v32, %v2482_v29 }
 0xdf8   :  { %v2491_v46 = vpop.f32.mrb[56].mxu0 }
 0xdf9   :  { %v7952_v36 = vpop.f32.mrb[57].mxu0  ;;  %8618 = vmatpush3.bf16.msra.mxu0 %v8617_v34  ;;  %v2492_v37 = vadd.f32 %v7040_v27, %v2491_v46 }
 0xdfa   :  { %7972 = vmatprep.subr.mxu0 %v9113_v18 }
 0xdfd   :  { %7973 = vmatpush3.msk.msra.mxu0 %vm276_vm1, %v2492_v37 }
 0xdfe   :  { %8619 = vmatprep.subr.bf16.mxu0 %v9106_v0 }
 0xeac   :  { %v2199_v47 = vpop.f32.mrb[60].mxu1 }
 0xead   :  { %v9701_v39 = vadd.f32 %v2199_v47, %v9589_v31  ;;  %v7895_v41 = vpop.f32.mrb[61].mxu1  ;;  %v7054_v47 = vld [vmem:[%s9393_s28 + $0x18] sm:$0xff] }
 0xeb0   :  { %v2204_v42 = vpop.f32.mrb[62].mxu1 }
 0xeb1   :  { %v9704_v43 = vadd.f32 %v2204_v42, %v9592_v35  ;;  %v7898_v21 = vpop.f32.mrb[63].mxu1  ;;  %v7022_v35 = vld [vmem:[%s9349_s23 + $0x3] ss:$0 sm:$0xff] }
 0xeb2   :  { %v2301_v63 = vadd.f32 %v7022_v35, %v2300_v19  ;;  %v2306_v1 = vadd.f32 %v7022_v35, %v2305_v22 }
 0xeb4   :  { %v2209_v44 = vpop.f32.mrb[64].mxu1 }
 0xeb5   :  { %v9707_v48 = vadd.f32 %v2209_v44, %v9595_v40  ;;  %v7901_v49 = vpop.f32.mrb[65].mxu1  ;;  %v2296_v40 = vadd.f32 %v7022_v35, %v2295_v16 }
 0xeb8   :  { %v2388_v50 = vpop.f32.mrb[66].mxu1 }
 0xeb9   :  { %v7929_v51 = vpop.f32.mrb[67].mxu1  ;;  %v2389_v25 = vadd.f32 %v7031_v23, %v2388_v50 }
 0xebc   :  { %v2393_v53 = vpop.f32.mrb[68].mxu1 }
 0xebd   :  { %v2394_v55 = vadd.f32 %v7031_v23, %v2393_v53  ;;  %v7932_v31 = vpop.f32.mrb[69].mxu1 }
 0xebf   :  { %v8613_v57 = vpack.c.bf16 %v2394_v55, %v2389_v25 }
 0xec0   :  { %v2398_v59 = vpop.f32.mrb[70].mxu1 }
 0xec1   :  { %v7935_v60 = vpop.f32.mrb[71].mxu1  ;;  %8615 = vmatpush3.bf16.xpose.msk.msra.mxu1 %vm9337_vm6, %v8613_v57  ;;  %v2399_v62 = vadd.f32 %v7031_v23, %v2398_v59 }
 0xec2   :  { %7957 = vmatprep.subr.mxu1 %v9113_v18 }
 0xec9   :  { %7958 = vmatpush3.xpose.msk.msra.mxu1 %vm681_vm5, %v2399_v62 }
 0xeca   :  { %7983 = vmatprep.subr.mxu1 %v9113_v18 }
 0xecc   :  { %7960 = vmatmul.mubr.msk.f32.vlgmr.msra.gmra.mrb[72].mxu1 %vm681_vm5, %v2296_v40 }
 0xecd   :  { %7962 = vmatprep.mubr.msk.f32.mxu1 %vm9112_vm4, %v9113_v18  ;;  %7984 = vmatpush3.msra.mxu1 %v7054_v47 }
 0xece   :  { %8625 = vmatprep.subr.bf16.mxu1 %v9106_v0 }
 0xed0   :  { %7963 = vmatmul.mubr.msk.f32.gmra.mrb[74].mxu1 %vm681_vm5, %v2301_v63 }
 0xed1   :  { %7965 = vmatprep.mubr.msk.f32.mxu1 %vm9112_vm4, %v9113_v18 }
 0xed4   :  { %7966 = vmatmul.mubr.msk.f32.gmra.mrb[76].mxu1 %vm681_vm5, %v2306_v1 }
 0xed5   :  { %7985 = vmatprep.mubr.msk.f32.mxu1 %vm9112_vm4, %v9113_v18 }
 0xf9f   :  { %v2579_v2 = vpop.f32.mrb[72].mxu1 }
 0xfa0   :  { %v2593_v3 = vmul.f32 0.35355338, %v2579_v2  ;;  %v7961_v4 = vpop.f32.mrb[73].mxu1 }
 0xfa2   :  { %v2596_v5 = vadd.f32 %v2593_v3, %v9375_v45 }
 0xfa3   :  { %v2584_v6 = vpop.f32.mrb[74].mxu1 }
 0xfa4   :  { %v2594_v8 = vmul.f32 0.35355338, %v2584_v6  ;;  %v7964_v9 = vpop.f32.mrb[75].mxu1  ;;  %v2599_v10 = vsel %vm786_vm15, %v2596_v5, -inf }
 0xfa5   :  { %2600 = vmax.xlane.f32.xlu0 %v2599_v10 }
 0xfa6   :  { %v2597_v11 = vadd.f32 %v2594_v8, %v9378_v52 }
 0xfa7   :  { %v2589_v12 = vpop.f32.mrb[76].mxu1 }
 0xfa8   :  { %v2595_v13 = vmul.f32 0.35355338, %v2589_v12  ;;  %v7967_v14 = vpop.f32.mrb[77].mxu1  ;;  %v2602_v15 = vsel %vm786_vm15, %v2597_v11, -inf }
 0xfa9   :  { %2603 = vmax.xlane.f32.xlu1 %v2602_v15 }
 0xfaa   :  { %v2598_v16 = vadd.f32 %v2595_v13, %v9382_v61 }
 0xfac   :  { %v2605_v17 = vsel %vm793_vm8, %v2598_v16, -inf }
 0xfad   :  { %2606 = vmax.xlane.f32.xlu0 %v2605_v17 }
0x1032   :  { %v2601_v19 = vpop.xlane.xlu0 %2600 }
0x1033   :  { %v2608_v20 = vsub.f32 %v2596_v5, %v2601_v19 }
0x1035   :  { %v2611_v22 = vmul.f32 1.442695, %v2608_v20 }
0x1036   :  { %v2604_v24 = vpop.xlane.xlu1 %2603 }
0x1037   :  { %8966 = vpow2.f32 %v2611_v22  ;;  %v2609_v38 = vsub.f32 %v2597_v11, %v2604_v24 }
0x1039   :  { %v2613_v26 = vmul.f32 1.442695, %v2609_v38  ;;  %v2880_v38 = vld [vmem:[%s9781_s9] sm:$0xff] }
0x103a   :  { %v2607_v27 = vpop.xlane.xlu0 %2606 }
0x103b   :  { %8968 = vpow2.f32 %v2613_v26  ;;  %v2610_v28 = vsub.f32 %v2598_v16, %v2607_v27  ;;  %v2881_v26 = vld [vmem:[%s9781_s9 + $0x8] sm:$0xff] }
0x103c   :  { %v8620_v27 = vpack.c.bf16 %v2881_v26, %v2880_v38 }
0x103d   :  { %v2615_v29 = vmul.f32 1.442695, %v2610_v28  ;;  %v2882_v28 = vld [vmem:[%s9781_s9 + $0x10] sm:$0xff] }
0x103f   :  { %8970 = vpow2.f32 %v2615_v29  ;;  %v2883_v29 = vld [vmem:[%s9781_s9 + $0x18] sm:$0xff] }
0x1041   :  { %v8967_v32 = vpop.eup %8966 }
0x1042   :  { %v2617_v33 = vsel %vm786_vm15, %v8967_v32, 0.0 }
0x1043   :  { %2618 = vadd.xlane.f32.xlu1 %v2617_v33 }
0x1045   :  { %v8969_v34 = vpop.eup %8968 }
0x1046   :  { %v2620_v46 = vsel %vm786_vm15, %v8969_v34, 0.0 }
0x1047   :  { %2621 = vadd.xlane.f32.xlu0 %v2620_v46 }
0x1049   :  { %v8971_v36 = vpop.eup %8970 }
0x104a   :  { %v2623_v37 = vsel %vm793_vm8, %v8971_v36, 0.0 }
0x104b   :  { %2624 = vadd.xlane.f32.xlu1 %v2623_v37 }
0x10d0   :  { %v2619_v41 = vpop.xlane.xlu1 %2618 }
0x10d1   :  { %8972 = vrcp.f32 %v2619_v41 }
0x10d4   :  { %v2622_v42 = vpop.xlane.xlu0 %2621 }
0x10d5   :  { %8974 = vrcp.f32 %v2622_v42 }
0x10d8   :  { %v2625_v21 = vpop.xlane.xlu1 %2624 }
0x10d9   :  { %8976 = vrcp.f32 %v2625_v21 }
0x10db   :  { %v8973_v44 = vpop.eup %8972 }
0x10dc   :  { %v2627_v49 = vmul.f32 %v8973_v44, %v8967_v32  ;;  %v8623_v32 = vpack.c.bf16 %v2883_v29, %v2882_v28 }
0x10de   :  { %7975 = vmatmul.mubr.msk.f32.vlgmr.msra.gmra.mrb[58].mxu0 %vm786_vm15, %v2627_v49  ;;  %v7058_v49 = vld [vmem:[%s9792_s14] ss:$0 sm:$0xff] }
0x10df   :  { %v8975_v50 = vpop.eup %8974  ;;  %7977 = vmatprep.mubr.msk.f32.mxu0 %vm9112_vm4, %v9113_v18  ;;  %8621 = vmatpush3.bf16.msra.mxu0 %v8620_v27 }
0x10e0   :  { %v2629_v51 = vmul.f32 %v8975_v50, %v8969_v34  ;;  %8622 = vmatprep.subr.bf16.mxu0 %v9106_v0 }
0x10e2   :  { %7978 = vmatmul.mubr.msk.f32.gmra.mrb[60].mxu0 %vm786_vm15, %v2629_v51  ;;  %v7059_v51 = vld [vmem:[%s9797_s20] ss:$0 sm:$0xff] }
0x10e3   :  { %v8977_v23 = vpop.eup %8976  ;;  %7980 = vmatprep.mubr.msk.f32.mxu0 %vm9112_vm4, %v9113_v18  ;;  %8624 = vmatpush3.bf16.msra.mxu0 %v8623_v32 }
0x10e4   :  { %v2631_v53 = vmul.f32 %v8977_v23, %v8971_v36  ;;  %8649 = vmatprep.subr.bf16.mxu0 %v9106_v0 }
0x10e6   :  { %7981 = vmatmul.mubr.msk.f32.gmra.mrb[62].mxu0 %vm786_vm15, %v2631_v53 }
0x10e7   :  { %8002 = vmatprep.mubr.msk.f32.mxu0 %vm9112_vm4, %v9113_v18 }
0x11b1   :  { %v2710_v25 = vpop.f32.mrb[58].mxu0 }
0x11b2   :  { %v7976_v55 = vpop.f32.mrb[59].mxu0  ;;  %7986 = vmatmul.mubr.msk.f32.vlgmr.msra.gmra.mrb[78].mxu1 %vm681_vm5, %v2710_v25 }
0x11b3   :  { %7988 = vmatprep.mubr.msk.f32.mxu1 %vm9112_vm4, %v9113_v18 }
0x11b5   :  { %v2715_v31 = vpop.f32.mrb[60].mxu0 }
0x11b6   :  { %v7979_v57 = vpop.f32.mrb[61].mxu0  ;;  %7989 = vmatmul.mubr.msk.f32.gmra.mrb[80].mxu1 %vm681_vm5, %v2715_v31 }
0x11b7   :  { %7991 = vmatprep.mubr.msk.f32.mxu1 %vm9112_vm4, %v9113_v18 }
0x11b9   :  { %v2720_v59 = vpop.f32.mrb[62].mxu0 }
0x11ba   :  { %v7982_v60 = vpop.f32.mrb[63].mxu0  ;;  %7992 = vmatmul.mubr.msk.f32.gmra.mrb[82].mxu1 %vm681_vm5, %v2720_v59 }
0x11bb   :  { %8043 = vmatprep.mubr.msk.f32.mxu1 %vm9112_vm4, %v9113_v18 }
0x1285   :  { %v2801_v35 = vpop.f32.mrb[78].mxu1 }
0x1286   :  { %v2815_v62 = vadd.f32 %v2801_v35, %v9701_v39  ;;  %v7987_v40 = vpop.f32.mrb[79].mxu1 }
0x1287   :  { %v3061_v40 = vld [vmem:[%s9813_s26] sm:$0xff] }
0x1288   :  { %v9756_v63 = vadd.f32 %v2815_v62, %v9218_v54 }
0x1289   :  { %v2806_v1 = vpop.f32.mrb[80].mxu1 }
0x128a   :  { %v2816_v2 = vadd.f32 %v2806_v1, %v9704_v43  ;;  %v7990_v3 = vpop.f32.mrb[81].mxu1  ;;  %v2823_v4 = vsel %vm338_vm2, %v9756_v63, 0.0  ;;  %v3062_v1 = vld [vmem:[%s9813_s26 + $0x8] sm:$0xff] }
0x128b   :  { %2824 = vadd.xlane.f32.xlu0 %v2823_v4  ;;  %v3063_v3 = vld [vmem:[%s9813_s26 + $0x10] sm:$0xff]  ;;  %v3064_v4 = vld [vmem:[%s9813_s26 + $0x18] sm:$0xff] }
0x128c   :  { %v9762_v5 = vadd.f32 %v2816_v2, %v9228_v58  ;;  %v8626_v2 = vpack.c.bf16 %v3062_v1, %v3061_v40 }
0x128d   :  { %v2811_v6 = vpop.f32.mrb[82].mxu1 }
0x128e   :  { %v2817_v8 = vadd.f32 %v2811_v6, %v9707_v48  ;;  %v7993_v9 = vpop.f32.mrb[83].mxu1  ;;  %v2826_v39 = vsel %vm338_vm2, %v9762_v5, 0.0  ;;  %8627 = vmatpush3.bf16.msra.mxu1 %v8626_v2  ;;  %v8629_v6 = vpack.c.bf16 %v3064_v4, %v3063_v3 }
0x128f   :  { %2827 = vadd.xlane.f32.xlu1 %v2826_v39  ;;  %8628 = vmatprep.subr.bf16.mxu1 %v9106_v0  ;;  %v3066_v9 = vld [vmem:[%s9813_s26 + $0x28] sm:$0xff] }
0x1290   :  { %v9768_v54 = vadd.f32 %v2817_v8, %v9222_v56  ;;  %v3065_v8 = vld [vmem:[%s9813_s26 + $0x20] sm:$0xff] }
0x1291   :  { %v8632_v39 = vpack.c.bf16 %v3066_v9, %v3065_v8 }
0x1292   :  { %v2829_v43 = vsel %vm345_vm3, %v9768_v54, 0.0  ;;  %8630 = vmatpush3.bf16.msra.mxu1 %v8629_v6 }
0x1293   :  { %2830 = vadd.xlane.f32.xlu0 %v2829_v43  ;;  %8631 = vmatprep.subr.bf16.mxu1 %v9106_v0  ;;  %v3067_v43 = vld [vmem:[%s9813_s26 + $0x30] sm:$0xff] }
0x1296   :  { %8633 = vmatpush3.bf16.msra.mxu1 %v8632_v39 }
0x1297   :  { %8634 = vmatprep.subr.bf16.mxu1 %v9106_v0 }
0x1318   :  { %v2825_v10 = vpop.xlane.xlu0 %2824 }
0x1319   :  { %v2832_v11 = vmul.f32 0.03125, %v2825_v10  ;;  %v3068_v10 = vld [vmem:[%s9813_s26 + $0x38] sm:$0xff] }
0x131b   :  { %v2835_v58 = vsub.f32 %v9756_v63, %v2832_v11  ;;  %v8635_v11 = vpack.c.bf16 %v3068_v10, %v3067_v43 }
0x131c   :  { %v2828_v12 = vpop.xlane.xlu1 %2827 }
0x131d   :  { %v2833_v13 = vmul.f32 0.03125, %v2828_v12  ;;  %v2838_v14 = vmul.f32 %v2835_v58, %v2835_v58  ;;  %8636 = vmatpush3.bf16.msra.mxu1 %v8635_v11  ;;  %v3070_v12 = vld [vmem:[%s9813_s26 + $0x48] sm:$0xff] }
0x131e   :  { %8637 = vmatprep.subr.bf16.mxu1 %v9106_v0 }
0x131f   :  { %v2836_v48 = vsub.f32 %v9762_v5, %v2833_v13  ;;  %v2841_v15 = vsel %vm338_vm2, %v2838_v14, 0.0  ;;  %v3071_v14 = vld [vmem:[%s9813_s26 + $0x50] sm:$0xff] }
0x1320   :  { %2842 = vadd.xlane.f32.xlu1 %v2841_v15  ;;  %v2831_v16 = vpop.xlane.xlu0 %2830 }
0x1321   :  { %v2834_v17 = vmul.f32 0.03125, %v2831_v16  ;;  %v2839_v56 = vmul.f32 %v2836_v48, %v2836_v48  ;;  %v3073_v16 = vld [vmem:[%s9813_s26 + $0x60] sm:$0xff] }
0x1323   :  { %v2837_v19 = vsub.f32 %v9768_v54, %v2834_v17  ;;  %v2844_v20 = vsel %vm338_vm2, %v2839_v56, 0.0  ;;  %v3074_v17 = vld [vmem:[%s9813_s26 + $0x68] sm:$0xff] }
0x1324   :  { %2845 = vadd.xlane.f32.xlu0 %v2844_v20  ;;  %v8644_v56 = vpack.c.bf16 %v3074_v17, %v3073_v16  ;;  %v3076_v20 = vld [vmem:[%s9813_s26 + $0x78] sm:$0xff] }
0x1325   :  { %v2840_v22 = vmul.f32 %v2837_v19, %v2837_v19 }
0x1327   :  { %v2847_v24 = vsel %vm345_vm3, %v2840_v22, 0.0 }
0x1328   :  { %2848 = vadd.xlane.f32.xlu1 %v2847_v24  ;;  %v7060_v24 = vld [vmem:[%s9842_s2] ss:$0 sm:$0xff] }
0x13ad   :  { %v2843_v33 = vpop.xlane.xlu1 %2842 }
0x13ae   :  { %v2850_v34 = vmul.f32 0.03125, %v2843_v33 }
0x13b0   :  { %v2853_v46 = vadd.f32 1e-06, %v2850_v34 }
0x13b1   :  { %v2846_v36 = vpop.xlane.xlu0 %2845 }
0x13b2   :  { %8978 = vrsqrt.f32 %v2853_v46  ;;  %v2851_v37 = vmul.f32 0.03125, %v2846_v36 }
0x13b4   :  { %v2854_v47 = vadd.f32 1e-06, %v2851_v37 }
0x13b5   :  { %v2849_v41 = vpop.xlane.xlu1 %2848 }
0x13b6   :  { %8980 = vrsqrt.f32 %v2854_v47  ;;  %v2852_v42 = vmul.f32 0.03125, %v2849_v41 }
0x13b8   :  { %v2855_v21 = vadd.f32 1e-06, %v2852_v42 }
0x13ba   :  { %8982 = vrsqrt.f32 %v2855_v21 }
0x13bc   :  { %v8979_v44 = vpop.eup %8978 }
0x13bd   :  { %v2859_v50 = vmul.f32 %v8979_v44, %v2835_v58  ;;  %v3069_v58 = vld [vmem:[%s9813_s26 + $0x40] sm:$0xff] }
0x13be   :  { %v8638_v13 = vpack.c.bf16 %v3070_v12, %v3069_v58 }
0x13bf   :  { %v2868_v23 = vmul.f32 %v7058_v49, %v2859_v50 }
0x13c0   :  { %v8981_v53 = vpop.eup %8980  ;;  %8639 = vmatpush3.bf16.msra.mxu1 %v8638_v13 }
0x13c1   :  { %v2877_v25 = vadd.f32 %v7059_v51, %v2868_v23  ;;  %v2860_v55 = vmul.f32 %v8981_v53, %v2836_v48  ;;  %8640 = vmatprep.subr.bf16.mxu1 %v9106_v0  ;;  %v3072_v48 = vld [vmem:[%s9813_s26 + $0x58] sm:$0xff] }
0x13c2   :  { %v8641_v15 = vpack.c.bf16 %v3072_v48, %v3071_v14 }
0x13c3   :  { %8003 = vmatmul.mubr.msk.f32.vlgmr.msra.gmra.mrb[64].mxu0 %vm338_vm2, %v2877_v25  ;;  %v2869_v31 = vmul.f32 %v7058_v49, %v2860_v55 }
0x13c4   :  { %v8983_v57 = vpop.eup %8982  ;;  %8005 = vmatprep.mubr.msk.f32.mxu0 %vm9112_vm4, %v9113_v18  ;;  %8642 = vmatpush3.bf16.msra.mxu1 %v8641_v15 }
0x13c5   :  { %v2878_v59 = vadd.f32 %v7059_v51, %v2869_v31  ;;  %v2861_v60 = vmul.f32 %v8983_v57, %v2837_v19  ;;  %8643 = vmatprep.subr.bf16.mxu1 %v9106_v0  ;;  %v3075_v19 = vld [vmem:[%s9813_s26 + $0x70] sm:$0xff] }
0x13c6   :  { %v8647_v22 = vpack.c.bf16 %v3076_v20, %v3075_v19 }
0x13c7   :  { %8006 = vmatmul.mubr.msk.f32.gmra.mrb[66].mxu0 %vm338_vm2, %v2878_v59  ;;  %v2870_v35 = vmul.f32 %v7058_v49, %v2861_v60 }
0x13c8   :  { %8008 = vmatprep.mubr.msk.f32.mxu0 %vm9112_vm4, %v9113_v18  ;;  %8645 = vmatpush3.bf16.msra.mxu1 %v8644_v56 }
0x13c9   :  { %v2879_v62 = vadd.f32 %v7059_v51, %v2870_v35  ;;  %8646 = vmatprep.subr.bf16.mxu1 %v9106_v0 }
0x13cb   :  { %8009 = vmatmul.mubr.msk.f32.gmra.mrb[68].mxu0 %vm338_vm2, %v2879_v62 }
0x13cc   :  { %8060 = vmatprep.mubr.msk.f32.mxu0 %vm9112_vm4, %v9113_v18  ;;  %8648 = vmatpush3.bf16.msra.mxu1 %v8647_v22 }
0x13cd   :  { %8661 = vmatprep.subr.bf16.mxu1 %v9106_v0 }
0x1496   :  { %v2966_v38 = vpop.f32.mrb[64].mxu0 }
0x1497   :  { %v9845_v26 = vadd.f32 %v7060_v24, %v2966_v38  ;;  %v8004_v27 = vpop.f32.mrb[65].mxu0 }
0x1499   :  { %v9848_v28 = vmul.f32 0.70710677, %v9845_v26 }
0x149a   :  { %v2971_v29 = vpop.f32.mrb[66].mxu0 }
0x149b   :  { %v2986_v32 = vand.u32 2147483647, %v9848_v28  ;;  %v9851_v33 = vadd.f32 %v7060_v24, %v2971_v29  ;;  %v8007_v34 = vpop.f32.mrb[67].mxu0  ;;  %vm3046_vm9 = vcmp.lt.f32.partialorder %v9848_v28, 0.0 }
0x149d   :  { %v2989_v46 = vmul.f32 0.3275911, %v2986_v32  ;;  %v9854_v36 = vmul.f32 0.70710677, %v9851_v33  ;;  %v3028_v53 = vmul.f32 %v2986_v32, %v2986_v32 }
0x149e   :  { %v2976_v37 = vpop.f32.mrb[68].mxu0 }
0x149f   :  { %v2992_v47 = vadd.f32 1.0, %v2989_v46  ;;  %v2987_v41 = vand.u32 2147483647, %v9854_v36  ;;  %v8010_v42 = vpop.f32.mrb[69].mxu0  ;;  %v9857_v21 = vadd.f32 %v7060_v24, %v2976_v37  ;;  %v3031_v31 = vsub.f32 0.0, %v3028_v53 }
0x14a0   :  { %vm3047_vm10 = vcmp.lt.f32.partialorder %v9854_v36, 0.0 }
0x14a1   :  { %8984 = vrcp.f32 %v2992_v47  ;;  %v2990_v44 = vmul.f32 0.3275911, %v2987_v41  ;;  %v9860_v49 = vmul.f32 0.70710677, %v9857_v21  ;;  %v3029_v57 = vmul.f32 %v2987_v41, %v2987_v41 }
0x14a2   :  { %v3034_v62 = vmul.f32 1.442695, %v3031_v31 }
0x14a3   :  { %v2993_v50 = vadd.f32 1.0, %v2990_v44  ;;  %v2988_v51 = vand.u32 2147483647, %v9860_v49  ;;  %v3032_v40 = vsub.f32 0.0, %v3029_v57  ;;  %vm3048_vm11 = vcmp.lt.f32.partialorder %v9860_v49, 0.0 }
0x14a5   :  { %8986 = vrcp.f32 %v2993_v50  ;;  %v2991_v23 = vmul.f32 0.3275911, %v2988_v51  ;;  %v3030_v2 = vmul.f32 %v2988_v51, %v2988_v51  ;;  %v3036_v8 = vmul.f32 1.442695, %v3032_v40 }
0x14a7   :  { %v2994_v25 = vadd.f32 1.0, %v2991_v23  ;;  %v3033_v43 = vsub.f32 0.0, %v3030_v2  ;;  %v2980_v23 = vmul.f32 0.5, %v9845_v26  ;;  %v2982_v2 = vmul.f32 0.5, %v9857_v21 }
0x14a9   :  { %8988 = vrcp.f32 %v2994_v25  ;;  %v3038_v48 = vmul.f32 1.442695, %v3033_v43 }
0x14aa   :  { %8990 = vpow2.f32 %v3034_v62 }
0x14ab   :  { %v8985_v55 = vpop.eup %8984  ;;  %8992 = vpow2.f32 %v3036_v8 }
0x14ac   :  { %v3001_v59 = vmul.f32 1.0614054, %v8985_v55  ;;  %8994 = vpow2.f32 %v3038_v48 }
0x14ae   :  { %v3004_v60 = vadd.f32 -1.4531521, %v3001_v59 }
0x14af   :  { %v8987_v35 = vpop.eup %8986 }
0x14b0   :  { %v3007_v1 = vmul.f32 %v8985_v55, %v3004_v60  ;;  %v3002_v3 = vmul.f32 1.0614054, %v8987_v35 }
0x14b2   :  { %v3010_v4 = vadd.f32 1.4214138, %v3007_v1  ;;  %v3005_v6 = vadd.f32 -1.4531521, %v3002_v3 }
0x14b3   :  { %v8989_v9 = vpop.eup %8988 }
0x14b4   :  { %v3013_v39 = vmul.f32 %v8985_v55, %v3010_v4  ;;  %v3008_v10 = vmul.f32 %v8987_v35, %v3005_v6  ;;  %v3003_v11 = vmul.f32 1.0614054, %v8989_v9  ;;  %v8991_v24 = vpop.eup %8990 }
0x14b5   :  { %v8993_v37 = vpop.eup %8992 }
0x14b6   :  { %v3016_v58 = vadd.f32 -0.28449672, %v3013_v39  ;;  %v3011_v12 = vadd.f32 1.4214138, %v3008_v10  ;;  %v3006_v13 = vadd.f32 -1.4531521, %v3003_v11 }
0x14b8   :  { %v3019_v14 = vmul.f32 %v8985_v55, %v3016_v58  ;;  %v3014_v15 = vmul.f32 %v8987_v35, %v3011_v12  ;;  %v3009_v16 = vmul.f32 %v8989_v9, %v3006_v13 }
0x14ba   :  { %v3022_v17 = vadd.f32 0.2548296, %v3019_v14  ;;  %v3017_v56 = vadd.f32 -0.28449672, %v3014_v15  ;;  %v3012_v19 = vadd.f32 1.4214138, %v3009_v16 }
0x14bc   :  { %v3025_v20 = vmul.f32 %v8985_v55, %v3022_v17  ;;  %v3020_v22 = vmul.f32 %v8987_v35, %v3017_v56  ;;  %v3015_v38 = vmul.f32 %v8989_v9, %v3012_v19  ;;  %v8995_v55 = vpop.eup %8994 }
0x14be   :  { %v3040_v27 = vmul.f32 %v8991_v24, %v3025_v20  ;;  %v3023_v29 = vadd.f32 0.2548296, %v3020_v22  ;;  %v3018_v32 = vadd.f32 -0.28449672, %v3015_v38 }
0x14c0   :  { %v3043_v34 = vsub.f32 1.0, %v3040_v27  ;;  %v3026_v46 = vmul.f32 %v8987_v35, %v3023_v29  ;;  %v3021_v47 = vmul.f32 %v8989_v9, %v3018_v32  ;;  %v2981_v35 = vmul.f32 0.5, %v9851_v33  ;;  %v7064_v33 = vld [vmem:[%s9878_s10] ss:$0 sm:$0xff] }
0x14c2   :  { %v3049_v41 = vsub.f32 0.0, %v3043_v34  ;;  %v3041_v42 = vmul.f32 %v8993_v37, %v3026_v46  ;;  %v3024_v44 = vadd.f32 0.2548296, %v3021_v47  ;;  %v7071_v46 = vld [vmem:[%s9241_s25 + $0x88] sm:$0xff]  ;;  %v7088_v37 = vld [vmem:[%s9279_s11 + $0x80] sm:$0xff] }
0x14c4   :  { %v3052_v50 = vsel %vm3046_vm9, %v3049_v41, %v3043_v34  ;;  %v3044_v51 = vsub.f32 1.0, %v3041_v42  ;;  %v3027_v25 = vmul.f32 %v8989_v9, %v3024_v44  ;;  %v7070_v34 = vld [vmem:[%s9241_s25 + $0x80] sm:$0xff]  ;;  %v7089_v41 = vld [vmem:[%s9279_s11 + $0x88] sm:$0xff]  ;;  %v7072_v44 = vld [vmem:[%s9241_s25 + $0x90] sm:$0xff]  ;;  %vm6239_vm9 = vcmask 517120  }
0x14c5   :  { %v3055_v53 = vadd.f32 1.0, %v3052_v50  ;;  %v8650_v47 = vpack.c.bf16 %v7071_v46, %v7070_v34  ;;  %v8662_v42 = vpack.c.bf16 %v7089_v41, %v7088_v37  ;;  %v7073_v50 = vld [vmem:[%s9241_s25 + $0x98] sm:$0xff] }
0x14c6   :  { %v3050_v31 = vsub.f32 0.0, %v3044_v51  ;;  %v3042_v59 = vmul.f32 %v8995_v55, %v3027_v25 }
0x14c7   :  { %v3058_v57 = vmul.f32 %v3055_v53, %v2980_v23  ;;  %8651 = vmatpush3.bf16.msra.mxu0 %v8650_v47  ;;  %v8653_v23 = vpack.c.bf16 %v7073_v50, %v7072_v44  ;;  %v7091_v53 = vld [vmem:[%s9279_s11 + $0x98] sm:$0xff]  ;;  %v7084_v44 = vld [vmem:[%s9332_s15 + $0x4] ss:$0 sm:$0xff] }
0x14c8   :  { %v3053_v60 = vsel %vm3047_vm10, %v3050_v31, %v3044_v51  ;;  %v3045_v40 = vsub.f32 1.0, %v3042_v59  ;;  %8652 = vmatprep.subr.bf16.mxu0 %v9106_v0  ;;  %v7090_v51 = vld [vmem:[%s9279_s11 + $0x90] sm:$0xff] }
0x14c9   :  { %8044 = vmatmul.mubr.f32.vlgmr.msra.gmra.mrb[84].mxu1 %v3058_v57  ;;  %v3056_v62 = vadd.f32 1.0, %v3053_v60  ;;  %v8665_v25 = vpack.c.bf16 %v7091_v53, %v7090_v51 }
0x14ca   :  { %8046 = vmatprep.mubr.msk.f32.mxu1 %vm9112_vm4, %v9113_v18  ;;  %v3051_v1 = vsub.f32 0.0, %v3045_v40  ;;  %8663 = vmatpush3.bf16.msra.mxu1 %v8662_v42 }
0x14cb   :  { %v3059_v28 = vmul.f32 %v3056_v62, %v2981_v35  ;;  %8664 = vmatprep.subr.bf16.mxu1 %v9106_v0  ;;  %8654 = vmatpush3.bf16.msra.mxu0 %v8653_v23 }
0x14cc   :  { %v3054_v26 = vsel %vm3048_vm11, %v3051_v1, %v3045_v40  ;;  %8655 = vmatprep.subr.bf16.mxu0 %v9106_v0 }
0x14cd   :  { %8047 = vmatmul.mubr.f32.gmra.mrb[86].mxu1 %v3059_v28  ;;  %v3057_v36 = vadd.f32 1.0, %v3054_v26  ;;  %v7067_v26 = vld [vmem:[%s9256_s29 + $0x1] ss:$0 sm:$0xff]  ;;  %s9147_s29 = smov 64  }
0x14ce   :  { %8049 = vmatprep.mubr.msk.f32.mxu1 %vm9112_vm4, %v9113_v18  ;;  %8666 = vmatpush3.bf16.msra.mxu1 %v8665_v25 }
0x14cf   :  { %v3060_v3 = vmul.f32 %v3057_v36, %v2982_v2  ;;  %8671 = vmatprep.subr.bf16.mxu1 %v9106_v0  ;;  %v7079_v36 = vld [vmem:[%s9261_s3 + $0x80] sm:$0xff] }
0x14d1   :  { %8050 = vmatmul.mubr.f32.gmra.mrb[88].mxu1 %v3060_v3  ;;  %v7080_v3 = vld [vmem:[%s9261_s3 + $0x88] sm:$0xff] }
0x14d2   :  { %8094 = vmatprep.mubr.msk.f32.mxu1 %vm9112_vm4, %v9113_v18 }
0x159c   :  { %v3150_v49 = vpop.f32.mrb[84].mxu1 }
0x159d   :  { %v3151_v4 = vadd.f32 %v7064_v33, %v3150_v49  ;;  %v8045_v21 = vpop.f32.mrb[85].mxu1 }
0x159e   :  { %v8656_v21 = vpack.c.bf16 %v7080_v3, %v7079_v36 }
0x159f   :  { %v9882_v6 = vadd.f32 %v3151_v4, %v9756_v63 }
0x15a0   :  { %v3155_v8 = vpop.f32.mrb[86].mxu1 }
0x15a1   :  { %v3156_v9 = vadd.f32 %v7064_v33, %v3155_v8  ;;  %v8048_v39 = vpop.f32.mrb[87].mxu1  ;;  %v3171_v43 = vsel %vm338_vm2, %v9882_v6, 0.0 }
0x15a2   :  { %3172 = vadd.xlane.f32.xlu0 %v3171_v43  ;;  %v7081_v39 = vld [vmem:[%s9261_s3 + $0x90] sm:$0xff]  ;;  %v7082_v43 = vld [vmem:[%s9261_s3 + $0x98] sm:$0xff] }
0x15a3   :  { %v9887_v10 = vadd.f32 %v3156_v9, %v9762_v5 }
0x15a4   :  { %v3160_v11 = vpop.f32.mrb[88].mxu1 }
0x15a5   :  { %v3174_v58 = vsel %vm338_vm2, %v9887_v10, 0.0  ;;  %v3161_v12 = vadd.f32 %v7064_v33, %v3160_v11  ;;  %v8051_v13 = vpop.f32.mrb[89].mxu1  ;;  %v7068_v33 = vld [vmem:[%s9266_s7 + $0x1] ss:$0 sm:$0xff] }
0x15a6   :  { %3175 = vadd.xlane.f32.xlu1 %v3174_v58  ;;  %v8659_v13 = vpack.c.bf16 %v7082_v43, %v7081_v39 }
0x15a7   :  { %v9892_v63 = vadd.f32 %v3161_v12, %v9768_v54 }
0x15a9   :  { %v3177_v14 = vsel %vm345_vm3, %v9892_v63, 0.0 }
0x15aa   :  { %3178 = vadd.xlane.f32.xlu0 %v3177_v14 }
0x162f   :  { %v3173_v48 = vpop.xlane.xlu0 %3172 }
0x1630   :  { %v3180_v15 = vmul.f32 0.03125, %v3173_v48 }
0x1632   :  { %v3183_v16 = vsub.f32 %v9882_v6, %v3180_v15 }
0x1633   :  { %v3176_v5 = vpop.xlane.xlu1 %3175 }
0x1634   :  { %v3181_v17 = vmul.f32 0.03125, %v3176_v5  ;;  %v3186_v56 = vmul.f32 %v3183_v16, %v3183_v16 }
0x1636   :  { %v3184_v19 = vsub.f32 %v9887_v10, %v3181_v17  ;;  %v3189_v54 = vsel %vm338_vm2, %v3186_v56, 0.0 }
0x1637   :  { %3190 = vadd.xlane.f32.xlu1 %v3189_v54  ;;  %v3179_v20 = vpop.xlane.xlu0 %3178 }
0x1638   :  { %v3187_v22 = vmul.f32 %v3184_v19, %v3184_v19  ;;  %v3182_v24 = vmul.f32 0.03125, %v3179_v20 }
0x163a   :  { %v3192_v38 = vsel %vm338_vm2, %v3187_v22, 0.0  ;;  %v3185_v27 = vsub.f32 %v9892_v63, %v3182_v24 }
0x163b   :  { %3193 = vadd.xlane.f32.xlu0 %v3192_v38 }
0x163c   :  { %v3188_v29 = vmul.f32 %v3185_v27, %v3185_v27 }
0x163e   :  { %v3195_v32 = vsel %vm345_vm3, %v3188_v29, 0.0 }
0x163f   :  { %3196 = vadd.xlane.f32.xlu1 %v3195_v32 }
0x16c4   :  { %v3191_v55 = vpop.xlane.xlu1 %3190 }
0x16c5   :  { %v3198_v31 = vmul.f32 0.03125, %v3191_v55 }
0x16c7   :  { %v3201_v57 = vadd.f32 1e-06, %v3198_v31 }
0x16c8   :  { %v3194_v59 = vpop.xlane.xlu0 %3193 }
0x16c9   :  { %8996 = vrsqrt.f32 %v3201_v57  ;;  %v3199_v60 = vmul.f32 0.03125, %v3194_v59  ;;  %v7075_v57 = vld [vmem:[%s9349_s23 + $0x4] ss:$0 sm:$0xff] }
0x16cb   :  { %v3202_v35 = vadd.f32 1e-06, %v3199_v60 }
0x16cc   :  { %v3197_v62 = vpop.xlane.xlu1 %3196 }
0x16cd   :  { %8998 = vrsqrt.f32 %v3202_v35  ;;  %v3200_v40 = vmul.f32 0.03125, %v3197_v62 }
0x16cf   :  { %v3203_v28 = vadd.f32 1e-06, %v3200_v40 }
0x16d1   :  { %9000 = vrsqrt.f32 %v3203_v28 }
0x16d3   :  { %v8997_v1 = vpop.eup %8996 }
0x16d4   :  { %v3207_v2 = vmul.f32 %v8997_v1, %v3183_v16 }
0x16d6   :  { %v3216_v49 = vmul.f32 %v7067_v26, %v3207_v2 }
0x16d7   :  { %v8999_v4 = vpop.eup %8998 }
0x16d8   :  { %v9918_v8 = vadd.f32 %v7068_v33, %v3216_v49  ;;  %v3208_v9 = vmul.f32 %v8999_v4, %v3184_v19  ;;  %v7093_v19 = vld [vmem:[%s9344_s19 + $0x4] ss:$0 sm:$0xff] }
0x16da   :  { %v3217_v11 = vmul.f32 %v7067_v26, %v3208_v9  ;;  %8061 = vmatmul.mubr.msk.f32.vlgmr.msra.gmra.mrb[70].mxu0 %vm338_vm2, %v9918_v8  ;;  %8095 = vmatmul.mubr.msk.f32.vlgmr.msra.gmra.mrb[90].mxu1 %vm338_vm2, %v9918_v8 }
0x16db   :  { %8063 = vmatprep.mubr.msk.f32.mxu0 %vm9112_vm4, %v9113_v18  ;;  %8657 = vmatpush3.bf16.msra.mxu0 %v8656_v21  ;;  %v9001_v58 = vpop.eup %9000 }
0x16dc   :  { %v9928_v12 = vadd.f32 %v7068_v33, %v3217_v11  ;;  %8097 = vmatprep.mubr.msk.f32.mxu1 %vm9112_vm4, %v9113_v18  ;;  %8658 = vmatprep.subr.bf16.mxu0 %v9106_v0  ;;  %v3209_v14 = vmul.f32 %v9001_v58, %v3185_v27 }
0x16de   :  { %8064 = vmatmul.mubr.msk.f32.gmra.mrb[72].mxu0 %vm338_vm2, %v9928_v12  ;;  %8098 = vmatmul.mubr.msk.f32.gmra.mrb[92].mxu1 %vm338_vm2, %v9928_v12  ;;  %v3218_v48 = vmul.f32 %v7067_v26, %v3209_v14 }
0x16df   :  { %8066 = vmatprep.mubr.msk.f32.mxu0 %vm9112_vm4, %v9113_v18  ;;  %8100 = vmatprep.mubr.msk.f32.mxu1 %vm9112_vm4, %v9113_v18 }
0x16e0   :  { %8660 = vmatpush3.bf16.msra.mxu0 %v8659_v13  ;;  %v9941_v15 = vadd.f32 %v7068_v33, %v3218_v48 }
0x16e1   :  { %8667 = vmatprep.subr.bf16.mxu0 %v9106_v0 }
0x16e2   :  { %8067 = vmatmul.mubr.msk.f32.gmra.mrb[74].mxu0 %vm338_vm2, %v9941_v15  ;;  %8101 = vmatmul.mubr.msk.f32.gmra.mrb[94].mxu1 %vm338_vm2, %v9941_v15 }
0x16e3   :  { %8077 = vmatprep.mubr.msk.f32.mxu0 %vm9112_vm4, %v9113_v18  ;;  %8124 = vmatprep.mubr.msk.f32.mxu1 %vm9112_vm4, %v9113_v18 }
0x16e6   :  { %8078 = vmatmul.mubr.msk.f32.vlgmr.msra.gmra.mrb[76].mxu0 %vm338_vm2, %v9918_v8 }
0x16e7   :  { %8080 = vmatprep.mubr.msk.f32.mxu0 %vm9112_vm4, %v9113_v18 }
0x16ea   :  { %8081 = vmatmul.mubr.msk.f32.gmra.mrb[78].mxu0 %vm338_vm2, %v9928_v12 }
0x16eb   :  { %8083 = vmatprep.mubr.msk.f32.mxu0 %vm9112_vm4, %v9113_v18 }
0x16ee   :  { %8084 = vmatmul.mubr.msk.f32.gmra.mrb[80].mxu0 %vm338_vm2, %v9941_v15 }
0x16ef   :  { %8109 = vmatprep.mubr.msk.f32.mxu0 %vm9112_vm4, %v9113_v18 }
0x17ad   :  { %v3318_v16 = vpop.f32.mrb[70].mxu0  ;;  %v3504_v5 = vpop.f32.mrb[90].mxu1 }
0x17ae   :  { %v8062_v17 = vpop.f32.mrb[71].mxu0  ;;  %v8096_v56 = vpop.f32.mrb[91].mxu1  ;;  %v3505_v22 = vadd.f32 %v7093_v19, %v3504_v5  ;;  %v3319_v60 = vadd.f32 %v7075_v57, %v3318_v16 }
0x17b1   :  { %v3323_v54 = vpop.f32.mrb[72].mxu0  ;;  %v3509_v20 = vpop.f32.mrb[92].mxu1 }
0x17b2   :  { %v3510_v24 = vadd.f32 %v7093_v19, %v3509_v20  ;;  %v8065_v38 = vpop.f32.mrb[73].mxu0  ;;  %v8099_v27 = vpop.f32.mrb[93].mxu1  ;;  %v3324_v35 = vadd.f32 %v7075_v57, %v3323_v54 }
0x17b4   :  { %v8672_v29 = vpack.c.bf16 %v3510_v24, %v3505_v22 }
0x17b5   :  { %v3328_v32 = vpop.f32.mrb[74].mxu0  ;;  %v3514_v34 = vpop.f32.mrb[94].mxu1 }
0x17b6   :  { %8673 = vmatpush3.bf16.msra.mxu1 %v8672_v29  ;;  %v8068_v46 = vpop.f32.mrb[75].mxu0  ;;  %v8102_v37 = vpop.f32.mrb[95].mxu1  ;;  %v3515_v47 = vadd.f32 %v7093_v19, %v3514_v34  ;;  %v3329_v62 = vadd.f32 %v7075_v57, %v3328_v32  ;;  %v7107_v29 = vld [vmem:[%s9393_s28 + $0x20] sm:$0xff] }
0x17b7   :  { %8122 = vmatprep.subr.mxu1 %v9113_v18  ;;  %v7112_v37 = vld [vmem:[%s9241_s25 + $0xa0] sm:$0xff] }
0x17b8   :  { %v7130_v57 = vld [vmem:[%s9279_s11 + $0xa0] sm:$0xff] }
0x17b9   :  { %v3411_v41 = vpop.f32.mrb[76].mxu0 }
0x17ba   :  { %8123 = vmatpush3.msk.msra.mxu1 %vm276_vm1, %v3515_v47  ;;  %v8079_v42 = vpop.f32.mrb[77].mxu0  ;;  %v3412_v51 = vadd.f32 %v7084_v44, %v3411_v41  ;;  %v7113_v47 = vld [vmem:[%s9241_s25 + $0xa8] sm:$0xff] }
0x17bb   :  { %8674 = vmatprep.subr.bf16.mxu1 %v9106_v0  ;;  %v8675_v42 = vpack.c.bf16 %v7113_v47, %v7112_v37 }
0x17bd   :  { %v3416_v50 = vpop.f32.mrb[78].mxu0 }
0x17be   :  { %v3417_v23 = vadd.f32 %v7084_v44, %v3416_v50  ;;  %v8082_v53 = vpop.f32.mrb[79].mxu0  ;;  %v7114_v50 = vld [vmem:[%s9241_s25 + $0xb0] sm:$0xff] }
0x17c0   :  { %v8668_v25 = vpack.c.bf16 %v3417_v23, %v3412_v51  ;;  %v7115_v51 = vld [vmem:[%s9241_s25 + $0xb8] sm:$0xff] }
0x17c1   :  { %v3421_v55 = vpop.f32.mrb[80].mxu0  ;;  %v8678_v53 = vpack.c.bf16 %v7115_v51, %v7114_v50 }
0x17c2   :  { %v8085_v31 = vpop.f32.mrb[81].mxu0  ;;  %8670 = vmatpush3.bf16.xpose.msk.msra.mxu0 %vm9337_vm6, %v8668_v25  ;;  %v3422_v59 = vadd.f32 %v7084_v44, %v3421_v55 }
0x17c3   :  { %8107 = vmatprep.subr.mxu0 %v9113_v18 }
0x17ca   :  { %8108 = vmatpush3.xpose.msk.msra.mxu0 %vm681_vm5, %v3422_v59  ;;  %v7131_v59 = vld [vmem:[%s9279_s11 + $0xa8] sm:$0xff] }
0x17cb   :  { %8133 = vmatprep.subr.mxu0 %v9113_v18 }
0x17cd   :  { %8110 = vmatmul.mubr.msk.f32.vlgmr.msra.gmra.mrb[82].mxu0 %vm681_vm5, %v3319_v60  ;;  %v8687_v60 = vpack.c.bf16 %v7131_v59, %v7130_v57 }
0x17ce   :  { %8112 = vmatprep.mubr.msk.f32.mxu0 %vm9112_vm4, %v9113_v18  ;;  %8134 = vmatpush3.msra.mxu0 %v7107_v29 }
0x17cf   :  { %8680 = vmatprep.subr.bf16.mxu0 %v9106_v0 }
0x17d1   :  { %8113 = vmatmul.mubr.msk.f32.gmra.mrb[84].mxu0 %vm681_vm5, %v3324_v35  ;;  %v7132_v35 = vld [vmem:[%s9279_s11 + $0xb0] sm:$0xff] }
0x17d2   :  { %8115 = vmatprep.mubr.msk.f32.mxu0 %vm9112_vm4, %v9113_v18 }
0x17d5   :  { %8116 = vmatmul.mubr.msk.f32.gmra.mrb[86].mxu0 %vm681_vm5, %v3329_v62  ;;  %v7133_v62 = vld [vmem:[%s9279_s11 + $0xb8] sm:$0xff] }
0x17d6   :  { %8135 = vmatprep.mubr.msk.f32.mxu0 %vm9112_vm4, %v9113_v18 }
0x18a0   :  { %v3602_v40 = vpop.f32.mrb[82].mxu0 }
0x18a1   :  { %v3616_v28 = vmul.f32 0.35355338, %v3602_v40  ;;  %v8111_v1 = vpop.f32.mrb[83].mxu0  ;;  %v8690_v40 = vpack.c.bf16 %v7133_v62, %v7132_v35  ;;  %v7117_v35 = vld [vmem:[%s9349_s23 + $0x5] ss:$0 sm:$0xff] }
0x18a2   :  { %v7122_v1 = vld [vmem:[%s9261_s3 + $0xa8] sm:$0xff] }
0x18a3   :  { %v3619_v26 = vadd.f32 %v3616_v28, %v9375_v45  ;;  %v7121_v28 = vld [vmem:[%s9261_s3 + $0xa0] sm:$0xff] }
0x18a4   :  { %v3607_v2 = vpop.f32.mrb[84].mxu0 }
0x18a5   :  { %v3617_v36 = vmul.f32 0.35355338, %v3607_v2  ;;  %v8114_v3 = vpop.f32.mrb[85].mxu0  ;;  %v3622_v33 = vsel %vm786_vm15, %v3619_v26, -inf  ;;  %v7123_v2 = vld [vmem:[%s9261_s3 + $0xb0] sm:$0xff] }
0x18a6   :  { %3623 = vmax.xlane.f32.xlu0 %v3622_v33 }
0x18a7   :  { %v3620_v49 = vadd.f32 %v3617_v36, %v9378_v52  ;;  %v7124_v36 = vld [vmem:[%s9261_s3 + $0xb8] sm:$0xff] }
0x18a8   :  { %v3612_v4 = vpop.f32.mrb[86].mxu0 }
0x18a9   :  { %v3618_v21 = vmul.f32 0.35355338, %v3612_v4  ;;  %v8117_v9 = vpop.f32.mrb[87].mxu0  ;;  %v3625_v39 = vsel %vm786_vm15, %v3620_v49, -inf }
0x18aa   :  { %3626 = vmax.xlane.f32.xlu1 %v3625_v39 }
0x18ab   :  { %v3621_v43 = vadd.f32 %v3618_v21, %v9382_v61 }
0x18ad   :  { %v3628_v11 = vsel %vm793_vm8, %v3621_v43, -inf }
0x18ae   :  { %3629 = vmax.xlane.f32.xlu0 %v3628_v11 }
0x1933   :  { %v3624_v58 = vpop.xlane.xlu0 %3623 }
0x1934   :  { %v3631_v13 = vsub.f32 %v3619_v26, %v3624_v58  ;;  %v8681_v26 = vpack.c.bf16 %v7122_v1, %v7121_v28 }
0x1936   :  { %v3634_v14 = vmul.f32 1.442695, %v3631_v13 }
0x1937   :  { %v3627_v48 = vpop.xlane.xlu1 %3626 }
0x1938   :  { %9002 = vpow2.f32 %v3634_v14  ;;  %v3632_v16 = vsub.f32 %v3620_v49, %v3627_v48  ;;  %v8684_v49 = vpack.c.bf16 %v7124_v36, %v7123_v2 }
0x193a   :  { %v3636_v5 = vmul.f32 1.442695, %v3632_v16 }
0x193b   :  { %v3630_v17 = vpop.xlane.xlu0 %3629 }
0x193c   :  { %9004 = vpow2.f32 %v3636_v5  ;;  %v3633_v56 = vsub.f32 %v3621_v43, %v3630_v17  ;;  %v7135_v17 = vld [vmem:[%s9344_s19 + $0x5] ss:$0 sm:$0xff] }
0x193e   :  { %v3638_v19 = vmul.f32 1.442695, %v3633_v56 }
0x1940   :  { %9006 = vpow2.f32 %v3638_v19 }
0x1942   :  { %v9003_v54 = vpop.eup %9002 }
0x1943   :  { %v3640_v20 = vsel %vm786_vm15, %v9003_v54, 0.0 }
0x1944   :  { %3641 = vadd.xlane.f32.xlu1 %v3640_v20 }
0x1946   :  { %v9005_v22 = vpop.eup %9004 }
0x1947   :  { %v3643_v24 = vsel %vm786_vm15, %v9005_v22, 0.0 }
0x1948   :  { %3644 = vadd.xlane.f32.xlu0 %v3643_v24 }
0x194a   :  { %v9007_v38 = vpop.eup %9006 }
0x194b   :  { %v3646_v27 = vsel %vm793_vm8, %v9007_v38, 0.0 }
0x194c   :  { %3647 = vadd.xlane.f32.xlu1 %v3646_v27 }
0x19d1   :  { %v3642_v32 = vpop.xlane.xlu1 %3641 }
0x19d2   :  { %9008 = vrcp.f32 %v3642_v32 }
0x19d5   :  { %v3645_v34 = vpop.xlane.xlu0 %3644 }
0x19d6   :  { %9010 = vrcp.f32 %v3645_v34  ;;  %v10074_v34 = vld [vmem:[%s9585_s4 + $0x1] ss:$0 sm:$0xff] }
0x19d9   :  { %v3648_v46 = vpop.xlane.xlu1 %3647 }
0x19da   :  { %9012 = vrcp.f32 %v3648_v46 }
0x19dc   :  { %v9009_v41 = vpop.eup %9008 }
0x19dd   :  { %v3650_v44 = vmul.f32 %v9009_v41, %v9003_v54 }
0x19df   :  { %8125 = vmatmul.mubr.msk.f32.vlgmr.msra.gmra.mrb[96].mxu1 %vm786_vm15, %v3650_v44 }
0x19e0   :  { %v9011_v23 = vpop.eup %9010  ;;  %8127 = vmatprep.mubr.msk.f32.mxu1 %vm9112_vm4, %v9113_v18  ;;  %8676 = vmatpush3.bf16.msra.mxu1 %v8675_v42 }
0x19e1   :  { %v3652_v25 = vmul.f32 %v9011_v23, %v9005_v22  ;;  %8677 = vmatprep.subr.bf16.mxu1 %v9106_v0  ;;  %v7126_v23 = vld [vmem:[%s9332_s15 + $0x5] ss:$0 sm:$0xff] }
0x19e3   :  { %8128 = vmatmul.mubr.msk.f32.gmra.mrb[98].mxu1 %vm786_vm15, %v3652_v25 }
0x19e4   :  { %v9013_v55 = vpop.eup %9012  ;;  %8130 = vmatprep.mubr.msk.f32.mxu1 %vm9112_vm4, %v9113_v18  ;;  %8679 = vmatpush3.bf16.msra.mxu1 %v8678_v53 }
0x19e5   :  { %v3654_v31 = vmul.f32 %v9013_v55, %v9007_v38  ;;  %8686 = vmatprep.subr.bf16.mxu1 %v9106_v0 }
0x19e7   :  { %8131 = vmatmul.mubr.msk.f32.gmra.mrb[100].mxu1 %vm786_vm15, %v3654_v31 }
0x19e8   :  { %8152 = vmatprep.mubr.msk.f32.mxu1 %vm9112_vm4, %v9113_v18 }
0x19eb   :  { %8153 = vmatmul.mubr.msk.f32.vlgmr.msra.gmra.mrb[102].mxu1 %vm338_vm2, %v9918_v8 }
0x19ec   :  { %8155 = vmatprep.mubr.msk.f32.mxu1 %vm9112_vm4, %v9113_v18  ;;  %8688 = vmatpush3.bf16.msra.mxu1 %v8687_v60 }
0x19ed   :  { %8689 = vmatprep.subr.bf16.mxu1 %v9106_v0 }
0x19ef   :  { %8156 = vmatmul.mubr.msk.f32.gmra.mrb[104].mxu1 %vm338_vm2, %v9928_v12 }
0x19f0   :  { %8158 = vmatprep.mubr.msk.f32.mxu1 %vm9112_vm4, %v9113_v18  ;;  %8691 = vmatpush3.bf16.msra.mxu1 %v8690_v40 }
0x19f1   :  { %8696 = vmatprep.subr.bf16.mxu1 %v9106_v0 }
0x19f3   :  { %8159 = vmatmul.mubr.msk.f32.gmra.mrb[106].mxu1 %vm338_vm2, %v9941_v15 }
0x19f4   :  { %8186 = vmatprep.mubr.msk.f32.mxu1 %vm9112_vm4, %v9113_v18 }
0x19f7   :  { %8187 = vmatmul.mubr.msk.f32.vlgmr.msra.gmra.mrb[108].mxu1 %vm338_vm2, %v9918_v8 }
0x19f8   :  { %8189 = vmatprep.mubr.msk.f32.mxu1 %vm9112_vm4, %v9113_v18 }
0x19fb   :  { %8190 = vmatmul.mubr.msk.f32.gmra.mrb[110].mxu1 %vm338_vm2, %v9928_v12 }
0x19fc   :  { %8192 = vmatprep.mubr.msk.f32.mxu1 %vm9112_vm4, %v9113_v18 }
0x19ff   :  { %8193 = vmatmul.mubr.msk.f32.gmra.mrb[112].mxu1 %vm338_vm2, %v9941_v15 }
0x1a00   :  { %8216 = vmatprep.mubr.msk.f32.mxu1 %vm9112_vm4, %v9113_v18 }
0x1ab2   :  { %v3733_v3 = vpop.f32.mrb[96].mxu1 }
0x1ab3   :  { %v8126_v33 = vpop.f32.mrb[97].mxu1  ;;  %8136 = vmatmul.mubr.msk.f32.vlgmr.msra.gmra.mrb[88].mxu0 %vm681_vm5, %v3733_v3 }
0x1ab4   :  { %8138 = vmatprep.mubr.msk.f32.mxu0 %vm9112_vm4, %v9113_v18  ;;  %8682 = vmatpush3.bf16.msra.mxu0 %v8681_v26 }
0x1ab5   :  { %8683 = vmatprep.subr.bf16.mxu0 %v9106_v0 }
0x1ab6   :  { %v3738_v4 = vpop.f32.mrb[98].mxu1 }
0x1ab7   :  { %v8129_v21 = vpop.f32.mrb[99].mxu1  ;;  %8139 = vmatmul.mubr.msk.f32.gmra.mrb[90].mxu0 %vm681_vm5, %v3738_v4 }
0x1ab8   :  { %8141 = vmatprep.mubr.msk.f32.mxu0 %vm9112_vm4, %v9113_v18  ;;  %8685 = vmatpush3.bf16.msra.mxu0 %v8684_v49 }
0x1ab9   :  { %8692 = vmatprep.subr.bf16.mxu0 %v9106_v0 }
0x1aba   :  { %v3743_v9 = vpop.f32.mrb[100].mxu1 }
0x1abb   :  { %v8132_v39 = vpop.f32.mrb[101].mxu1  ;;  %8142 = vmatmul.mubr.msk.f32.gmra.mrb[92].mxu0 %vm681_vm5, %v3743_v9 }
0x1abc   :  { %8169 = vmatprep.mubr.msk.f32.mxu0 %vm9112_vm4, %v9113_v18 }
0x1abe   :  { %v3926_v43 = vpop.f32.mrb[102].mxu1 }
0x1abf   :  { %v8154_v11 = vpop.f32.mrb[103].mxu1  ;;  %8170 = vmatmul.mubr.msk.f32.vlgmr.msra.gmra.mrb[94].mxu0 %vm338_vm2, %v9918_v8  ;;  %v3927_v40 = vadd.f32 %v7117_v35, %v3926_v43 }
0x1ac0   :  { %8172 = vmatprep.mubr.msk.f32.mxu0 %vm9112_vm4, %v9113_v18 }
0x1ac2   :  { %v3931_v58 = vpop.f32.mrb[104].mxu1 }
0x1ac3   :  { %v8157_v13 = vpop.f32.mrb[105].mxu1  ;;  %8173 = vmatmul.mubr.msk.f32.gmra.mrb[96].mxu0 %vm338_vm2, %v9928_v12  ;;  %v3932_v28 = vadd.f32 %v7117_v35, %v3931_v58 }
0x1ac4   :  { %8175 = vmatprep.mubr.msk.f32.mxu0 %vm9112_vm4, %v9113_v18 }
0x1ac6   :  { %v3936_v14 = vpop.f32.mrb[106].mxu1 }
0x1ac7   :  { %v8160_v48 = vpop.f32.mrb[107].mxu1  ;;  %8176 = vmatmul.mubr.msk.f32.gmra.mrb[98].mxu0 %vm338_vm2, %v9941_v15  ;;  %v3937_v1 = vadd.f32 %v7117_v35, %v3936_v14 }
0x1ac8   :  { %8201 = vmatprep.mubr.msk.f32.mxu0 %vm9112_vm4, %v9113_v18 }
0x1aca   :  { %v4112_v16 = vpop.f32.mrb[108].mxu1 }
0x1acb   :  { %v8188_v5 = vpop.f32.mrb[109].mxu1  ;;  %v4113_v19 = vadd.f32 %v7135_v17, %v4112_v16 }
0x1ace   :  { %v4117_v56 = vpop.f32.mrb[110].mxu1 }
0x1acf   :  { %v4118_v54 = vadd.f32 %v7135_v17, %v4117_v56  ;;  %v8191_v20 = vpop.f32.mrb[111].mxu1 }
0x1ad1   :  { %v8697_v22 = vpack.c.bf16 %v4118_v54, %v4113_v19 }
0x1ad2   :  { %v4122_v24 = vpop.f32.mrb[112].mxu1 }
0x1ad3   :  { %v8194_v38 = vpop.f32.mrb[113].mxu1  ;;  %8698 = vmatpush3.bf16.msra.mxu1 %v8697_v22  ;;  %v4123_v27 = vadd.f32 %v7135_v17, %v4122_v24 }
0x1ad4   :  { %8214 = vmatprep.subr.mxu1 %v9113_v18 }
0x1ad7   :  { %8215 = vmatpush3.msk.msra.mxu1 %vm276_vm1, %v4123_v27 }
0x1ad8   :  { %8699 = vmatprep.subr.bf16.mxu1 %v9106_v0 }
0x1b86   :  { %v10071_v29 = vpop.f32.mrb[88].mxu0 }
0x1b87   :  { %v8137_v32 = vpop.f32.mrb[89].mxu0 }
0x1b8a   :  { %v3829_v46 = vpop.f32.mrb[90].mxu0 }
0x1b8b   :  { %v10077_v37 = vadd.f32 %v10074_v34, %v3829_v46  ;;  %v8140_v47 = vpop.f32.mrb[91].mxu0 }
0x1b8e   :  { %v3834_v41 = vpop.f32.mrb[92].mxu0 }
0x1b8f   :  { %v10080_v42 = vadd.f32 %v10074_v34, %v3834_v41  ;;  %v8143_v44 = vpop.f32.mrb[93].mxu0  ;;  %v7149_v41 = vld [vmem:[%s9393_s28 + $0x28] sm:$0xff] }
0x1b92   :  { %v4019_v50 = vpop.f32.mrb[94].mxu0 }
0x1b93   :  { %v8171_v51 = vpop.f32.mrb[95].mxu0  ;;  %v4020_v25 = vadd.f32 %v7126_v23, %v4019_v50 }
0x1b96   :  { %v4024_v53 = vpop.f32.mrb[96].mxu0 }
0x1b97   :  { %v4025_v55 = vadd.f32 %v7126_v23, %v4024_v53  ;;  %v8174_v31 = vpop.f32.mrb[97].mxu0  ;;  %v7154_v53 = vld [vmem:[%s9241_s25 + $0xc8] sm:$0xff] }
0x1b99   :  { %v8693_v57 = vpack.c.bf16 %v4025_v55, %v4020_v25 }
0x1b9a   :  { %v4029_v59 = vpop.f32.mrb[98].mxu0 }
0x1b9b   :  { %v8177_v60 = vpop.f32.mrb[99].mxu0  ;;  %8695 = vmatpush3.bf16.xpose.msk.msra.mxu0 %vm9337_vm6, %v8693_v57  ;;  %v4030_v62 = vadd.f32 %v7126_v23, %v4029_v59  ;;  %v7153_v23 = vld [vmem:[%s9241_s25 + $0xc0] sm:$0xff]  ;;  %v7155_v57 = vld [vmem:[%s9241_s25 + $0xd0] sm:$0xff]  ;;  %v7156_v59 = vld [vmem:[%s9241_s25 + $0xd8] sm:$0xff] }
0x1b9c   :  { %8199 = vmatprep.subr.mxu0 %v9113_v18  ;;  %v8700_v55 = vpack.c.bf16 %v7154_v53, %v7153_v23  ;;  %v8703_v35 = vpack.c.bf16 %v7156_v59, %v7155_v57  ;;  %v3844_v23 = vadd.f32 %v10074_v34, %v10071_v29 }
0x1ba3   :  { %8200 = vmatpush3.xpose.msk.msra.mxu0 %vm681_vm5, %v4030_v62 }
0x1ba4   :  { %8225 = vmatprep.subr.mxu0 %v9113_v18 }
0x1ba6   :  { %8202 = vmatmul.mubr.msk.f32.vlgmr.msra.gmra.mrb[100].mxu0 %vm681_vm5, %v3927_v40 }
0x1ba7   :  { %8204 = vmatprep.mubr.msk.f32.mxu0 %vm9112_vm4, %v9113_v18  ;;  %8226 = vmatpush3.msra.mxu0 %v7149_v41 }
0x1ba8   :  { %8705 = vmatprep.subr.bf16.mxu0 %v9106_v0 }
0x1baa   :  { %8205 = vmatmul.mubr.msk.f32.gmra.mrb[102].mxu0 %vm681_vm5, %v3932_v28 }
0x1bab   :  { %8207 = vmatprep.mubr.msk.f32.mxu0 %vm9112_vm4, %v9113_v18 }
0x1bae   :  { %8208 = vmatmul.mubr.msk.f32.gmra.mrb[104].mxu0 %vm681_vm5, %v3937_v1  ;;  %v7171_v1 = vld [vmem:[%s9279_s11 + $0xc0] sm:$0xff] }
0x1baf   :  { %8227 = vmatprep.mubr.msk.f32.mxu0 %vm9112_vm4, %v9113_v18 }
0x1c79   :  { %v4210_v26 = vpop.f32.mrb[100].mxu0 }
0x1c7a   :  { %v4224_v2 = vmul.f32 0.35355338, %v4210_v26  ;;  %v8203_v36 = vpop.f32.mrb[101].mxu0  ;;  %v7172_v26 = vld [vmem:[%s9279_s11 + $0xc8] sm:$0xff] }
0x1c7b   :  { %v7173_v36 = vld [vmem:[%s9279_s11 + $0xd0] sm:$0xff] }
0x1c7c   :  { %v4227_v3 = vadd.f32 %v4224_v2, %v9375_v45  ;;  %v8712_v2 = vpack.c.bf16 %v7172_v26, %v7171_v1  ;;  %v7167_v1 = vld [vmem:[%s9332_s15 + $0x6] ss:$0 sm:$0xff] }
0x1c7d   :  { %v4215_v33 = vpop.f32.mrb[102].mxu0 }
0x1c7e   :  { %v4225_v49 = vmul.f32 0.35355338, %v4215_v33  ;;  %v8206_v4 = vpop.f32.mrb[103].mxu0  ;;  %v4230_v21 = vsel %vm786_vm15, %v4227_v3, -inf }
0x1c7f   :  { %4231 = vmax.xlane.f32.xlu0 %v4230_v21  ;;  %v7163_v4 = vld [vmem:[%s9261_s3 + $0xc8] sm:$0xff] }
0x1c80   :  { %v4228_v9 = vadd.f32 %v4225_v49, %v9378_v52  ;;  %v7162_v49 = vld [vmem:[%s9261_s3 + $0xc0] sm:$0xff] }
0x1c81   :  { %v4220_v39 = vpop.f32.mrb[104].mxu0  ;;  %v8706_v21 = vpack.c.bf16 %v7163_v4, %v7162_v49 }
0x1c82   :  { %v4226_v43 = vmul.f32 0.35355338, %v4220_v39  ;;  %v8209_v11 = vpop.f32.mrb[105].mxu0  ;;  %v4233_v58 = vsel %vm786_vm15, %v4228_v9, -inf  ;;  %v7165_v39 = vld [vmem:[%s9261_s3 + $0xd8] sm:$0xff] }
0x1c83   :  { %4234 = vmax.xlane.f32.xlu1 %v4233_v58 }
0x1c84   :  { %v4229_v13 = vadd.f32 %v4226_v43, %v9382_v61 }
0x1c86   :  { %v4236_v14 = vsel %vm793_vm8, %v4229_v13, -inf }
0x1c87   :  { %4237 = vmax.xlane.f32.xlu0 %v4236_v14 }
0x1d0c   :  { %v4232_v48 = vpop.xlane.xlu0 %4231 }
0x1d0d   :  { %v4239_v16 = vsub.f32 %v4227_v3, %v4232_v48  ;;  %v7174_v3 = vld [vmem:[%s9279_s11 + $0xd8] sm:$0xff] }
0x1d0e   :  { %v8715_v33 = vpack.c.bf16 %v7174_v3, %v7173_v36 }
0x1d0f   :  { %v4242_v5 = vmul.f32 1.442695, %v4239_v16 }
0x1d10   :  { %v4235_v17 = vpop.xlane.xlu1 %4234 }
0x1d11   :  { %9014 = vpow2.f32 %v4242_v5  ;;  %v4240_v56 = vsub.f32 %v4228_v9, %v4235_v17  ;;  %v7164_v9 = vld [vmem:[%s9261_s3 + $0xd0] sm:$0xff] }
0x1d12   :  { %v8709_v58 = vpack.c.bf16 %v7165_v39, %v7164_v9 }
0x1d13   :  { %v4244_v19 = vmul.f32 1.442695, %v4240_v56 }
0x1d14   :  { %v4238_v54 = vpop.xlane.xlu0 %4237 }
0x1d15   :  { %9016 = vpow2.f32 %v4244_v19  ;;  %v4241_v20 = vsub.f32 %v4229_v13, %v4238_v54 }
0x1d17   :  { %v4246_v22 = vmul.f32 1.442695, %v4241_v20 }
0x1d19   :  { %9018 = vpow2.f32 %v4246_v22 }
0x1d1b   :  { %v9015_v24 = vpop.eup %9014 }
0x1d1c   :  { %v4248_v38 = vsel %vm786_vm15, %v9015_v24, 0.0 }
0x1d1d   :  { %4249 = vadd.xlane.f32.xlu1 %v4248_v38  ;;  %v7176_v38 = vld [vmem:[%s9344_s19 + $0x6] ss:$0 sm:$0xff] }
0x1d1f   :  { %v9017_v27 = vpop.eup %9016 }
0x1d20   :  { %v4251_v32 = vsel %vm786_vm15, %v9017_v27, 0.0 }
0x1d21   :  { %4252 = vadd.xlane.f32.xlu0 %v4251_v32 }
0x1d23   :  { %v9019_v46 = vpop.eup %9018 }
0x1d24   :  { %v4254_v47 = vsel %vm793_vm8, %v9019_v46, 0.0 }
0x1d25   :  { %4255 = vadd.xlane.f32.xlu1 %v4254_v47 }
0x1daa   :  { %v4250_v44 = vpop.xlane.xlu1 %4249 }
0x1dab   :  { %9020 = vrcp.f32 %v4250_v44 }
0x1dae   :  { %v4253_v50 = vpop.xlane.xlu0 %4252 }
0x1daf   :  { %9022 = vrcp.f32 %v4253_v50 }
0x1db2   :  { %v4256_v51 = vpop.xlane.xlu1 %4255 }
0x1db3   :  { %9024 = vrcp.f32 %v4256_v51 }
0x1db5   :  { %v9021_v25 = vpop.eup %9020 }
0x1db6   :  { %v4258_v31 = vmul.f32 %v9021_v25, %v9015_v24 }
0x1db8   :  { %8217 = vmatmul.mubr.msk.f32.vlgmr.msra.gmra.mrb[114].mxu1 %vm786_vm15, %v4258_v31 }
0x1db9   :  { %v9023_v60 = vpop.eup %9022  ;;  %8219 = vmatprep.mubr.msk.f32.mxu1 %vm9112_vm4, %v9113_v18  ;;  %8701 = vmatpush3.bf16.msra.mxu1 %v8700_v55 }
0x1dba   :  { %v4260_v62 = vmul.f32 %v9023_v60, %v9017_v27  ;;  %8702 = vmatprep.subr.bf16.mxu1 %v9106_v0 }
0x1dbc   :  { %8220 = vmatmul.mubr.msk.f32.gmra.mrb[116].mxu1 %vm786_vm15, %v4260_v62 }
0x1dbd   :  { %v9025_v40 = vpop.eup %9024  ;;  %8222 = vmatprep.mubr.msk.f32.mxu1 %vm9112_vm4, %v9113_v18  ;;  %8704 = vmatpush3.bf16.msra.mxu1 %v8703_v35 }
0x1dbe   :  { %v4262_v28 = vmul.f32 %v9025_v40, %v9019_v46  ;;  %8711 = vmatprep.subr.bf16.mxu1 %v9106_v0 }
0x1dc0   :  { %8223 = vmatmul.mubr.msk.f32.gmra.mrb[118].mxu1 %vm786_vm15, %v4262_v28 }
0x1dc1   :  { %8244 = vmatprep.mubr.msk.f32.mxu1 %vm9112_vm4, %v9113_v18 }
0x1dc4   :  { %8245 = vmatmul.mubr.msk.f32.vlgmr.msra.gmra.mrb[120].mxu1 %vm338_vm2, %v9918_v8 }
0x1dc5   :  { %8247 = vmatprep.mubr.msk.f32.mxu1 %vm9112_vm4, %v9113_v18  ;;  %8713 = vmatpush3.bf16.msra.mxu1 %v8712_v2 }
0x1dc6   :  { %8714 = vmatprep.subr.bf16.mxu1 %v9106_v0 }
0x1dc8   :  { %8248 = vmatmul.mubr.msk.f32.gmra.mrb[122].mxu1 %vm338_vm2, %v9928_v12 }
0x1dc9   :  { %8250 = vmatprep.mubr.msk.f32.mxu1 %vm9112_vm4, %v9113_v18  ;;  %8716 = vmatpush3.bf16.msra.mxu1 %v8715_v33 }
0x1dca   :  { %8721 = vmatprep.subr.bf16.mxu1 %v9106_v0 }
0x1dcc   :  { %8251 = vmatmul.mubr.msk.f32.gmra.mrb[124].mxu1 %vm338_vm2, %v9941_v15 }
0x1dcd   :  { %8278 = vmatprep.mubr.msk.f32.mxu1 %vm9112_vm4, %v9113_v18 }
0x1dd0   :  { %8279 = vmatmul.mubr.msk.f32.vlgmr.msra.gmra.mrb[126].mxu1 %vm338_vm2, %v9918_v8 }
0x1dd1   :  { %8281 = vmatprep.mubr.msk.f32.mxu1 %vm9112_vm4, %v9113_v18 }
0x1dd4   :  { %8282 = vmatmul.mubr.msk.f32.gmra.mrb[128].mxu1 %vm338_vm2, %v9928_v12 }
0x1dd5   :  { %8284 = vmatprep.mubr.msk.f32.mxu1 %vm9112_vm4, %v9113_v18 }
0x1dd8   :  { %8285 = vmatmul.mubr.msk.f32.gmra.mrb[130].mxu1 %vm338_vm2, %v9941_v15 }
0x1dd9   :  { %8308 = vmatprep.mubr.msk.f32.mxu1 %vm9112_vm4, %v9113_v18 }
0x1e8b   :  { %v4341_v43 = vpop.f32.mrb[114].mxu1 }
0x1e8c   :  { %v8218_v11 = vpop.f32.mrb[115].mxu1  ;;  %8228 = vmatmul.mubr.msk.f32.vlgmr.msra.gmra.mrb[106].mxu0 %vm681_vm5, %v4341_v43 }
0x1e8d   :  { %8230 = vmatprep.mubr.msk.f32.mxu0 %vm9112_vm4, %v9113_v18  ;;  %8707 = vmatpush3.bf16.msra.mxu0 %v8706_v21 }
0x1e8e   :  { %8708 = vmatprep.subr.bf16.mxu0 %v9106_v0 }
0x1e8f   :  { %v4346_v13 = vpop.f32.mrb[116].mxu1 }
0x1e90   :  { %v8221_v14 = vpop.f32.mrb[117].mxu1  ;;  %8231 = vmatmul.mubr.msk.f32.gmra.mrb[108].mxu0 %vm681_vm5, %v4346_v13 }
0x1e91   :  { %8233 = vmatprep.mubr.msk.f32.mxu0 %vm9112_vm4, %v9113_v18  ;;  %8710 = vmatpush3.bf16.msra.mxu0 %v8709_v58 }
0x1e92   :  { %8717 = vmatprep.subr.bf16.mxu0 %v9106_v0 }
0x1e93   :  { %v4351_v48 = vpop.f32.mrb[118].mxu1 }
0x1e94   :  { %v8224_v16 = vpop.f32.mrb[119].mxu1  ;;  %8234 = vmatmul.mubr.msk.f32.gmra.mrb[110].mxu0 %vm681_vm5, %v4351_v48 }
0x1e95   :  { %8261 = vmatprep.mubr.msk.f32.mxu0 %vm9112_vm4, %v9113_v18 }
0x1e97   :  { %v4528_v5 = vpop.f32.mrb[120].mxu1 }
0x1e98   :  { %v8246_v17 = vpop.f32.mrb[121].mxu1  ;;  %8262 = vmatmul.mubr.msk.f32.vlgmr.msra.gmra.mrb[112].mxu0 %vm338_vm2, %v9918_v8 }
0x1e99   :  { %8264 = vmatprep.mubr.msk.f32.mxu0 %vm9112_vm4, %v9113_v18 }
0x1e9b   :  { %v4533_v56 = vpop.f32.mrb[122].mxu1 }
0x1e9c   :  { %v8249_v19 = vpop.f32.mrb[123].mxu1  ;;  %8265 = vmatmul.mubr.msk.f32.gmra.mrb[114].mxu0 %vm338_vm2, %v9928_v12 }
0x1e9d   :  { %8267 = vmatprep.mubr.msk.f32.mxu0 %vm9112_vm4, %v9113_v18 }
0x1e9f   :  { %v4538_v54 = vpop.f32.mrb[124].mxu1 }
0x1ea0   :  { %v8252_v20 = vpop.f32.mrb[125].mxu1  ;;  %8268 = vmatmul.mubr.msk.f32.gmra.mrb[116].mxu0 %vm338_vm2, %v9941_v15 }
0x1ea1   :  { %8293 = vmatprep.mubr.msk.f32.mxu0 %vm9112_vm4, %v9113_v18 }
0x1ea3   :  { %v4714_v22 = vpop.f32.mrb[126].mxu1 }
0x1ea4   :  { %v8280_v24 = vpop.f32.mrb[127].mxu1  ;;  %v4715_v32 = vadd.f32 %v7176_v38, %v4714_v22 }
0x1ea7   :  { %v4719_v27 = vpop.f32.mrb[128].mxu1 }
0x1ea8   :  { %v4720_v46 = vadd.f32 %v7176_v38, %v4719_v27  ;;  %v8283_v47 = vpop.f32.mrb[129].mxu1 }
0x1eaa   :  { %v8722_v41 = vpack.c.bf16 %v4720_v46, %v4715_v32 }
0x1eab   :  { %v4724_v44 = vpop.f32.mrb[130].mxu1 }
0x1eac   :  { %v8286_v50 = vpop.f32.mrb[131].mxu1  ;;  %8723 = vmatpush3.bf16.msra.mxu1 %v8722_v41  ;;  %v4725_v51 = vadd.f32 %v7176_v38, %v4724_v44 }
0x1ead   :  { %8306 = vmatprep.subr.mxu1 %v9113_v18 }
0x1eb0   :  { %8307 = vmatpush3.msk.msra.mxu1 %vm276_vm1, %v4725_v51 }
0x1eb1   :  { %8724 = vmatprep.subr.bf16.mxu1 %v9106_v0 }
0x1f5f   :  { %v4432_v53 = vpop.f32.mrb[106].mxu0 }
0x1f60   :  { %v10187_v25 = vadd.f32 %v4432_v53, %v3844_v23  ;;  %v8229_v55 = vpop.f32.mrb[107].mxu0 }
0x1f63   :  { %v4437_v31 = vpop.f32.mrb[108].mxu0 }
0x1f64   :  { %v10190_v57 = vadd.f32 %v4437_v31, %v10077_v37  ;;  %v8232_v59 = vpop.f32.mrb[109].mxu0  ;;  %v7158_v37 = vld [vmem:[%s9349_s23 + $0x6] ss:$0 sm:$0xff] }
0x1f65   :  { %v4534_v4 = vadd.f32 %v7158_v37, %v4533_v56  ;;  %v4539_v21 = vadd.f32 %v7158_v37, %v4538_v54  ;;  %v7190_v59 = vld [vmem:[%s9393_s28 + $0x30] sm:$0xff] }
0x1f67   :  { %v4442_v60 = vpop.f32.mrb[110].mxu0 }
0x1f68   :  { %v10193_v35 = vadd.f32 %v4442_v60, %v10080_v42  ;;  %v8235_v62 = vpop.f32.mrb[111].mxu0  ;;  %v4529_v42 = vadd.f32 %v7158_v37, %v4528_v5 }
0x1f6b   :  { %v4621_v40 = vpop.f32.mrb[112].mxu0 }
0x1f6c   :  { %v8263_v28 = vpop.f32.mrb[113].mxu0  ;;  %v4622_v29 = vadd.f32 %v7167_v1, %v4621_v40 }
0x1f6d   :  { %v7194_v28 = vld [vmem:[%s9241_s25 + $0xe0] sm:$0xff] }
0x1f6f   :  { %v4626_v26 = vpop.f32.mrb[114].mxu0 }
0x1f70   :  { %v4627_v34 = vadd.f32 %v7167_v1, %v4626_v26  ;;  %v8266_v2 = vpop.f32.mrb[115].mxu0 }
0x1f71   :  { %v7196_v2 = vld [vmem:[%s9241_s25 + $0xf0] sm:$0xff] }
0x1f72   :  { %v8718_v36 = vpack.c.bf16 %v4627_v34, %v4622_v29 }
0x1f73   :  { %v4631_v3 = vpop.f32.mrb[116].mxu0 }
0x1f74   :  { %v8269_v33 = vpop.f32.mrb[117].mxu0  ;;  %8720 = vmatpush3.bf16.xpose.msk.msra.mxu0 %vm9337_vm6, %v8718_v36  ;;  %v4632_v49 = vadd.f32 %v7167_v1, %v4631_v3  ;;  %v7195_v1 = vld [vmem:[%s9241_s25 + $0xe8] sm:$0xff]  ;;  %v7197_v36 = vld [vmem:[%s9241_s25 + $0xf8] sm:$0xff]  ;;  %s9131_s25 = smov 24  }
0x1f75   :  { %8291 = vmatprep.subr.mxu0 %v9113_v18  ;;  %v8725_v29 = vpack.c.bf16 %v7195_v1, %v7194_v28  ;;  %v8728_v33 = vpack.c.bf16 %v7197_v36, %v7196_v2  ;;  %s6890_s7 = sld [smem:[%s10655_s0 + %s9131_s25]]   ;;  %s9140_s25 = smov 27  }
0x1f7c   :  { %8292 = vmatpush3.xpose.msk.msra.mxu0 %vm681_vm5, %v4632_v49 }
0x1f7d   :  { %8317 = vmatprep.subr.mxu0 %v9113_v18 }
0x1f7f   :  { %8294 = vmatmul.mubr.msk.f32.vlgmr.msra.gmra.mrb[118].mxu0 %vm681_vm5, %v4529_v42 }
0x1f80   :  { %8296 = vmatprep.mubr.msk.f32.mxu0 %vm9112_vm4, %v9113_v18  ;;  %8318 = vmatpush3.msra.mxu0 %v7190_v59 }
0x1f81   :  { %8730 = vmatprep.subr.bf16.mxu0 %v9106_v0 }
0x1f83   :  { %8297 = vmatmul.mubr.msk.f32.gmra.mrb[120].mxu0 %vm681_vm5, %v4534_v4  ;;  %v7212_v4 = vld [vmem:[%s9279_s11 + $0xe0] sm:$0xff] }
0x1f84   :  { %8299 = vmatprep.mubr.msk.f32.mxu0 %vm9112_vm4, %v9113_v18 }
0x1f87   :  { %8300 = vmatmul.mubr.msk.f32.gmra.mrb[122].mxu0 %vm681_vm5, %v4539_v21  ;;  %v7213_v21 = vld [vmem:[%s9279_s11 + $0xe8] sm:$0xff] }
0x1f88   :  { %8319 = vmatprep.mubr.msk.f32.mxu0 %vm9112_vm4, %v9113_v18 }
0x2052   :  { %v4812_v9 = vpop.f32.mrb[118].mxu0 }
0x2053   :  { %v4826_v39 = vmul.f32 0.35355338, %v4812_v9  ;;  %v8295_v43 = vpop.f32.mrb[119].mxu0  ;;  %v8737_v9 = vpack.c.bf16 %v7213_v21, %v7212_v4 }
0x2054   :  { %v7215_v43 = vld [vmem:[%s9279_s11 + $0xf8] sm:$0xff] }
0x2055   :  { %v4829_v11 = vadd.f32 %v4826_v39, %v9375_v45  ;;  %v7214_v39 = vld [vmem:[%s9279_s11 + $0xf0] sm:$0xff]  ;;  %s9132_s11 = smov 23  }
0x2056   :  { %v4817_v58 = vpop.f32.mrb[120].mxu0 }
0x2057   :  { %v4827_v13 = vmul.f32 0.35355338, %v4817_v58  ;;  %v8298_v14 = vpop.f32.mrb[121].mxu0  ;;  %v4832_v48 = vsel %vm786_vm15, %v4829_v11, -inf  ;;  %v7203_v58 = vld [vmem:[%s9261_s3 + $0xe0] sm:$0xff] }
0x2058   :  { %4833 = vmax.xlane.f32.xlu0 %v4832_v48  ;;  %v7205_v48 = vld [vmem:[%s9261_s3 + $0xf0] sm:$0xff] }
0x2059   :  { %v4830_v16 = vadd.f32 %v4827_v13, %v9378_v52  ;;  %v7204_v13 = vld [vmem:[%s9261_s3 + $0xe8] sm:$0xff] }
0x205a   :  { %v4822_v5 = vpop.f32.mrb[122].mxu0  ;;  %v8731_v14 = vpack.c.bf16 %v7204_v13, %v7203_v58 }
0x205b   :  { %v4828_v17 = vmul.f32 0.35355338, %v4822_v5  ;;  %v8301_v56 = vpop.f32.mrb[123].mxu0  ;;  %v4835_v19 = vsel %vm786_vm15, %v4830_v16, -inf }
0x205c   :  { %4836 = vmax.xlane.f32.xlu1 %v4835_v19 }
0x205d   :  { %v4831_v54 = vadd.f32 %v4828_v17, %v9382_v61 }
0x205f   :  { %v4838_v20 = vsel %vm793_vm8, %v4831_v54, -inf }
0x2060   :  { %4839 = vmax.xlane.f32.xlu0 %v4838_v20 }
0x20e5   :  { %v4834_v22 = vpop.xlane.xlu0 %4833 }
0x20e6   :  { %v4841_v24 = vsub.f32 %v4829_v11, %v4834_v22  ;;  %v8740_v11 = vpack.c.bf16 %v7215_v43, %v7214_v39 }
0x20e8   :  { %v4844_v38 = vmul.f32 1.442695, %v4841_v24 }
0x20e9   :  { %v4837_v27 = vpop.xlane.xlu1 %4836 }
0x20ea   :  { %9026 = vpow2.f32 %v4844_v38  ;;  %v4842_v32 = vsub.f32 %v4830_v16, %v4837_v27  ;;  %v7206_v16 = vld [vmem:[%s9261_s3 + $0xf8] sm:$0xff]  ;;  %s9148_s3 = smov 36  }
0x20eb   :  { %v8734_v56 = vpack.c.bf16 %v7206_v16, %v7205_v48 }
0x20ec   :  { %v4846_v46 = vmul.f32 1.442695, %v4842_v32 }
0x20ed   :  { %v4840_v47 = vpop.xlane.xlu0 %4839 }
0x20ee   :  { %9028 = vpow2.f32 %v4846_v46  ;;  %v4843_v41 = vsub.f32 %v4831_v54, %v4840_v47 }
0x20f0   :  { %v4848_v44 = vmul.f32 1.442695, %v4843_v41 }
0x20f2   :  { %9030 = vpow2.f32 %v4848_v44  ;;  %v7217_v44 = vld [vmem:[%s9344_s19 + $0x7] ss:$0 sm:$0xff]  ;;  %s10581_s19 = sld [smem:[%s10655_s0 + %s9136_s24]]  }
0x20f4   :  { %v9027_v50 = vpop.eup %9026 }
0x20f5   :  { %v4850_v51 = vsel %vm786_vm15, %v9027_v50, 0.0 }
0x20f6   :  { %4851 = vadd.xlane.f32.xlu1 %v4850_v51 }
0x20f8   :  { %v9029_v23 = vpop.eup %9028 }
0x20f9   :  { %v4853_v53 = vsel %vm786_vm15, %v9029_v23, 0.0 }
0x20fa   :  { %4854 = vadd.xlane.f32.xlu0 %v4853_v53 }
0x20fc   :  { %v9031_v55 = vpop.eup %9030 }
0x20fd   :  { %v4856_v31 = vsel %vm793_vm8, %v9031_v55, 0.0 }
0x20fe   :  { %4857 = vadd.xlane.f32.xlu1 %v4856_v31 }
0x2183   :  { %v4852_v60 = vpop.xlane.xlu1 %4851 }
0x2184   :  { %9032 = vrcp.f32 %v4852_v60 }
0x2187   :  { %v4855_v62 = vpop.xlane.xlu0 %4854 }
0x2188   :  { %9034 = vrcp.f32 %v4855_v62 }
0x218b   :  { %v4858_v40 = vpop.xlane.xlu1 %4857 }
0x218c   :  { %9036 = vrcp.f32 %v4858_v40 }
0x218e   :  { %v9033_v26 = vpop.eup %9032 }
0x218f   :  { %v4860_v34 = vmul.f32 %v9033_v26, %v9027_v50 }
0x2191   :  { %8309 = vmatmul.mubr.msk.f32.vlgmr.msra.gmra.mrb[132].mxu1 %vm786_vm15, %v4860_v34 }
0x2192   :  { %v9035_v3 = vpop.eup %9034  ;;  %8311 = vmatprep.mubr.msk.f32.mxu1 %vm9112_vm4, %v9113_v18  ;;  %8726 = vmatpush3.bf16.msra.mxu1 %v8725_v29 }
0x2193   :  { %v4862_v37 = vmul.f32 %v9035_v3, %v9029_v23  ;;  %8727 = vmatprep.subr.bf16.mxu1 %v9106_v0  ;;  %v7208_v3 = vld [vmem:[%s9332_s15 + $0x7] ss:$0 sm:$0xff]  ;;  %s6902_s15 = sld [smem:[%s10655_s0 + %s9148_s3]]  }
0x2195   :  { %8312 = vmatmul.mubr.msk.f32.gmra.mrb[134].mxu1 %vm786_vm15, %v4862_v37 }
0x2196   :  { %v9037_v49 = vpop.eup %9036  ;;  %8314 = vmatprep.mubr.msk.f32.mxu1 %vm9112_vm4, %v9113_v18  ;;  %8729 = vmatpush3.bf16.msra.mxu1 %v8728_v33 }
0x2197   :  { %v4864_v42 = vmul.f32 %v9037_v49, %v9031_v55  ;;  %8736 = vmatprep.subr.bf16.mxu1 %v9106_v0 }
0x2199   :  { %8315 = vmatmul.mubr.msk.f32.gmra.mrb[136].mxu1 %vm786_vm15, %v4864_v42 }
0x219a   :  { %8336 = vmatprep.mubr.msk.f32.mxu1 %vm9112_vm4, %v9113_v18 }
0x219d   :  { %8337 = vmatmul.mubr.msk.f32.vlgmr.msra.gmra.mrb[138].mxu1 %vm338_vm2, %v9918_v8 }
0x219e   :  { %8339 = vmatprep.mubr.msk.f32.mxu1 %vm9112_vm4, %v9113_v18  ;;  %8738 = vmatpush3.bf16.msra.mxu1 %v8737_v9 }
0x219f   :  { %8739 = vmatprep.subr.bf16.mxu1 %v9106_v0 }
0x21a1   :  { %8340 = vmatmul.mubr.msk.f32.gmra.mrb[140].mxu1 %vm338_vm2, %v9928_v12 }
0x21a2   :  { %8342 = vmatprep.mubr.msk.f32.mxu1 %vm9112_vm4, %v9113_v18  ;;  %8741 = vmatpush3.bf16.msra.mxu1 %v8740_v11 }
0x21a3   :  { %8746 = vmatprep.subr.bf16.mxu1 %v9106_v0 }
0x21a5   :  { %8343 = vmatmul.mubr.msk.f32.gmra.mrb[142].mxu1 %vm338_vm2, %v9941_v15 }
0x21a6   :  { %8370 = vmatprep.mubr.msk.f32.mxu1 %vm9112_vm4, %v9113_v18 }
0x21a9   :  { %8371 = vmatmul.mubr.msk.f32.vlgmr.msra.gmra.mrb[144].mxu1 %vm338_vm2, %v9918_v8 }
0x21aa   :  { %8373 = vmatprep.mubr.msk.f32.mxu1 %vm9112_vm4, %v9113_v18 }
0x21ad   :  { %8374 = vmatmul.mubr.msk.f32.gmra.mrb[146].mxu1 %vm338_vm2, %v9928_v12 }
0x21ae   :  { %8376 = vmatprep.mubr.msk.f32.mxu1 %vm9112_vm4, %v9113_v18 }
0x21b1   :  { %8377 = vmatmul.mubr.msk.f32.gmra.mrb[148].mxu1 %vm338_vm2, %v9941_v15 }
0x21b2   :  { %8400 = vmatprep.mubr.msk.f32.mxu1 %vm9112_vm4, %v9113_v18 }
0x2264   :  { %v4943_v5 = vpop.f32.mrb[132].mxu1 }
0x2265   :  { %v8310_v17 = vpop.f32.mrb[133].mxu1  ;;  %8320 = vmatmul.mubr.msk.f32.vlgmr.msra.gmra.mrb[124].mxu0 %vm681_vm5, %v4943_v5 }
0x2266   :  { %8322 = vmatprep.mubr.msk.f32.mxu0 %vm9112_vm4, %v9113_v18  ;;  %8732 = vmatpush3.bf16.msra.mxu0 %v8731_v14 }
0x2267   :  { %8733 = vmatprep.subr.bf16.mxu0 %v9106_v0 }
0x2268   :  { %v4948_v19 = vpop.f32.mrb[134].mxu1 }
0x2269   :  { %v8313_v54 = vpop.f32.mrb[135].mxu1  ;;  %8323 = vmatmul.mubr.msk.f32.gmra.mrb[126].mxu0 %vm681_vm5, %v4948_v19 }
0x226a   :  { %8325 = vmatprep.mubr.msk.f32.mxu0 %vm9112_vm4, %v9113_v18  ;;  %8735 = vmatpush3.bf16.msra.mxu0 %v8734_v56 }
0x226b   :  { %8742 = vmatprep.subr.bf16.mxu0 %v9106_v0 }
0x226c   :  { %v4953_v20 = vpop.f32.mrb[136].mxu1 }
0x226d   :  { %v8316_v22 = vpop.f32.mrb[137].mxu1  ;;  %8326 = vmatmul.mubr.msk.f32.gmra.mrb[128].mxu0 %vm681_vm5, %v4953_v20 }
0x226e   :  { %8353 = vmatprep.mubr.msk.f32.mxu0 %vm9112_vm4, %v9113_v18 }
0x2270   :  { %v5130_v24 = vpop.f32.mrb[138].mxu1 }
0x2271   :  { %v8338_v38 = vpop.f32.mrb[139].mxu1  ;;  %8354 = vmatmul.mubr.msk.f32.vlgmr.msra.gmra.mrb[130].mxu0 %vm338_vm2, %v9918_v8 }
0x2272   :  { %8356 = vmatprep.mubr.msk.f32.mxu0 %vm9112_vm4, %v9113_v18 }
0x2274   :  { %v5135_v27 = vpop.f32.mrb[140].mxu1 }
0x2275   :  { %v8341_v32 = vpop.f32.mrb[141].mxu1  ;;  %8357 = vmatmul.mubr.msk.f32.gmra.mrb[132].mxu0 %vm338_vm2, %v9928_v12 }
0x2276   :  { %8359 = vmatprep.mubr.msk.f32.mxu0 %vm9112_vm4, %v9113_v18 }
0x2278   :  { %v5140_v46 = vpop.f32.mrb[142].mxu1 }
0x2279   :  { %v8344_v47 = vpop.f32.mrb[143].mxu1  ;;  %8360 = vmatmul.mubr.msk.f32.gmra.mrb[134].mxu0 %vm338_vm2, %v9941_v15 }
0x227a   :  { %8385 = vmatprep.mubr.msk.f32.mxu0 %vm9112_vm4, %v9113_v18 }
0x227c   :  { %v5316_v8 = vpop.f32.mrb[144].mxu1 }
0x227d   :  { %v8372_v41 = vpop.f32.mrb[145].mxu1  ;;  %v5317_v51 = vadd.f32 %v7217_v44, %v5316_v8 }
0x2280   :  { %v5321_v50 = vpop.f32.mrb[146].mxu1 }
0x2281   :  { %v5322_v23 = vadd.f32 %v7217_v44, %v5321_v50  ;;  %v8375_v53 = vpop.f32.mrb[147].mxu1 }
0x2283   :  { %v8747_v55 = vpack.c.bf16 %v5322_v23, %v5317_v51 }
0x2284   :  { %v5326_v12 = vpop.f32.mrb[148].mxu1 }
0x2285   :  { %v8378_v31 = vpop.f32.mrb[149].mxu1  ;;  %8748 = vmatpush3.bf16.msra.mxu1 %v8747_v55  ;;  %v5327_v59 = vadd.f32 %v7217_v44, %v5326_v12 }
0x2286   :  { %8398 = vmatprep.subr.mxu1 %v9113_v18 }
0x2289   :  { %8399 = vmatpush3.msk.msra.mxu1 %vm276_vm1, %v5327_v59 }
0x228a   :  { %8749 = vmatprep.subr.bf16.mxu1 %v9106_v0 }
0x2338   :  { %v5034_v15 = vpop.f32.mrb[124].mxu0 }
0x2339   :  { %v10299_v60 = vadd.f32 %v5034_v15, %v10187_v25  ;;  %v8321_v62 = vpop.f32.mrb[125].mxu0 }
0x233c   :  { %v5039_v40 = vpop.f32.mrb[126].mxu0 }
0x233d   :  { %v10302_v28 = vadd.f32 %v5039_v40, %v10190_v57  ;;  %v8324_v1 = vpop.f32.mrb[127].mxu0  ;;  %v7199_v57 = vld [vmem:[%s9349_s23 + $0x7] ss:$0 sm:$0xff]  ;;  %v7231_v40 = vld [vmem:[%s9393_s28 + $0x38] sm:$0xff]  ;;  %s10451_s23 = sld [smem:[%s10655_s0 + %s9132_s11]]   ;;  %s9133_s28 = smov 21  }
0x233e   :  { %v5136_v39 = vadd.f32 %v7199_v57, %v5135_v27  ;;  %v5141_v7 = vadd.f32 %v7199_v57, %v5140_v46  ;;  %s6887_s12 = sld [smem:[%s10655_s0 + %s9133_s28]]  }
0x2340   :  { %v5044_v26 = vpop.f32.mrb[128].mxu0 }
0x2341   :  { %v10305_v29 = vadd.f32 %v5044_v26, %v10193_v35  ;;  %v8327_v34 = vpop.f32.mrb[129].mxu0  ;;  %v5131_v35 = vadd.f32 %v7199_v57, %v5130_v24 }
0x2344   :  { %v5223_v2 = vpop.f32.mrb[130].mxu0 }
0x2345   :  { %v8355_v36 = vpop.f32.mrb[131].mxu0  ;;  %v5224_v37 = vadd.f32 %v7208_v3, %v5223_v2 }
0x2348   :  { %v5228_v33 = vpop.f32.mrb[132].mxu0 }
0x2349   :  { %v5229_v49 = vadd.f32 %v7208_v3, %v5228_v33  ;;  %v8358_v25 = vpop.f32.mrb[133].mxu0 }
0x234b   :  { %v8743_v42 = vpack.c.bf16 %v5229_v49, %v5224_v37 }
0x234c   :  { %v5233_v4 = vpop.f32.mrb[134].mxu0 }
0x234d   :  { %v8361_v21 = vpop.f32.mrb[135].mxu0  ;;  %8745 = vmatpush3.bf16.xpose.msk.msra.mxu0 %vm9337_vm6, %v8743_v42  ;;  %v5234_v9 = vadd.f32 %v7208_v3, %v5233_v4  ;;  %vm6006_vm6 = vcmask 254976  }
0x234e   :  { %8383 = vmatprep.subr.mxu0 %v9113_v18 }
0x2355   :  { %8384 = vmatpush3.xpose.msk.msra.mxu0 %vm681_vm5, %v5234_v9 }
0x2356   :  { %8409 = vmatprep.subr.mxu0 %v9113_v18 }
0x2358   :  { %8386 = vmatmul.mubr.msk.f32.vlgmr.msra.gmra.mrb[136].mxu0 %vm681_vm5, %v5131_v35 }
0x2359   :  { %8388 = vmatprep.mubr.msk.f32.mxu0 %vm9112_vm4, %v9113_v18  ;;  %8410 = vmatpush3.msra.mxu0 %v7231_v40  ;;  %v7259_v40 = vld [vmem:[%s9813_s26 + $0xd8] sm:$0xff] }
0x235a   :  { %8755 = vmatprep.subr.bf16.mxu0 %v9106_v0 }
0x235c   :  { %8389 = vmatmul.mubr.msk.f32.gmra.mrb[138].mxu0 %vm681_vm5, %v5136_v39 }
0x235d   :  { %8391 = vmatprep.mubr.msk.f32.mxu0 %vm9112_vm4, %v9113_v18 }
0x2360   :  { %8392 = vmatmul.mubr.msk.f32.gmra.mrb[140].mxu0 %vm681_vm5, %v5141_v7 }
0x2361   :  { %8411 = vmatprep.mubr.msk.f32.mxu0 %vm9112_vm4, %v9113_v18 }
0x242b   :  { %v5414_v43 = vpop.f32.mrb[136].mxu0 }
0x242c   :  { %v5428_v11 = vmul.f32 0.35355338, %v5414_v43  ;;  %v8387_v58 = vpop.f32.mrb[137].mxu0 }
0x242e   :  { %v5431_v13 = vadd.f32 %v5428_v11, %v9375_v45 }
0x242f   :  { %v5419_v14 = vpop.f32.mrb[138].mxu0 }
0x2430   :  { %v5429_v48 = vmul.f32 0.35355338, %v5419_v14  ;;  %v8390_v16 = vpop.f32.mrb[139].mxu0  ;;  %v5434_v5 = vsel %vm786_vm15, %v5431_v13, -inf }
0x2431   :  { %5435 = vmax.xlane.f32.xlu0 %v5434_v5 }
0x2432   :  { %v5432_v17 = vadd.f32 %v5429_v48, %v9378_v52 }
0x2433   :  { %v5424_v56 = vpop.f32.mrb[140].mxu0 }
0x2434   :  { %v8393_v19 = vpop.f32.mrb[141].mxu0  ;;  %v5437_v54 = vsel %vm786_vm15, %v5432_v17, -inf  ;;  %v5430_v32 = vmul.f32 0.35355338, %v5424_v56 }
0x2435   :  { %5438 = vmax.xlane.f32.xlu0 %v5437_v54  ;;  %v7241_v19 = vld [vmem:[%s9781_s9 + $0x30] sm:$0xff]  ;;  %v7242_v54 = vld [vmem:[%s9781_s9 + $0x38] sm:$0xff] }
0x2436   :  { %v5433_v8 = vadd.f32 %v5430_v32, %v9382_v61 }
0x2438   :  { %v5440_v52 = vsel %vm793_vm8, %v5433_v8, -inf }
0x24be   :  { %v5436_v20 = vpop.xlane.xlu0 %5435 }
0x24bf   :  { %v5443_v22 = vsub.f32 %v5431_v13, %v5436_v20 }
0x24c1   :  { %v5446_v24 = vmul.f32 1.442695, %v5443_v22 }
0x24c2   :  { %v5439_v38 = vpop.xlane.xlu0 %5438 }
0x24c3   :  { %9038 = vpow2.f32 %v5446_v24  ;;  %v5444_v27 = vsub.f32 %v5432_v17, %v5439_v38  ;;  %v7240_v17 = vld [vmem:[%s9781_s9 + $0x28] sm:$0xff]  ;;  %v10378_v38 = vld [vmem:[%s9792_s14 + $0x1] ss:$0 sm:$0xff] }
0x24c5   :  { %v5448_v45 = vmul.f32 1.442695, %v5444_v27 }
0x24c7   :  { %9040 = vpow2.f32 %v5448_v45  ;;  %v10381_v45 = vld [vmem:[%s9797_s20 + $0x1] ss:$0 sm:$0xff] }
0x24cd   :  { %v9039_v46 = vpop.eup %9038 }
0x24ce   :  { %v5452_v47 = vsel %vm786_vm15, %v9039_v46, 0.0 }
0x24cf   :  { %5453 = vadd.xlane.f32.xlu1 %v5452_v47  ;;  %v7248_v47 = vld [vmem:[%s9813_s26 + $0x80] sm:$0xff] }
0x24d1   :  { %v9041_v41 = vpop.eup %9040 }
0x24d2   :  { %v5455_v44 = vsel %vm786_vm15, %v9041_v41, 0.0 }
0x24d3   :  { %5441 = vmax.xlane.f32.xlu1 %v5440_v52 }
0x24d7   :  { %5456 = vadd.xlane.f32.xlu1 %v5455_v44  ;;  %v7251_v44 = vld [vmem:[%s9813_s26 + $0x98] sm:$0xff] }
0x255c   :  { %v5454_v50 = vpop.xlane.xlu1 %5453 }
0x255d   :  { %9042 = vrcp.f32 %v5454_v50 }
0x2560   :  { %v5442_v51 = vpop.xlane.xlu1 %5441 }
0x2561   :  { %v5445_v23 = vsub.f32 %v5433_v8, %v5442_v51  ;;  %v7249_v8 = vld [vmem:[%s9813_s26 + $0x88] sm:$0xff]  ;;  %v7252_v51 = vld [vmem:[%s9813_s26 + $0xa0] sm:$0xff] }
0x2562   :  { %v8756_v52 = vpack.c.bf16 %v7249_v8, %v7248_v47  ;;  %v7265_v8 = vld [vmem:[%s9878_s10 + $0x1] ss:$0 sm:$0xff]  ;;  %s6892_s10 = sld [smem:[%s10655_s0 + %s9139_s5]]  }
0x2563   :  { %v5450_v53 = vmul.f32 1.442695, %v5445_v23  ;;  %v7253_v23 = vld [vmem:[%s9813_s26 + $0xa8] sm:$0xff]  ;;  %s6901_s5 = sld [smem:[%s10655_s0 + %s9145_s30]]  }
0x2564   :  { %v5457_v55 = vpop.xlane.xlu1 %5456 }
0x2565   :  { %9044 = vpow2.f32 %v5450_v53  ;;  %v8762_v53 = vpack.c.bf16 %v7253_v23, %v7252_v51 }
0x2566   :  { %9046 = vrcp.f32 %v5457_v55  ;;  %v7254_v55 = vld [vmem:[%s9813_s26 + $0xb0] sm:$0xff] }
0x2567   :  { %v9043_v12 = vpop.eup %9042 }
0x2568   :  { %v5462_v31 = vmul.f32 %v9043_v12, %v9039_v46  ;;  %v7255_v12 = vld [vmem:[%s9813_s26 + $0xb8] sm:$0xff] }
0x256a   :  { %8401 = vmatmul.mubr.msk.f32.vlgmr.msra.gmra.mrb[150].mxu1 %vm786_vm15, %v5462_v31  ;;  %v8765_v31 = vpack.c.bf16 %v7255_v12, %v7254_v55 }
0x256b   :  { %8403 = vmatprep.mubr.msk.f32.mxu1 %vm9112_vm4, %v9113_v18 }
0x256f   :  { %v9045_v61 = vpop.eup %9044 }
0x2570   :  { %v9047_v59 = vpop.eup %9046  ;;  %v5458_v15 = vsel %vm793_vm8, %v9045_v61, 0.0  ;;  %vm6231_vm8 = vcmask 1041408  }
0x2571   :  { %5459 = vadd.xlane.f32.xlu1 %v5458_v15  ;;  %v5464_v62 = vmul.f32 %v9047_v59, %v9041_v41  ;;  %v7250_v41 = vld [vmem:[%s9813_s26 + $0x90] sm:$0xff]  ;;  %v7257_v59 = vld [vmem:[%s9813_s26 + $0xc8] sm:$0xff] }
0x2572   :  { %v8759_v50 = vpack.c.bf16 %v7251_v44, %v7250_v41 }
0x2573   :  { %8404 = vmatmul.mubr.msk.f32.gmra.mrb[152].mxu1 %vm786_vm15, %v5464_v62  ;;  %v7258_v62 = vld [vmem:[%s9813_s26 + $0xd0] sm:$0xff] }
0x2574   :  { %8406 = vmatprep.mubr.msk.f32.mxu1 %vm9112_vm4, %v9113_v18 }
0x25fe   :  { %v5460_v1 = vpop.xlane.xlu1 %5459 }
0x25ff   :  { %9048 = vrcp.f32 %v5460_v1  ;;  %v8771_v1 = vpack.c.bf16 %v7259_v40, %v7258_v62 }
0x2609   :  { %v9049_v26 = vpop.eup %9048 }
0x260a   :  { %v5466_v34 = vmul.f32 %v9049_v26, %v9045_v61  ;;  %v7256_v61 = vld [vmem:[%s9813_s26 + $0xc0] sm:$0xff] }
0x260b   :  { %v8768_v15 = vpack.c.bf16 %v7257_v59, %v7256_v61  ;;  %v7260_v26 = vld [vmem:[%s9813_s26 + $0xe0] sm:$0xff] }
0x260c   :  { %8407 = vmatmul.mubr.msk.f32.gmra.mrb[154].mxu1 %vm786_vm15, %v5466_v34  ;;  %v7261_v34 = vld [vmem:[%s9813_s26 + $0xe8] sm:$0xff] }
0x260d   :  { %8428 = vmatprep.mubr.msk.f32.mxu1 %vm9112_vm4, %v9113_v18 }
0x263d   :  { %v5545_v2 = vpop.f32.mrb[150].mxu1 }
0x263e   :  { %v8402_v36 = vpop.f32.mrb[151].mxu1  ;;  %8412 = vmatmul.mubr.msk.f32.vlgmr.msra.gmra.mrb[142].mxu0 %vm681_vm5, %v5545_v2  ;;  %v8774_v2 = vpack.c.bf16 %v7261_v34, %v7260_v26 }
0x263f   :  { %8414 = vmatprep.mubr.msk.f32.mxu0 %vm9112_vm4, %v9113_v18  ;;  %8757 = vmatpush3.bf16.msra.mxu0 %v8756_v52  ;;  %v7262_v36 = vld [vmem:[%s9813_s26 + $0xf0] sm:$0xff] }
0x2640   :  { %8758 = vmatprep.subr.bf16.mxu0 %v9106_v0 }
0x2643   :  { %8760 = vmatpush3.bf16.msra.mxu0 %v8759_v50 }
0x2644   :  { %8761 = vmatprep.subr.bf16.mxu0 %v9106_v0 }
0x2646   :  { %v5550_v3 = vpop.f32.mrb[152].mxu1 }
0x2647   :  { %v8405_v33 = vpop.f32.mrb[153].mxu1  ;;  %8415 = vmatmul.mubr.msk.f32.gmra.mrb[144].mxu0 %vm681_vm5, %v5550_v3  ;;  %v7263_v3 = vld [vmem:[%s9813_s26 + $0xf8] sm:$0xff]  ;;  %s9137_s26 = smov 65  }
0x2648   :  { %8417 = vmatprep.mubr.msk.f32.mxu0 %vm9112_vm4, %v9113_v18  ;;  %8763 = vmatpush3.bf16.msra.mxu0 %v8762_v53  ;;  %v8777_v33 = vpack.c.bf16 %v7263_v3, %v7262_v36 }
0x2649   :  { %8764 = vmatprep.subr.bf16.mxu0 %v9106_v0 }
0x264c   :  { %8766 = vmatpush3.bf16.msra.mxu0 %v8765_v31 }
0x264d   :  { %8767 = vmatprep.subr.bf16.mxu0 %v9106_v0 }
0x2650   :  { %8769 = vmatpush3.bf16.msra.mxu0 %v8768_v15 }
0x2651   :  { %8770 = vmatprep.subr.bf16.mxu0 %v9106_v0 }
0x2654   :  { %8772 = vmatpush3.bf16.msra.mxu0 %v8771_v1 }
0x2655   :  { %8773 = vmatprep.subr.bf16.mxu0 %v9106_v0 }
0x2658   :  { %8775 = vmatpush3.bf16.msra.mxu0 %v8774_v2 }
0x2659   :  { %8776 = vmatprep.subr.bf16.mxu0 %v9106_v0 }
0x265c   :  { %8778 = vmatpush3.bf16.msra.mxu0 %v8777_v33 }
0x265d   :  { %8843 = vmatprep.subr.bf16.mxu0 %v9106_v0 }
0x26df   :  { %v5555_v37 = vpop.f32.mrb[154].mxu1 }
0x26e0   :  { %v8408_v49 = vpop.f32.mrb[155].mxu1  ;;  %8418 = vmatmul.mubr.msk.f32.gmra.mrb[146].mxu0 %vm681_vm5, %v5555_v37  ;;  %v10413_v37 = vld [vmem:[%s9842_s2 + $0x1] ss:$0 sm:$0xff]  ;;  %vm6034_vm5 = vcmask 257026   ;;  %s6891_s2 = sld [smem:[%s10655_s0 + %s9138_s27]]  }
0x26e1   :  { %8469 = vmatprep.mubr.msk.f32.mxu0 %vm9112_vm4, %v9113_v18 }
0x2711   :  { %v5636_v25 = vpop.f32.mrb[142].mxu0 }
0x2712   :  { %v5650_v42 = vadd.f32 %v5636_v25, %v10299_v60  ;;  %v8413_v4 = vpop.f32.mrb[143].mxu0 }
0x2714   :  { %v10354_v21 = vadd.f32 %v5650_v42, %v9882_v6 }
0x2716   :  { %v5660_v57 = vsel %vm338_vm2, %v10354_v21, 0.0 }
0x2717   :  { %5661 = vadd.xlane.f32.xlu0 %v5660_v57 }
0x271a   :  { %v5641_v9 = vpop.f32.mrb[144].mxu0 }
0x271b   :  { %v5651_v35 = vadd.f32 %v5641_v9, %v10302_v28  ;;  %v8416_v39 = vpop.f32.mrb[145].mxu0 }
0x271d   :  { %v10362_v6 = vadd.f32 %v5651_v35, %v9887_v10  ;;  %v7239_v10 = vld [vmem:[%s9781_s9 + $0x20] sm:$0xff] }
0x271e   :  { %v8750_v56 = vpack.c.bf16 %v7240_v17, %v7239_v10 }
0x271f   :  { %v5663_v13 = vsel %vm338_vm2, %v10362_v6, 0.0 }
0x2720   :  { %8751 = vmatpush3.bf16.msra.mxu1 %v8750_v56 }
0x2721   :  { %8752 = vmatprep.subr.bf16.mxu1 %v9106_v0 }
0x27a4   :  { %v5662_v7 = vpop.xlane.xlu0 %5661 }
0x27a5   :  { %v5669_v43 = vmul.f32 0.03125, %v5662_v7 }
0x27a7   :  { %v5672_v11 = vsub.f32 %v10354_v21, %v5669_v43 }
0x27a9   :  { %v5675_v58 = vmul.f32 %v5672_v11, %v5672_v11 }
0x27ab   :  { %v5678_v60 = vsel %vm338_vm2, %v5675_v58, 0.0 }
0x27ac   :  { %5679 = vadd.xlane.f32.xlu0 %v5678_v60 }
0x27b0   :  { %5664 = vadd.xlane.f32.xlu0 %v5663_v13 }
0x27b3   :  { %v5646_v28 = vpop.f32.mrb[146].mxu0 }
0x27b4   :  { %v5652_v14 = vadd.f32 %v5646_v28, %v10305_v29  ;;  %v8419_v48 = vpop.f32.mrb[147].mxu0  ;;  %v8753_v29 = vpack.c.bf16 %v7242_v54, %v7241_v19 }
0x27b6   :  { %v10368_v16 = vadd.f32 %v5652_v14, %v9892_v63  ;;  %8754 = vmatpush3.bf16.msra.mxu1 %v8753_v29 }
0x27b8   :  { %v5666_v5 = vsel %vm345_vm3, %v10368_v16, 0.0 }
0x27b9   :  { %5667 = vadd.xlane.f32.xlu1 %v5666_v5 }
0x2839   :  { %v5680_v63 = vpop.xlane.xlu0 %5679 }
0x283a   :  { %v5687_v20 = vmul.f32 0.03125, %v5680_v63 }
0x283c   :  { %v5690_v22 = vadd.f32 1e-06, %v5687_v20 }
0x283e   :  { %9050 = vrsqrt.f32 %v5690_v22 }
0x2848   :  { %v9051_v24 = vpop.eup %9050 }
0x2849   :  { %v5696_v27 = vmul.f32 %v9051_v24, %v5672_v11 }
0x284b   :  { %v5705_v32 = vmul.f32 %v10378_v38, %v5696_v27  ;;  %v5665_v27 = vpop.xlane.xlu0 %5664 }
0x284d   :  { %v5714_v46 = vadd.f32 %v10381_v45, %v5705_v32  ;;  %v5668_v32 = vpop.xlane.xlu1 %5667 }
0x284e   :  { %v5671_v47 = vmul.f32 0.03125, %v5668_v32 }
0x284f   :  { %8429 = vmatmul.mubr.msk.f32.vlgmr.msra.gmra.mrb[156].mxu1 %vm338_vm2, %v5714_v46  ;;  %v5670_v46 = vmul.f32 0.03125, %v5665_v27 }
0x2850   :  { %8431 = vmatprep.mubr.msk.f32.mxu1 %vm9112_vm4, %v9113_v18  ;;  %v5674_v44 = vsub.f32 %v10368_v16, %v5671_v47  ;;  %v7266_v47 = vld [vmem:[%s6887_s12] ss:$0 sm:$0xff]  ;;  %s9142_s12 = smov 30  }
0x2851   :  { %v5673_v41 = vsub.f32 %v10362_v6, %v5670_v46  ;;  %s6896_s16 = sld [smem:[%s10655_s0 + %s9142_s12]]  }
0x2852   :  { %v5677_v31 = vmul.f32 %v5674_v44, %v5674_v44 }
0x2853   :  { %v5676_v12 = vmul.f32 %v5673_v41, %v5673_v41 }
0x2854   :  { %v5684_v6 = vsel %vm345_vm3, %v5677_v31, 0.0 }
0x2855   :  { %v5681_v61 = vsel %vm338_vm2, %v5676_v12, 0.0  ;;  %v6057_v12 = vld [vmem:[%s10451_s23 + $0x38] sm:$0xff] }
0x2922   :  { %v5805_v49 = vpop.f32.mrb[156].mxu1 }
0x2923   :  { %v5806_v25 = vadd.f32 %v10413_v37, %v5805_v49  ;;  %v8430_v42 = vpop.f32.mrb[157].mxu1 }
0x2925   :  { %v5822_v4 = vmul.f32 0.70710677, %v5806_v25  ;;  %v5819_v20 = vmul.f32 0.5, %v5806_v25 }
0x2927   :  { %v5825_v57 = vand.u32 2147483647, %v5822_v4  ;;  %vm5885_vm1 = vcmp.lt.f32.partialorder %v5822_v4, 0.0 }
0x2929   :  { %v5828_v9 = vmul.f32 0.3275911, %v5825_v57  ;;  %v5867_v39 = vmul.f32 %v5825_v57, %v5825_v57 }
0x292b   :  { %v5831_v35 = vadd.f32 1.0, %v5828_v9  ;;  %v5870_v43 = vsub.f32 0.0, %v5867_v39 }
0x292d   :  { %9052 = vrcp.f32 %v5831_v35  ;;  %v5873_v60 = vmul.f32 1.442695, %v5870_v43 }
0x292f   :  { %9054 = vpow2.f32 %v5873_v60  ;;  %v6061_v60 = vld [vmem:[%s6890_s7 + $0x18] sm:$0xff] }
0x2937   :  { %v9053_v7 = vpop.eup %9052 }
0x2938   :  { %v5840_v11 = vmul.f32 1.0614054, %v9053_v7 }
0x2939   :  { %v9055_v56 = vpop.eup %9054 }
0x293a   :  { %v5843_v58 = vadd.f32 -1.4531521, %v5840_v11 }
0x293c   :  { %v5846_v13 = vmul.f32 %v9053_v7, %v5843_v58  ;;  %v6059_v58 = vld [vmem:[%s6890_s7 + $0x8] sm:$0xff] }
0x293e   :  { %v5849_v28 = vadd.f32 1.4214138, %v5846_v13  ;;  %v8779_v13 = vpack.c.bf16 %v6061_v60, %v6059_v58 }
0x2940   :  { %v5852_v14 = vmul.f32 %v9053_v7, %v5849_v28  ;;  %v6060_v28 = vld [vmem:[%s6890_s7 + $0x10] sm:$0xff]  ;;  %8780 = vmatprep.subr.bf16.mxu1 %v8779_v13 }
0x2942   :  { %v5855_v48 = vadd.f32 -0.28449672, %v5852_v14 }
0x2944   :  { %v5858_v5 = vmul.f32 %v9053_v7, %v5855_v48  ;;  %v6065_v48 = vld [vmem:[%s6890_s7 + $0x38] sm:$0xff] }
0x2946   :  { %v5861_v10 = vadd.f32 0.2548296, %v5858_v5 }
0x2948   :  { %v5864_v17 = vmul.f32 %v9053_v7, %v5861_v10  ;;  %v6062_v10 = vld [vmem:[%s6890_s7 + $0x20] sm:$0xff] }
0x294a   :  { %v5879_v19 = vmul.f32 %v9055_v56, %v5864_v17  ;;  %v6064_v17 = vld [vmem:[%s6890_s7 + $0x30] sm:$0xff] }
0x294b   :  { %v8785_v56 = vpack.c.bf16 %v6064_v17, %v6062_v10 }
0x294c   :  { %v5882_v54 = vsub.f32 1.0, %v5879_v19  ;;  %v6051_v19 = vld [vmem:[%s10451_s23 + $0x8] sm:$0xff] }
0x294e   :  { %v5888_v29 = vsub.f32 0.0, %v5882_v54 }
0x2950   :  { %v5891_v63 = vsel %vm5885_vm1, %v5888_v29, %v5882_v54  ;;  %v6053_v54 = vld [vmem:[%s10451_s23 + $0x18] sm:$0xff] }
0x2951   :  { %v5894_v22 = vadd.f32 1.0, %v5891_v63  ;;  %v8787_v29 = vpack.c.bf16 %v6053_v54, %v6051_v19 }
0x2953   :  { %v5897_v24 = vmul.f32 %v5894_v22, %v5819_v20 }
0x2955   :  { %8470 = vmatmul.mubr.f32.vlgmr.msra.gmra.mrb[148].mxu0 %v5897_v24 }
0x2956   :  { %8472 = vmatprep.mubr.msk.f32.mxu0 %vm9112_vm4, %v9113_v18 }
0x2a28   :  { %v5991_v52 = vpop.f32.mrb[148].mxu0 }
0x2a29   :  { %v5992_v50 = vadd.f32 %v7265_v8, %v5991_v52  ;;  %v8471_v51 = vpop.f32.mrb[149].mxu0 }
0x2a2a   :  { %v6050_v51 = vld [vmem:[%s10451_s23] sm:$0xff] }
0x2a2b   :  { %v6003_v23 = vadd.f32 %v5992_v50, %v10354_v21 }
0x2a2d   :  { %v6035_v53 = vsel %vm6034_vm5, %v6003_v23, 0.0  ;;  %v6007_v55 = vsel %vm6006_vm6, %v6003_v23, 0.0 }
0x2a2e   :  { %6036 = vadd.xlane.f32.xlu0 %v6035_v53  ;;  %6008 = vadd.xlane.f32.xlu1 %v6007_v55  ;;  %v6055_v55 = vld [vmem:[%s10451_s23 + $0x28] sm:$0xff] }
0x2a32   :  { %5682 = vadd.xlane.f32.xlu0 %v5681_v61  ;;  %5685 = vadd.xlane.f32.xlu1 %v5684_v6 }
0x2abb   :  { %v6037_v16 = vpop.xlane.xlu0 %6036  ;;  %v6009_v59 = vpop.xlane.xlu1 %6008 }
0x2abc   :  { %v6038_v15 = vmul.f32 0.03125, %v6037_v16  ;;  %v6010_v62 = vmul.f32 0.03125, %v6009_v59 }
0x2abe   :  { %v10426_v40 = vsub.f32 %v6003_v23, %v6038_v15  ;;  %v10428_v21 = vsub.f32 %v6003_v23, %v6010_v62  ;;  %v6052_v23 = vld [vmem:[%s10451_s23 + $0x10] sm:$0xff]  ;;  %v8791_v15 = vpack.c.bf16 %v6057_v12, %v6055_v55  ;;  %v6054_v62 = vld [vmem:[%s10451_s23 + $0x20] sm:$0xff] }
0x2abf   :  { %v5683_v1 = vpop.xlane.xlu0 %5682  ;;  %v5686_v26 = vpop.xlane.xlu1 %5685  ;;  %v8789_v61 = vpack.c.bf16 %v6052_v23, %v6050_v51 }
0x2ac0   :  { %v5688_v34 = vmul.f32 0.03125, %v5683_v1  ;;  %v5689_v2 = vmul.f32 0.03125, %v5686_v26  ;;  %v6040_v36 = vmul.f32 %v10426_v40, %v10426_v40  ;;  %v6012_v3 = vmul.f32 %v10428_v21, %v10428_v21 }
0x2ac2   :  { %v5691_v33 = vadd.f32 1e-06, %v5688_v34  ;;  %v5692_v49 = vadd.f32 1e-06, %v5689_v2  ;;  %v6041_v25 = vsel %vm6034_vm5, %v6040_v36, 0.0  ;;  %v6013_v42 = vsel %vm6006_vm6, %v6012_v3, 0.0 }
0x2ac3   :  { %6042 = vadd.xlane.f32.xlu0 %v6041_v25  ;;  %6014 = vadd.xlane.f32.xlu1 %v6013_v42 }
0x2ac4   :  { %9056 = vrsqrt.f32 %v5691_v33 }
0x2ac5   :  { %9058 = vrsqrt.f32 %v5692_v49 }
0x2ace   :  { %v9057_v4 = vpop.eup %9056 }
0x2acf   :  { %v9059_v57 = vpop.eup %9058  ;;  %v5697_v9 = vmul.f32 %v9057_v4, %v5673_v41  ;;  %v7267_v41 = vld [vmem:[%s6888_s17] ss:$0 sm:$0xff]  ;;  %s9143_s17 = smov 31  }
0x2ad0   :  { %v5698_v35 = vmul.f32 %v9059_v57, %v5674_v44  ;;  %s6897_s21 = sld [smem:[%s10655_s0 + %s9143_s17]]  }
0x2ad1   :  { %v5706_v39 = vmul.f32 %v10378_v38, %v5697_v9 }
0x2ad2   :  { %v5707_v43 = vmul.f32 %v10378_v38, %v5698_v35  ;;  %v6058_v38 = vld [vmem:[%s6890_s7] sm:$0xff] }
0x2ad3   :  { %v5715_v7 = vadd.f32 %v10381_v45, %v5706_v39  ;;  %v8781_v14 = vpack.c.bf16 %v6060_v28, %v6058_v38 }
0x2ad4   :  { %v5716_v11 = vadd.f32 %v10381_v45, %v5707_v43  ;;  %v6063_v45 = vld [vmem:[%s6890_s7 + $0x28] sm:$0xff]  ;;  %s6893_s7 = sld [smem:[%s10655_s0 + %s9140_s25]]  }
0x2ad5   :  { %8432 = vmatmul.mubr.msk.f32.gmra.mrb[158].mxu1 %vm338_vm2, %v5715_v7  ;;  %v8783_v5 = vpack.c.bf16 %v6065_v48, %v6063_v45  ;;  %s6899_s25 = sld [smem:[%s10655_s0 + %s9146_s6]]  }
0x2ad6   :  { %8434 = vmatprep.mubr.msk.f32.mxu1 %vm9112_vm4, %v9113_v18  ;;  %8782 = vmatpush1.bf16.msra.mxu1 %v8781_v14 }
0x2ad7   :  { %8784 = vmatprep.subr.bf16.mxu1 %v8783_v5 }
0x2ad9   :  { %8435 = vmatmul.mubr.msk.f32.gmra.mrb[160].mxu1 %vm338_vm2, %v5716_v11 }
0x2ada   :  { %6134 = vmatprep.mubr.f32.mxu1 %v9113_v18  ;;  %8786 = vmatpush1.bf16.msra.mxu1 %v8785_v56 }
0x2adb   :  { %8788 = vmatprep.subr.bf16.mxu1 %v8787_v29 }
0x2b50   :  { %v6043_v63 = vpop.xlane.xlu0 %6042  ;;  %v6015_v20 = vpop.xlane.xlu1 %6014 }
0x2b51   :  { %v6044_v22 = vmul.f32 0.03125, %v6043_v63  ;;  %v6016_v24 = vmul.f32 0.03125, %v6015_v20 }
0x2b53   :  { %v6045_v27 = vadd.f32 1e-06, %v6044_v22  ;;  %v6017_v32 = vadd.f32 1e-06, %v6016_v24 }
0x2b55   :  { %9060 = vrsqrt.f32 %v6045_v27 }
0x2b56   :  { %9062 = vrsqrt.f32 %v6017_v32 }
0x2b5f   :  { %v9061_v46 = vpop.eup %9060 }
0x2b60   :  { %v9063_v8 = vpop.eup %9062  ;;  %v6047_v52 = vmul.f32 %v9061_v46, %v10426_v40  ;;  %v6056_v40 = vld [vmem:[%s10451_s23 + $0x30] sm:$0xff]  ;;  %s9141_s23 = smov 29  }
0x2b61   :  { %v6019_v44 = vmul.f32 %v9063_v8, %v10428_v21  ;;  %v8793_v2 = vpack.c.bf16 %v6056_v40, %v6054_v62  ;;  %s6895_s9 = sld [smem:[%s10655_s0 + %s9141_s23]]  }
0x2b62   :  { %v6048_v50 = vmul.f32 %v7266_v47, %v6047_v52 }
0x2b63   :  { %v6026_v53 = vmul.f32 %v7266_v47, %v6019_v44 }
0x2b64   :  { %v10467_v31 = vadd.f32 %v7267_v41, %v6048_v50 }
0x2b65   :  { %v10469_v6 = vadd.f32 %v7267_v41, %v6026_v53 }
0x2b66   :  { %v6067_v16 = vrot.slane %v10467_v31, 2  ;;  %v6814_v59 = vmul.f32 %v10467_v31, %v10467_v31 }
0x2b67   :  { %v6803_v21 = vmul.f32 %v10469_v6, %v10469_v6 }
0x2b68   :  { %7268 = vmatmul.mubr.msk.f32.vlgmr.msra.gmra.mrb[162].mxu1 %vm338_vm2, %v6067_v16  ;;  %v6815_v1 = vsel %vm6034_vm5, %v6814_v59, 0.0  ;;  %v6832_v26 = vmul.f32 %v6067_v16, %v10469_v6  ;;  %vm6726_vm5 = vcmask 15360  }
0x2b69   :  { %6816 = vadd.xlane.f32.xlu0 %v6815_v1  ;;  %8790 = vmatpush1.bf16.msra.mxu1 %v8789_v61  ;;  %v6804_v34 = vsel %vm6006_vm6, %v6803_v21, 0.0 }
0x2b6a   :  { %6805 = vadd.xlane.f32.xlu1 %v6804_v34  ;;  %8792 = vmatprep.subr.bf16.mxu1 %v8791_v15  ;;  %v6833_v36 = vsel %vm6006_vm6, %v6832_v26, 0.0  ;;  %vm6858_vm6 = vcmask 531456  }
0x2b6b   :  { %6208 = vmatprep.mubr.f32.mxu1 %v9113_v18 }
0x2b6d   :  { %8794 = vmatpush1.bf16.msra.mxu1 %v8793_v2  ;;  %6834 = vadd.xlane.f32.xlu0 %v6833_v36  ;;  %v6357_v36 = vld [vmem:[%s10493_s22 + $0x8] sm:$0xff] }
0x2b70   :  { %7269 = vmatmul.mubr.msk.f32.vlgmr.msra.gmra.mrb[162].mxu1 %vm338_vm2, %v10469_v6 }
0x2ba8   :  { %v5810_v3 = vpop.f32.mrb[158].mxu1 }
0x2ba9   :  { %v5811_v33 = vadd.f32 %v10413_v37, %v5810_v3  ;;  %v8433_v49 = vpop.f32.mrb[159].mxu1  ;;  %v6359_v3 = vld [vmem:[%s10493_s22 + $0x18] sm:$0xff] }
0x2baa   :  { %v6356_v49 = vld [vmem:[%s10493_s22] sm:$0xff] }
0x2bab   :  { %v5823_v25 = vmul.f32 0.70710677, %v5811_v33  ;;  %v5820_v16 = vmul.f32 0.5, %v5811_v33  ;;  %v8795_v33 = vpack.c.bf16 %v6359_v3, %v6357_v36 }
0x2bac   :  { %v5815_v42 = vpop.f32.mrb[160].mxu1 }
0x2bad   :  { %v5826_v4 = vand.u32 2147483647, %v5823_v25  ;;  %v5816_v57 = vadd.f32 %v10413_v37, %v5815_v42  ;;  %v8436_v9 = vpop.f32.mrb[161].mxu1  ;;  %vm5886_vm3 = vcmp.lt.f32.partialorder %v5823_v25, 0.0  ;;  %v6358_v25 = vld [vmem:[%s10493_s22 + $0x10] sm:$0xff]  ;;  %8796 = vmatprep.subr.bf16.mxu1 %v8795_v33  ;;  %v6384_v33 = vld [vmem:[%s10493_s22 + $0xe0] sm:$0xff] }
0x2bae   :  { %v8797_v42 = vpack.c.bf16 %v6358_v25, %v6356_v49  ;;  %v6386_v49 = vld [vmem:[%s10493_s22 + $0xf0] sm:$0xff] }
0x2baf   :  { %v5829_v35 = vmul.f32 0.3275911, %v5826_v4  ;;  %v5824_v39 = vmul.f32 0.70710677, %v5816_v57  ;;  %v5868_v60 = vmul.f32 %v5826_v4, %v5826_v4  ;;  %v5821_v21 = vmul.f32 0.5, %v5816_v57  ;;  %v6361_v4 = vld [vmem:[%s10493_s22 + $0x28] sm:$0xff] }
0x2bb0   :  { %8798 = vmatpush1.bf16.msra.mxu1 %v8797_v42  ;;  %v6363_v57 = vld [vmem:[%s10493_s22 + $0x38] sm:$0xff]  ;;  %v6389_v42 = vld [vmem:[%s10493_s22 + $0x108] sm:$0xff] }
0x2bb1   :  { %v5832_v7 = vadd.f32 1.0, %v5829_v35  ;;  %v5827_v43 = vand.u32 2147483647, %v5824_v39  ;;  %v5871_v38 = vsub.f32 0.0, %v5868_v60  ;;  %vm5887_vm12 = vcmp.lt.f32.partialorder %v5824_v39, 0.0  ;;  %v6360_v35 = vld [vmem:[%s10493_s22 + $0x20] sm:$0xff] }
0x2bb2   :  { %v8799_v9 = vpack.c.bf16 %v6363_v57, %v6361_v4  ;;  %v6362_v39 = vld [vmem:[%s10493_s22 + $0x30] sm:$0xff]  ;;  %v6391_v4 = vld [vmem:[%s10493_s22 + $0x118] sm:$0xff] }
0x2bb3   :  { %9064 = vrcp.f32 %v5832_v7  ;;  %v5830_v11 = vmul.f32 0.3275911, %v5827_v43  ;;  %v5869_v28 = vmul.f32 %v5827_v43, %v5827_v43  ;;  %v5875_v5 = vmul.f32 1.442695, %v5871_v38  ;;  %v6365_v38 = vld [vmem:[%s10493_s22 + $0x48] sm:$0xff] }
0x2bb4   :  { %v8801_v43 = vpack.c.bf16 %v6362_v39, %v6360_v35  ;;  %8800 = vmatprep.subr.bf16.mxu1 %v8799_v9  ;;  %v8827_v35 = vpack.c.bf16 %v6391_v4, %v6389_v42  ;;  %v6388_v39 = vld [vmem:[%s10493_s22 + $0x100] sm:$0xff] }
0x2bb5   :  { %v5833_v58 = vadd.f32 1.0, %v5830_v11  ;;  %v5872_v10 = vsub.f32 0.0, %v5869_v28  ;;  %v6367_v28 = vld [vmem:[%s10493_s22 + $0x58] sm:$0xff] }
0x2bb6   :  { %8802 = vmatpush1.bf16.msra.mxu1 %v8801_v43 }
0x2bb7   :  { %9066 = vrcp.f32 %v5833_v58  ;;  %v5877_v54 = vmul.f32 1.442695, %v5872_v10 }
0x2bb8   :  { %9068 = vpow2.f32 %v5875_v5  ;;  %v6366_v5 = vld [vmem:[%s10493_s22 + $0x50] sm:$0xff] }
0x2bb9   :  { %9070 = vpow2.f32 %v5877_v54 }
0x2bbd   :  { %v9065_v13 = vpop.eup %9064 }
0x2bbe   :  { %v5841_v14 = vmul.f32 1.0614054, %v9065_v13 }
0x2bc0   :  { %v5844_v45 = vadd.f32 -1.4531521, %v5841_v14 }
0x2bc1   :  { %v9067_v48 = vpop.eup %9066 }
0x2bc2   :  { %v5847_v17 = vmul.f32 %v9065_v13, %v5844_v45  ;;  %v5842_v37 = vmul.f32 1.0614054, %v9067_v48  ;;  %v9069_v52 = vpop.eup %9068  ;;  %v8803_v45 = vpack.c.bf16 %v6367_v28, %v6365_v38  ;;  %v6392_v38 = vld [vmem:[%s10493_s22 + $0x120] sm:$0xff]  ;;  %v6394_v28 = vld [vmem:[%s10493_s22 + $0x130] sm:$0xff] }
0x2bc3   :  { %v9071_v23 = vpop.eup %9070 }
0x2bc4   :  { %v5850_v56 = vadd.f32 1.4214138, %v5847_v17  ;;  %v5845_v19 = vadd.f32 -1.4531521, %v5842_v37  ;;  %8804 = vmatprep.subr.bf16.mxu1 %v8803_v45  ;;  %v6399_v45 = vld [vmem:[%s10493_s22 + $0x158] sm:$0xff] }
0x2bc6   :  { %v5853_v29 = vmul.f32 %v9065_v13, %v5850_v56  ;;  %v5848_v63 = vmul.f32 %v9067_v48, %v5845_v19 }
0x2bc8   :  { %v5856_v20 = vadd.f32 -0.28449672, %v5853_v29  ;;  %v5851_v22 = vadd.f32 1.4214138, %v5848_v63  ;;  %v6369_v63 = vld [vmem:[%s10493_s22 + $0x68] sm:$0xff] }
0x2bca   :  { %v5859_v24 = vmul.f32 %v9065_v13, %v5856_v20  ;;  %v5854_v27 = vmul.f32 %v9067_v48, %v5851_v22  ;;  %v6371_v20 = vld [vmem:[%s10493_s22 + $0x78] sm:$0xff] }
0x2bcc   :  { %v5862_v32 = vadd.f32 0.2548296, %v5859_v24  ;;  %v5857_v46 = vadd.f32 -0.28449672, %v5854_v27  ;;  %v8807_v24 = vpack.c.bf16 %v6371_v20, %v6369_v63  ;;  %v6368_v27 = vld [vmem:[%s10493_s22 + $0x60] sm:$0xff]  ;;  %v6402_v20 = vld [vmem:[%s10493_s22 + $0x170] sm:$0xff] }
0x2bcd   :  { %v6400_v63 = vld [vmem:[%s10493_s22 + $0x160] sm:$0xff] }
0x2bce   :  { %v5865_v47 = vmul.f32 %v9065_v13, %v5862_v32  ;;  %v5860_v8 = vmul.f32 %v9067_v48, %v5857_v46  ;;  %v6370_v32 = vld [vmem:[%s10493_s22 + $0x70] sm:$0xff] }
0x2bcf   :  { %v8809_v46 = vpack.c.bf16 %v6370_v32, %v6368_v27  ;;  %v6215_v27 = vld [vmem:[%s6891_s2] sm:$0x3]  ;;  %v10556_v32 = vsub.s32 1, %v9370_v30 }
0x2bd0   :  { %v5880_v41 = vmul.f32 %v9069_v52, %v5865_v47  ;;  %v5863_v44 = vadd.f32 0.2548296, %v5860_v8  ;;  %v6373_v8 = vld [vmem:[%s10493_s22 + $0x88] sm:$0xff]  ;;  %v6375_v52 = vld [vmem:[%s10493_s22 + $0x98] sm:$0xff] }
0x2bd2   :  { %v5883_v50 = vsub.f32 1.0, %v5880_v41  ;;  %v5866_v51 = vmul.f32 %v9067_v48, %v5863_v44  ;;  %v6364_v48 = vld [vmem:[%s10493_s22 + $0x40] sm:$0xff]  ;;  %v8811_v41 = vpack.c.bf16 %v6375_v52, %v6373_v8 }
0x2bd3   :  { %v8805_v56 = vpack.c.bf16 %v6366_v5, %v6364_v48  ;;  %v6372_v44 = vld [vmem:[%s10493_s22 + $0x80] sm:$0xff]  ;;  %v8833_v48 = vpack.c.bf16 %v6394_v28, %v6392_v38 }
0x2bd4   :  { %v5889_v53 = vsub.f32 0.0, %v5883_v50  ;;  %v5881_v55 = vmul.f32 %v9071_v23, %v5866_v51  ;;  %v6377_v23 = vld [vmem:[%s10493_s22 + $0xa8] sm:$0xff] }
0x2bd5   :  { %8806 = vmatpush1.bf16.msra.mxu1 %v8805_v56  ;;  %v6403_v56 = vld [vmem:[%s10493_s22 + $0x178] sm:$0xff] }
0x2bd6   :  { %v5892_v12 = vsel %vm5886_vm3, %v5889_v53, %v5883_v50  ;;  %v5884_v61 = vsub.f32 1.0, %v5881_v55  ;;  %8808 = vmatprep.subr.bf16.mxu1 %v8807_v24  ;;  %v6374_v50 = vld [vmem:[%s10493_s22 + $0x90] sm:$0xff]  ;;  %v6379_v53 = vld [vmem:[%s10493_s22 + $0xb8] sm:$0xff]  ;;  %v6376_v55 = vld [vmem:[%s10493_s22 + $0xa0] sm:$0xff]  ;;  %v10553_v24 = vsub.s32 0, %v9370_v30  ;;  %vm6860_vm3 = vcmask 539648  }
0x2bd7   :  { %v5895_v59 = vadd.f32 1.0, %v5892_v12  ;;  %v8813_v51 = vpack.c.bf16 %v6374_v50, %v6372_v44  ;;  %v8815_v12 = vpack.c.bf16 %v6379_v53, %v6377_v23 }
0x2bd8   :  { %v5890_v15 = vsub.f32 0.0, %v5884_v61 }
0x2bd9   :  { %v5898_v62 = vmul.f32 %v5895_v59, %v5820_v16  ;;  %8810 = vmatpush1.bf16.msra.mxu1 %v8809_v46  ;;  %v6381_v16 = vld [vmem:[%s10493_s22 + $0xc8] sm:$0xff]  ;;  %v6383_v59 = vld [vmem:[%s10493_s22 + $0xd8] sm:$0xff]  ;;  %v6220_v46 = vrot.slane %v6215_v27, %v10553_v24 }
0x2bda   :  { %v5893_v40 = vsel %vm5887_vm12, %v5890_v15, %v5884_v61  ;;  %8812 = vmatprep.subr.bf16.mxu1 %v8811_v41  ;;  %v6378_v61 = vld [vmem:[%s10493_s22 + $0xb0] sm:$0xff] }
0x2bdb   :  { %8473 = vmatmul.mubr.f32.gmra.mrb[150].mxu0 %v5898_v62  ;;  %v5896_v1 = vadd.f32 1.0, %v5893_v40  ;;  %v8817_v15 = vpack.c.bf16 %v6378_v61, %v6376_v55  ;;  %v8819_v62 = vpack.c.bf16 %v6383_v59, %v6381_v16  ;;  %v6380_v40 = vld [vmem:[%s10493_s22 + $0xc0] sm:$0xff] }
0x2bdc   :  { %8475 = vmatprep.mubr.msk.f32.mxu0 %vm9112_vm4, %v9113_v18 }
0x2bdd   :  { %v5899_v26 = vmul.f32 %v5896_v1, %v5821_v21  ;;  %8814 = vmatpush1.bf16.msra.mxu1 %v8813_v51  ;;  %v6382_v21 = vld [vmem:[%s10493_s22 + $0xd0] sm:$0xff]  ;;  %v6385_v1 = vld [vmem:[%s10493_s22 + $0xe8] sm:$0xff] }
0x2bde   :  { %8816 = vmatprep.subr.bf16.mxu1 %v8815_v12  ;;  %v8821_v36 = vpack.c.bf16 %v6382_v21, %v6380_v40 }
0x2bdf   :  { %8476 = vmatmul.mubr.f32.gmra.mrb[152].mxu0 %v5899_v26  ;;  %v6387_v26 = vld [vmem:[%s10493_s22 + $0xf8] sm:$0xff] }
0x2be0   :  { %v8823_v3 = vpack.c.bf16 %v6387_v26, %v6385_v1 }
0x2be1   :  { %8818 = vmatpush1.bf16.msra.mxu1 %v8817_v15 }
0x2be2   :  { %8820 = vmatprep.subr.bf16.mxu1 %v8819_v62 }
0x2be5   :  { %8822 = vmatpush1.bf16.msra.mxu1 %v8821_v36 }
0x2be6   :  { %8824 = vmatprep.subr.bf16.mxu1 %v8823_v3 }
0x2bf6   :  { %v6817_v34 = vpop.xlane.xlu0 %6816 }
0x2bf7   :  { %9072 = vrsqrt.f32 %v6817_v34  ;;  %v6806_v2 = vpop.xlane.xlu1 %6805  ;;  %vm6820_vm13 = vcmp.eq.f32.partialorder %v6817_v34, inf  ;;  %v6823_v60 = vand.u32 2147483648, %v6817_v34  ;;  %vm6822_vm14 = vcmp.eq.f32.partialorder %v6817_v34, 0.0 }
0x2bf8   :  { %9074 = vrsqrt.f32 %v6806_v2  ;;  %vm6809_vm15 = vcmp.eq.f32.partialorder %v6806_v2, inf  ;;  %v6812_v37 = vand.u32 2147483648, %v6806_v2  ;;  %vm6811_vm7 = vcmp.eq.f32.partialorder %v6806_v2, 0.0 }
0x2bfa   :  { %v6835_v9 = vpop.xlane.xlu0 %6834 }
0x2c01   :  { %v9073_v7 = vpop.eup %9072 }
0x2c02   :  { %v9075_v11 = vpop.eup %9074  ;;  %v6819_v58 = vmul.f32 %v9073_v7, %v6817_v34  ;;  %v6390_v7 = vld [vmem:[%s10493_s22 + $0x110] sm:$0xff] }
0x2c03   :  { %v6808_v13 = vmul.f32 %v9075_v11, %v6806_v2  ;;  %v6393_v11 = vld [vmem:[%s10493_s22 + $0x128] sm:$0xff] }
0x2c04   :  { %v6821_v14 = vsel %vm6820_vm13, %v6817_v34, %v6819_v58  ;;  %v6395_v58 = vld [vmem:[%s10493_s22 + $0x138] sm:$0xff] }
0x2c05   :  { %v6824_v10 = vsel %vm6822_vm14, %v6823_v60, %v6821_v14  ;;  %v6810_v17 = vsel %vm6809_vm15, %v6806_v2, %v6808_v13  ;;  %v8829_v60 = vpack.c.bf16 %v6390_v7, %v6388_v39  ;;  %v8831_v13 = vpack.c.bf16 %v6395_v58, %v6393_v11  ;;  %v6397_v14 = vld [vmem:[%s10493_s22 + $0x148] sm:$0xff] }
0x2c06   :  { %v6828_v19 = vmax.f32 %v6824_v10, 1e-12  ;;  %v6837_v54 = vrot.slane %v6824_v10, 2  ;;  %v10507_v29 = vsel %vm6811_vm7, %v6812_v37, %v6810_v17  ;;  %v8835_v5 = vpack.c.bf16 %v6399_v45, %v6397_v14  ;;  %v6396_v10 = vld [vmem:[%s10493_s22 + $0x140] sm:$0xff]  ;;  %v6398_v17 = vld [vmem:[%s10493_s22 + $0x150] sm:$0xff]  ;;  %v6401_v37 = vld [vmem:[%s10493_s22 + $0x168] sm:$0xff] }
0x2c07   :  { %v6229_v14 = vld [vmem:[%s6892_s10] sm:$0x3]  ;;  %s9144_s22 = smov 34  }
0x2c08   :  { %v6839_v22 = vmul.f32 %v6837_v54, %v10507_v29  ;;  %9076 = vrcp.f32 %v6828_v19  ;;  %v8837_v19 = vpack.c.bf16 %v6398_v17, %v6396_v10  ;;  %v8839_v54 = vpack.c.bf16 %v6403_v56, %v6401_v37  ;;  %v6230_v45 = vld [vmem:[%s6893_s7] sm:$0x3]  ;;  %s6900_s27 = sld [smem:[%s10655_s0 + %s9144_s22]]  }
0x2c09   :  { %v6284_v10 = vrot.slane %v6229_v14, %v10556_v32  ;;  %v6293_v56 = vrot.slane %v6230_v45, %v10553_v24 }
0x2c0a   :  { %v6840_v47 = vmax.f32 %v6839_v22, 1e-08  ;;  %v8841_v22 = vpack.c.bf16 %v6402_v20, %v6400_v63 }
0x2c0c   :  { %9078 = vrcp.f32 %v6840_v47  ;;  %v6224_v47 = vrot.slane %v6215_v27, %v10556_v32 }
0x2c12   :  { %v9077_v34 = vpop.eup %9076 }
0x2c13   :  { %v6830_v2 = vmul.f32 %v9077_v34, %v10467_v31  ;;  %v8825_v31 = vpack.c.bf16 %v6386_v49, %v6384_v33 }
0x2c15   :  { %v6844_v25 = vrot.slane %v6830_v2, 2  ;;  %8826 = vmatpush1.bf16.msra.mxu1 %v8825_v31 }
0x2c16   :  { %v9079_v57 = vpop.eup %9078  ;;  %8828 = vmatprep.subr.bf16.mxu1 %v8827_v35 }
0x2c17   :  { %6845 = vrot.lane.b32.xlu1 %v6844_v25, %s9136_s24  ;;  %v6842_v43 = vmul.f32 %v9079_v57, %v6835_v9 }
0x2c19   :  { %8830 = vmatpush1.bf16.msra.mxu1 %v8829_v60 }
0x2c1a   :  { %8832 = vmatprep.subr.bf16.mxu1 %v8831_v13 }
0x2c1b   :  { %6853 = vrot.lane.b32.xlu1 %v6842_v43, %s9137_s26 }
0x2c1d   :  { %8834 = vmatpush1.bf16.msra.mxu1 %v8833_v48  ;;  %v6280_v48 = vrot.slane %v6229_v14, %v10553_v24 }
0x2c1e   :  { %8836 = vmatprep.subr.bf16.mxu1 %v8835_v5 }
0x2c21   :  { %8838 = vmatpush1.bf16.msra.mxu1 %v8837_v19 }
0x2c22   :  { %8840 = vmatprep.subr.bf16.mxu1 %v8839_v54  ;;  %v6297_v54 = vrot.slane %v6230_v45, %v10556_v32 }
0x2c25   :  { %8842 = vmatpush1.bf16.msra.mxu1 %v8841_v22 }
0x2c26   :  { %8478 = vmatprep.subr.mxu1 %v9113_v18 }
0x2c43   :  { %v6210_v8 = vpop.f32.mrb[162].mxu1 }
0x2c44   :  { %v6227_v52 = vadd.f32 %v6220_v46, %v6210_v8  ;;  %v6212_v41 = vpop.f32.mrb[163].mxu1 }
0x2c45   :  { %v6228_v44 = vadd.f32 %v6224_v47, %v6212_v41 }
0x2c46   :  { %v6232_v50 = vsel %vm6231_vm8, %v6227_v52, 0.0 }
0x2c47   :  { %v6233_v51 = vrot.slane %v6232_v50, 4  ;;  %v6240_v23 = vsel %vm6239_vm9, %v6228_v44, 0.0 }
0x2c48   :  { %v6241_v53 = vrot.slane %v6240_v23, 4 }
0x2c49   :  { %v6234_v55 = vadd.f32 %v6233_v51, %v6232_v50 }
0x2c4a   :  { %v6242_v12 = vadd.f32 %v6241_v53, %v6240_v23 }
0x2c4b   :  { %v6235_v30 = vrot.slane %v6234_v55, 2 }
0x2c4c   :  { %v6243_v61 = vrot.slane %v6242_v12, 2 }
0x2c4d   :  { %v6236_v16 = vadd.f32 %v6235_v30, %v6234_v55 }
0x2c4e   :  { %v6244_v59 = vadd.f32 %v6243_v61, %v6242_v12 }
0x2c4f   :  { %v6237_v15 = vrot.slane %v6236_v16, 1 }
0x2c50   :  { %v6245_v62 = vrot.slane %v6244_v59, 1 }
0x2c51   :  { %v6238_v40 = vadd.f32 %v6237_v15, %v6236_v16 }
0x2c52   :  { %v6246_v21 = vadd.f32 %v6245_v62, %v6244_v59 }
0x2c53   :  { %v6248_v1 = vmul.f32 0.5, %v6238_v40 }
0x2c54   :  { %v6249_v26 = vmul.f32 0.5, %v6246_v21 }
0x2c55   :  { %v6250_v34 = vsub.f32 %v6227_v52, %v6248_v1 }
0x2c56   :  { %v6251_v2 = vsub.f32 %v6228_v44, %v6249_v26 }
0x2c57   :  { %v6252_v36 = vmul.f32 %v6250_v34, %v6250_v34 }
0x2c58   :  { %v6253_v3 = vmul.f32 %v6251_v2, %v6251_v2 }
0x2c59   :  { %v6254_v33 = vsel %vm6231_vm8, %v6252_v36, 0.0 }
0x2c5a   :  { %v6255_v49 = vrot.slane %v6254_v33, 4  ;;  %v6261_v25 = vsel %vm6239_vm9, %v6253_v3, 0.0 }
0x2c5b   :  { %v6262_v42 = vrot.slane %v6261_v25, 4 }
0x2c5c   :  { %v6256_v4 = vadd.f32 %v6255_v49, %v6254_v33 }
0x2c5d   :  { %v6263_v57 = vadd.f32 %v6262_v42, %v6261_v25 }
0x2c5e   :  { %v6257_v31 = vrot.slane %v6256_v4, 2 }
0x2c5f   :  { %v6264_v9 = vrot.slane %v6263_v57, 2 }
0x2c60   :  { %v6258_v35 = vadd.f32 %v6257_v31, %v6256_v4 }
0x2c61   :  { %v6265_v39 = vadd.f32 %v6264_v9, %v6263_v57 }
0x2c62   :  { %v6259_v7 = vrot.slane %v6258_v35, 1 }
0x2c63   :  { %v6266_v43 = vrot.slane %v6265_v39, 1 }
0x2c64   :  { %v6260_v11 = vadd.f32 %v6259_v7, %v6258_v35 }
0x2c65   :  { %v6267_v58 = vadd.f32 %v6266_v43, %v6265_v39 }
0x2c66   :  { %v6268_v60 = vmul.f32 0.5, %v6260_v11 }
0x2c67   :  { %v6269_v13 = vmul.f32 0.5, %v6267_v58 }
0x2c68   :  { %v6270_v38 = vadd.f32 1e-05, %v6268_v60 }
0x2c69   :  { %v6271_v28 = vadd.f32 1e-05, %v6269_v13 }
0x2c6a   :  { %9080 = vrsqrt.f32 %v6270_v38 }
0x2c6b   :  { %9082 = vrsqrt.f32 %v6271_v28 }
0x2c74   :  { %v9081_v5 = vpop.eup %9080 }
0x2c75   :  { %v9083_v17 = vpop.eup %9082  ;;  %v6274_v37 = vmul.f32 %v9081_v5, %v6250_v34 }
0x2c76   :  { %v6275_v19 = vmul.f32 %v9083_v17, %v6251_v2 }
0x2c77   :  { %v6287_v63 = vmul.f32 %v6280_v48, %v6274_v37 }
0x2c78   :  { %v6288_v20 = vmul.f32 %v6284_v10, %v6275_v19 }
0x2c79   :  { %v6300_v22 = vadd.f32 %v6293_v56, %v6287_v63  ;;  %v6614_v63 = vld [vmem:[%s10581_s19] sm:$0xff] }
0x2c7a   :  { %v6301_v27 = vadd.f32 %v6297_v54, %v6288_v20  ;;  %v6615_v20 = vld [vmem:[%s10581_s19 + $0x8] sm:$0xff] }
0x2c7b   :  { %v6304_v46 = vmul.f32 0.70710677, %v6300_v22  ;;  %v6302_v5 = vmul.f32 0.5, %v6300_v22  ;;  %v6616_v22 = vld [vmem:[%s10581_s19 + $0x10] sm:$0xff] }
0x2c7c   :  { %v6305_v47 = vmul.f32 0.70710677, %v6301_v27  ;;  %v6303_v45 = vmul.f32 0.5, %v6301_v27  ;;  %v6617_v27 = vld [vmem:[%s10581_s19 + $0x18] sm:$0xff] }
0x2c7d   :  { %v6306_v8 = vand.u32 2147483647, %v6304_v46  ;;  %vm6346_vm10 = vcmp.lt.f32.partialorder %v6304_v46, 0.0  ;;  %v8847_v46 = vpack.c.bf16 %v6617_v27, %v6616_v22 }
0x2c7e   :  { %v6307_v52 = vand.u32 2147483647, %v6305_v47  ;;  %vm6347_vm11 = vcmp.lt.f32.partialorder %v6305_v47, 0.0  ;;  %v6618_v47 = vld [vmem:[%s10581_s19 + $0x20] sm:$0xff] }
0x2c7f   :  { %v6308_v41 = vmul.f32 0.3275911, %v6306_v8  ;;  %v6334_v23 = vmul.f32 %v6306_v8, %v6306_v8  ;;  %v6619_v8 = vld [vmem:[%s10581_s19 + $0x28] sm:$0xff] }
0x2c80   :  { %v6309_v44 = vmul.f32 0.3275911, %v6307_v52  ;;  %v6335_v53 = vmul.f32 %v6307_v52, %v6307_v52  ;;  %v8850_v52 = vpack.c.bf16 %v6619_v8, %v6618_v47 }
0x2c81   :  { %v6310_v50 = vadd.f32 1.0, %v6308_v41  ;;  %v6336_v12 = vsub.f32 0.0, %v6334_v23  ;;  %v6620_v41 = vld [vmem:[%s10581_s19 + $0x30] sm:$0xff]  ;;  %v6623_v23 = vld [vmem:[%s10581_s19 + $0x48] sm:$0xff] }
0x2c82   :  { %v6311_v51 = vadd.f32 1.0, %v6309_v44  ;;  %v6337_v61 = vsub.f32 0.0, %v6335_v53  ;;  %v6621_v44 = vld [vmem:[%s10581_s19 + $0x38] sm:$0xff] }
0x2c83   :  { %9084 = vrcp.f32 %v6310_v50  ;;  %v6338_v62 = vmul.f32 1.442695, %v6336_v12  ;;  %v8853_v50 = vpack.c.bf16 %v6621_v44, %v6620_v41  ;;  %v6625_v12 = vld [vmem:[%s10581_s19 + $0x58] sm:$0xff] }
0x2c84   :  { %9086 = vrcp.f32 %v6311_v51  ;;  %v6340_v21 = vmul.f32 1.442695, %v6337_v61  ;;  %v6622_v51 = vld [vmem:[%s10581_s19 + $0x40] sm:$0xff] }
0x2c85   :  { %9088 = vpow2.f32 %v6338_v62  ;;  %v8856_v53 = vpack.c.bf16 %v6623_v23, %v6622_v51  ;;  %v6626_v61 = vld [vmem:[%s10581_s19 + $0x60] sm:$0xff]  ;;  %v6629_v62 = vld [vmem:[%s10581_s19 + $0x78] sm:$0xff] }
0x2c86   :  { %9090 = vpow2.f32 %v6340_v21  ;;  %v6630_v21 = vld [vmem:[%s10581_s19 + $0x80] sm:$0xff] }
0x2c8d   :  { %v9085_v55 = vpop.eup %9084 }
0x2c8e   :  { %v9087_v30 = vpop.eup %9086  ;;  %v6316_v16 = vmul.f32 1.0614054, %v9085_v55 }
0x2c8f   :  { %v6317_v59 = vmul.f32 1.0614054, %v9087_v30  ;;  %v9089_v9 = vpop.eup %9088 }
0x2c90   :  { %v6318_v15 = vadd.f32 -1.4531521, %v6316_v16  ;;  %v9091_v39 = vpop.eup %9090  ;;  %v6627_v16 = vld [vmem:[%s10581_s19 + $0x68] sm:$0xff] }
0x2c91   :  { %v6319_v40 = vadd.f32 -1.4531521, %v6317_v59  ;;  %v8862_v59 = vpack.c.bf16 %v6627_v16, %v6626_v61 }
0x2c92   :  { %v6320_v1 = vmul.f32 %v9085_v55, %v6318_v15  ;;  %v6628_v15 = vld [vmem:[%s10581_s19 + $0x70] sm:$0xff] }
0x2c93   :  { %v6321_v26 = vmul.f32 %v9087_v30, %v6319_v40  ;;  %v8865_v40 = vpack.c.bf16 %v6629_v62, %v6628_v15  ;;  %v6490_v15 = vld [vmem:[%s6896_s16] sm:$0x3] }
0x2c94   :  { %v6322_v34 = vadd.f32 1.4214138, %v6320_v1  ;;  %v6631_v1 = vld [vmem:[%s10581_s19 + $0x88] sm:$0xff]  ;;  %v6491_v62 = vld [vmem:[%s6897_s21] sm:$0x3] }
0x2c95   :  { %v6323_v2 = vadd.f32 1.4214138, %v6321_v26  ;;  %v8868_v26 = vpack.c.bf16 %v6631_v1, %v6630_v21  ;;  %v6542_v1 = vrot.slane %v6490_v15, %v10556_v32 }
0x2c96   :  { %v6324_v36 = vmul.f32 %v9085_v55, %v6322_v34  ;;  %v6632_v34 = vld [vmem:[%s10581_s19 + $0x90] sm:$0xff] }
0x2c97   :  { %v6325_v3 = vmul.f32 %v9087_v30, %v6323_v2  ;;  %v6633_v2 = vld [vmem:[%s10581_s19 + $0x98] sm:$0xff] }
0x2c98   :  { %v6326_v33 = vadd.f32 -0.28449672, %v6324_v36  ;;  %v8871_v36 = vpack.c.bf16 %v6633_v2, %v6632_v34  ;;  %v6551_v2 = vrot.slane %v6491_v62, %v10553_v24 }
0x2c99   :  { %v6327_v49 = vadd.f32 -0.28449672, %v6325_v3  ;;  %v6634_v3 = vld [vmem:[%s10581_s19 + $0xa0] sm:$0xff] }
0x2c9a   :  { %v6328_v25 = vmul.f32 %v9085_v55, %v6326_v33  ;;  %v6635_v33 = vld [vmem:[%s10581_s19 + $0xa8] sm:$0xff] }
0x2c9b   :  { %v6329_v42 = vmul.f32 %v9087_v30, %v6327_v49  ;;  %v8874_v49 = vpack.c.bf16 %v6635_v33, %v6634_v3  ;;  %v6555_v3 = vrot.slane %v6491_v62, %v10556_v32 }
0x2c9c   :  { %v6330_v4 = vadd.f32 0.2548296, %v6328_v25  ;;  %v6636_v25 = vld [vmem:[%s10581_s19 + $0xb0] sm:$0xff] }
0x2c9d   :  { %v6331_v57 = vadd.f32 0.2548296, %v6329_v42  ;;  %v6637_v42 = vld [vmem:[%s10581_s19 + $0xb8] sm:$0xff] }
0x2c9e   :  { %v6332_v31 = vmul.f32 %v9085_v55, %v6330_v4  ;;  %v6624_v55 = vld [vmem:[%s10581_s19 + $0x50] sm:$0xff]  ;;  %v8877_v4 = vpack.c.bf16 %v6637_v42, %v6636_v25 }
0x2c9f   :  { %v6333_v35 = vmul.f32 %v9087_v30, %v6331_v57  ;;  %v8859_v30 = vpack.c.bf16 %v6625_v12, %v6624_v55  ;;  %v6404_v57 = vld [vmem:[%s6895_s9] sm:$0x3] }
0x2ca0   :  { %v6342_v7 = vmul.f32 %v9089_v9, %v6332_v31  ;;  %v6409_v31 = vrot.slane %v6404_v57, %v10553_v24  ;;  %v6413_v9 = vrot.slane %v6404_v57, %v10556_v32 }
0x2ca1   :  { %v6343_v43 = vmul.f32 %v9091_v39, %v6333_v35 }
0x2ca2   :  { %v6344_v11 = vsub.f32 1.0, %v6342_v7 }
0x2ca3   :  { %v6345_v58 = vsub.f32 1.0, %v6343_v43 }
0x2ca4   :  { %v6348_v60 = vsub.f32 0.0, %v6344_v11 }
0x2ca5   :  { %v6349_v13 = vsub.f32 0.0, %v6345_v58 }
0x2ca6   :  { %v6350_v38 = vsel %vm6346_vm10, %v6348_v60, %v6344_v11 }
0x2ca7   :  { %v6351_v28 = vsel %vm6347_vm11, %v6349_v13, %v6345_v58  ;;  %v6352_v14 = vadd.f32 1.0, %v6350_v38 }
0x2ca8   :  { %v6353_v48 = vadd.f32 1.0, %v6351_v28 }
0x2ca9   :  { %v6354_v17 = vmul.f32 %v6352_v14, %v6302_v5 }
0x2caa   :  { %v6355_v10 = vmul.f32 %v6353_v48, %v6303_v45 }
0x2cac   :  { %7270 = vmatprep.mubr.msk.f32.mxu1 %vm187_vm0, %v6355_v10 }
0x2cad   :  { %6484 = vmatmul.mubr.f32.vlgmr.msra.gmra.mrb[164].mxu1 %v6354_v17 }
0x2cae   :  { %v5996_v37 = vpop.f32.mrb[150].mxu0  ;;  %8480 = vmatprep.mubr.msk.f32.mxu1 %vm9112_vm4, %v9113_v18  ;;  %v8844_v18 = vpack.c.bf16 %v6615_v20, %v6614_v63 }
0x2caf   :  { %v8474_v56 = vpop.f32.mrb[151].mxu0 }
0x2cb0   :  { %8845 = vmatpush1.bf16.msra.mxu0 %v8844_v18 }
0x2cb1   :  { %8846 = vmatprep.subr.bf16.mxu0 %v9106_v0 }
0x2cb2   :  { %v6000_v19 = vpop.f32.mrb[152].mxu0 }
0x2cb3   :  { %v8477_v54 = vpop.f32.mrb[153].mxu0 }
0x2cb4   :  { %8848 = vmatpush1.bf16.msra.mxu0 %v8847_v46 }
0x2cb5   :  { %8849 = vmatprep.subr.bf16.mxu0 %v9106_v0 }
0x2cb8   :  { %8851 = vmatpush1.bf16.msra.mxu0 %v8850_v52 }
0x2cb9   :  { %8852 = vmatprep.subr.bf16.mxu0 %v9106_v0 }
0x2cbc   :  { %8854 = vmatpush1.bf16.msra.mxu0 %v8853_v50 }
0x2cbd   :  { %8855 = vmatprep.subr.bf16.mxu0 %v9106_v0 }
0x2cc0   :  { %8857 = vmatpush1.bf16.msra.mxu0 %v8856_v53 }
0x2cc1   :  { %8858 = vmatprep.subr.bf16.mxu0 %v9106_v0 }
0x2cc4   :  { %8860 = vmatpush1.bf16.msra.mxu0 %v8859_v30 }
0x2cc5   :  { %8861 = vmatprep.subr.bf16.mxu0 %v9106_v0 }
0x2cc8   :  { %8863 = vmatpush1.bf16.msra.mxu0 %v8862_v59 }
0x2cc9   :  { %8864 = vmatprep.subr.bf16.mxu0 %v9106_v0 }
0x2ccc   :  { %8866 = vmatpush1.bf16.msra.mxu0 %v8865_v40  ;;  %v6538_v40 = vrot.slane %v6490_v15, %v10553_v24 }
0x2ccd   :  { %8867 = vmatprep.subr.bf16.mxu0 %v9106_v0 }
0x2cd0   :  { %8869 = vmatpush1.bf16.msra.mxu0 %v8868_v26 }
0x2cd1   :  { %8870 = vmatprep.subr.bf16.mxu0 %v9106_v0 }
0x2cd4   :  { %8872 = vmatpush1.bf16.msra.mxu0 %v8871_v36 }
0x2cd5   :  { %8873 = vmatprep.subr.bf16.mxu0 %v9106_v0 }
0x2cd8   :  { %8875 = vmatpush1.bf16.msra.mxu0 %v8874_v49 }
0x2cd9   :  { %8876 = vmatprep.subr.bf16.mxu0 %v9106_v0 }
0x2cdc   :  { %8878 = vmatpush1.bf16.msra.mxu0 %v8877_v4 }
0x2d80   :  { %v6485_v35 = vpop.f32.mrb[164].mxu1 }
0x2d81   :  { %v6486_v39 = vadd.f32 %v6485_v35, %v6409_v31  ;;  %v6487_v7 = vpop.f32.mrb[165].mxu1 }
0x2d82   :  { %v6488_v43 = vadd.f32 %v6487_v7, %v6413_v9 }
0x2d83   :  { %v6492_v11 = vsel %vm6231_vm8, %v6486_v39, 0.0 }
0x2d84   :  { %v6493_v58 = vrot.slane %v6492_v11, 4  ;;  %v6499_v0 = vsel %vm6239_vm9, %v6488_v43, 0.0 }
0x2d85   :  { %v6500_v60 = vrot.slane %v6499_v0, 4 }
0x2d86   :  { %v6494_v13 = vadd.f32 %v6493_v58, %v6492_v11 }
0x2d87   :  { %v6501_v38 = vadd.f32 %v6500_v60, %v6499_v0 }
0x2d88   :  { %v6495_v28 = vrot.slane %v6494_v13, 2 }
0x2d89   :  { %v6502_v14 = vrot.slane %v6501_v38, 2 }
0x2d8a   :  { %v6496_v45 = vadd.f32 %v6495_v28, %v6494_v13 }
0x2d8b   :  { %v6503_v48 = vadd.f32 %v6502_v14, %v6501_v38 }
0x2d8c   :  { %v6497_v5 = vrot.slane %v6496_v45, 1 }
0x2d8d   :  { %v6504_v10 = vrot.slane %v6503_v48, 1 }
0x2d8e   :  { %v6498_v17 = vadd.f32 %v6497_v5, %v6496_v45 }
0x2d8f   :  { %v6505_v37 = vadd.f32 %v6504_v10, %v6503_v48 }
0x2d90   :  { %v6506_v56 = vmul.f32 0.5, %v6498_v17 }
0x2d91   :  { %v6507_v19 = vmul.f32 0.5, %v6505_v37 }
0x2d92   :  { %v6508_v54 = vsub.f32 %v6486_v39, %v6506_v56 }
0x2d93   :  { %v6509_v63 = vsub.f32 %v6488_v43, %v6507_v19 }
0x2d94   :  { %v6510_v20 = vmul.f32 %v6508_v54, %v6508_v54 }
0x2d95   :  { %v6511_v18 = vmul.f32 %v6509_v63, %v6509_v63 }
0x2d96   :  { %v6512_v22 = vsel %vm6231_vm8, %v6510_v20, 0.0 }
0x2d97   :  { %v6513_v27 = vrot.slane %v6512_v22, 4  ;;  %v6519_v46 = vsel %vm6239_vm9, %v6511_v18, 0.0 }
0x2d98   :  { %v6520_v47 = vrot.slane %v6519_v46, 4 }
0x2d99   :  { %v6514_v8 = vadd.f32 %v6513_v27, %v6512_v22 }
0x2d9a   :  { %v6521_v52 = vadd.f32 %v6520_v47, %v6519_v46 }
0x2d9b   :  { %v6515_v41 = vrot.slane %v6514_v8, 2 }
0x2d9c   :  { %v6522_v44 = vrot.slane %v6521_v52, 2 }
0x2d9d   :  { %v6516_v50 = vadd.f32 %v6515_v41, %v6514_v8 }
0x2d9e   :  { %v6523_v51 = vadd.f32 %v6522_v44, %v6521_v52 }
0x2d9f   :  { %v6517_v23 = vrot.slane %v6516_v50, 1 }
0x2da0   :  { %v6524_v53 = vrot.slane %v6523_v51, 1 }
0x2da1   :  { %v6518_v55 = vadd.f32 %v6517_v23, %v6516_v50 }
0x2da2   :  { %v6525_v12 = vadd.f32 %v6524_v53, %v6523_v51 }
0x2da3   :  { %v6526_v30 = vmul.f32 0.5, %v6518_v55 }
0x2da4   :  { %v6527_v61 = vmul.f32 0.5, %v6525_v12 }
0x2da5   :  { %v6528_v16 = vadd.f32 1e-05, %v6526_v30 }
0x2da6   :  { %v6529_v59 = vadd.f32 1e-05, %v6527_v61 }
0x2da7   :  { %9092 = vrsqrt.f32 %v6528_v16 }
0x2da8   :  { %9094 = vrsqrt.f32 %v6529_v59 }
0x2db1   :  { %v9093_v21 = vpop.eup %9092 }
0x2db2   :  { %v9095_v26 = vpop.eup %9094  ;;  %v6532_v34 = vmul.f32 %v9093_v21, %v6508_v54  ;;  %v78_v21 = vstv %s6901_s5 }
0x2db3   :  { %v6533_v36 = vmul.f32 %v9095_v26, %v6509_v63  ;;  %79 = vst [vmem:[#allocation2] sm:$0x1] %v78_v21 }
0x2db4   :  { %v6545_v33 = vmul.f32 %v6538_v40, %v6532_v34  ;;  %v6718_v40 = vld [vmem:[%s6900_s27] sm:$0x3] }
0x2db5   :  { %v6546_v49 = vmul.f32 %v6542_v1, %v6533_v36  ;;  %8479 = vmatpush3.msk.msra.mxu1 %vm6231_vm8, %v6718_v40  ;;  %v7271_v1 = vld [vmem:[%s6899_s25] ss:$0 sm:$0xff] }
0x2db6   :  { %v6558_v25 = vadd.f32 %v6551_v2, %v6545_v33 }
0x2db7   :  { %v6559_v42 = vadd.f32 %v6555_v3, %v6546_v49 }
0x2db8   :  { %v6562_v4 = vmul.f32 0.70710677, %v6558_v25  ;;  %v6560_v59 = vmul.f32 0.5, %v6558_v25  ;;  %v6825_v25 = vmax.f32 %v10507_v29, 1e-12 }
0x2db9   :  { %v6563_v57 = vmul.f32 0.70710677, %v6559_v42  ;;  %v6561_v61 = vmul.f32 0.5, %v6559_v42 }
0x2dba   :  { %v6564_v31 = vand.u32 2147483647, %v6562_v4  ;;  %vm6604_vm4 = vcmp.lt.f32.partialorder %v6562_v4, 0.0  ;;  %v7273_v36 = vld [vmem:[#allocation2] ss:$0 sm:$0xff]  ;;  %v6846_v4 = vpop.permute.xlu1 %6845 }
0x2dbb   :  { %v6565_v9 = vand.u32 2147483647, %v6563_v57  ;;  %vm6605_vm1 = vcmp.lt.f32.partialorder %v6563_v57, 0.0 }
0x2dbc   :  { %v6566_v35 = vmul.f32 0.3275911, %v6564_v31  ;;  %v6592_v11 = vmul.f32 %v6564_v31, %v6564_v31 }
0x2dbd   :  { %v6567_v39 = vmul.f32 0.3275911, %v6565_v9  ;;  %v6593_v58 = vmul.f32 %v6565_v9, %v6565_v9 }
0x2dbe   :  { %v6568_v7 = vadd.f32 1.0, %v6566_v35  ;;  %v6594_v0 = vsub.f32 0.0, %v6592_v11  ;;  %v6854_v35 = vpop.permute.xlu1 %6853 }
0x2dbf   :  { %v6569_v43 = vadd.f32 1.0, %v6567_v39  ;;  %v6595_v32 = vsub.f32 0.0, %v6593_v58 }
0x2dc0   :  { %9096 = vrcp.f32 %v6568_v7  ;;  %v6596_v14 = vmul.f32 1.442695, %v6594_v0 }
0x2dc1   :  { %9098 = vrcp.f32 %v6569_v43  ;;  %v6598_v48 = vmul.f32 1.442695, %v6595_v32 }
0x2dc2   :  { %9100 = vpow2.f32 %v6596_v14 }
0x2dc3   :  { %9102 = vpow2.f32 %v6598_v48 }
0x2dc4   :  { %9104 = vrcp.f32 %v6825_v25 }
0x2dca   :  { %v9097_v24 = vpop.eup %9096 }
0x2dcb   :  { %v9099_v60 = vpop.eup %9098  ;;  %v6574_v13 = vmul.f32 1.0614054, %v9097_v24 }
0x2dcc   :  { %v6575_v38 = vmul.f32 1.0614054, %v9099_v60  ;;  %v9101_v47 = vpop.eup %9100 }
0x2dcd   :  { %v6576_v28 = vadd.f32 -1.4531521, %v6574_v13  ;;  %v9103_v52 = vpop.eup %9102 }
0x2dce   :  { %v6577_v45 = vadd.f32 -1.4531521, %v6575_v38  ;;  %v9105_v42 = vpop.eup %9104 }
0x2dcf   :  { %v6578_v5 = vmul.f32 %v9097_v24, %v6576_v28  ;;  %v6827_v57 = vmul.f32 %v9105_v42, %v10469_v6 }
0x2dd0   :  { %v6579_v10 = vmul.f32 %v9099_v60, %v6577_v45 }
0x2dd1   :  { %v6580_v17 = vadd.f32 1.4214138, %v6578_v5  ;;  %v6856_v31 = vsel %vm338_vm2, %v6827_v57, %v6846_v4 }
0x2dd2   :  { %v6581_v37 = vadd.f32 1.4214138, %v6579_v10 }
0x2dd3   :  { %v6582_v56 = vmul.f32 %v9097_v24, %v6580_v17 }
0x2dd4   :  { %v6583_v19 = vmul.f32 %v9099_v60, %v6581_v37 }
0x2dd5   :  { %v6584_v54 = vadd.f32 -0.28449672, %v6582_v56 }
0x2dd6   :  { %v6585_v63 = vadd.f32 -0.28449672, %v6583_v19 }
0x2dd7   :  { %v6586_v20 = vmul.f32 %v9097_v24, %v6584_v54 }
0x2dd8   :  { %v6587_v18 = vmul.f32 %v9099_v60, %v6585_v63 }
0x2dd9   :  { %v6588_v22 = vadd.f32 0.2548296, %v6586_v20 }
0x2dda   :  { %v6589_v27 = vadd.f32 0.2548296, %v6587_v18 }
0x2ddb   :  { %v6590_v46 = vmul.f32 %v9097_v24, %v6588_v22 }
0x2ddc   :  { %v6591_v8 = vmul.f32 %v9099_v60, %v6589_v27 }
0x2ddd   :  { %v6600_v41 = vmul.f32 %v9101_v47, %v6590_v46 }
0x2dde   :  { %v6601_v44 = vmul.f32 %v9103_v52, %v6591_v8 }
0x2ddf   :  { %v6602_v50 = vsub.f32 1.0, %v6600_v41 }
0x2de0   :  { %v6603_v51 = vsub.f32 1.0, %v6601_v44 }
0x2de1   :  { %v6606_v23 = vsub.f32 0.0, %v6602_v50 }
0x2de2   :  { %v6607_v53 = vsub.f32 0.0, %v6603_v51 }
0x2de3   :  { %v6608_v55 = vsel %vm6604_vm4, %v6606_v23, %v6602_v50 }
0x2de4   :  { %v6609_v12 = vsel %vm6605_vm1, %v6607_v53, %v6603_v51  ;;  %v6610_v30 = vadd.f32 1.0, %v6608_v55 }
0x2de5   :  { %v6611_v16 = vadd.f32 1.0, %v6609_v12 }
0x2de6   :  { %v6612_v62 = vmul.f32 %v6610_v30, %v6560_v59 }
0x2de7   :  { %v6613_v15 = vmul.f32 %v6611_v16, %v6561_v61 }
0x2de9   :  { %7272 = vmatprep.mubr.msk.f32.mxu0 %vm187_vm0, %v6613_v15 }
0x2dea   :  { %6713 = vmatmul.mubr.f32.vlgmr.msra.gmra.mrb[154].mxu0 %v6612_v62 }
0x2ebd   :  { %v6714_v26 = vpop.f32.mrb[154].mxu0 }
0x2ebe   :  { %v6715_v34 = vadd.f32 %v7271_v1, %v6714_v26  ;;  %v6716_v2 = vpop.f32.mrb[155].mxu0 }
0x2ec0   :  { %8481 = vmatmul.mubr.msk.f32.vlgmr.msra.gmra.mrb[166].mxu1 %vm6726_vm5, %v6715_v34 }
0x2f93   :  { %v6799_v3 = vpop.f32.mrb[166].mxu1 }
0x2f94   :  { %v6800_v33 = vadd.f32 %v7273_v36, %v6799_v3  ;;  %v8482_v49 = vpop.f32.mrb[167].mxu1 }
0x2f96   :  { %6849 = vrot.lane.b32.xlu0 %v6800_v33, %s9147_s29 }
0x3008   :  { %v6850_v9 = vpop.permute.xlu0 %6849 }
0x3009   :  { %v6857_v39 = vsel %vm187_vm0, %v6856_v31, %v6850_v9 }
0x300a   :  { %v6859_v7 = vsel %vm6858_vm6, %v6857_v39, %v6854_v35 }
0x300b   :  { %v6861_v29 = vsel %vm6860_vm3, %v6859_v7, 0.0 }
0x300c   :  { %6862 = vst [vmem:[%s6902_s15] sm:$0x3] %v6861_v29 }

</bundles_post_ra>
